<compile_context>
chip_gen: v7x
topology: tpu7x:2x2x1
jax: 0.10.0
libtpu: 0.0.40
codegen_flags: <defaults>
</compile_context>

<pallas_src>
import math

import numpy as np
import jax
import jax.numpy as jnp
from jax import lax
from jax.experimental import pallas as pl
from jax.experimental.pallas import tpu as pltpu


_VMEM_SPEC = pl.BlockSpec(memory_space=pltpu.MemorySpace.VMEM)


# -----------------------------------------------------------------------------
# Fused Pallas kernel (whole SequenceModel forward)
# -----------------------------------------------------------------------------
def make_sequence_model_kernel(num_layers, T, B, H):
    H2, H3, H4, H6 = 2 * H, 3 * H, 4 * H, 6 * H

    def kernel(*refs):
        xcat_ref = refs[0]                       # [T*B, 2F]
        layer_refs = refs[1:1 + 4 * num_layers]  # per layer: wih, bih, whh, bhh
        fcw_ref = refs[1 + 4 * num_layers]       # [O, 2H]   (pre-transposed)
        fcb_ref = refs[2 + 4 * num_layers]       # [O, 1]
        out_ref = refs[3 + 4 * num_layers]       # [B, O, T]
        act_ref = refs[4 + 4 * num_layers]       # VMEM scratch [T*B, 4H]

        for l in range(num_layers):
            wih_ref, bih_ref, whh_ref, bhh_ref = layer_refs[4 * l:4 * l + 4]
            last = (l == num_layers - 1)

            # Layer input, [T*B, 2*I]: cols [:I] time-ordered, [I:] time-reversed.
            a_in = xcat_ref[...] if l == 0 else act_ref[...]

            # Hoisted input projection: ONE matmul for all steps & both dirs.
            # Gate-major columns: (r_f | r_b | z_f | z_b | n_f | n_b).
            gi_all = jnp.dot(a_in, wih_ref[...],
                             preferred_element_type=jnp.float32) + bih_ref[...]

            # Recurrence, fully unrolled (T is small and static).
            h = jnp.zeros((B, H2), jnp.float32)          # [h_fwd | h_bwd]
            for t in range(T):
                gi = gi_all[t * B:(t + 1) * B, :]        # [B, 6H]
                gh = jnp.dot(h, whh_ref[...],
                             preferred_element_type=jnp.float32) + bhh_ref[...]
                rz = jax.nn.sigmoid(gi[:, :H4] + gh[:, :H4])        # [B, 4H]
                r, z = rz[:, :H2], rz[:, H2:H4]
                n = jnp.tanh(gi[:, H4:H6] + r * gh[:, H4:H6])       # [B, 2H]
                h = (1.0 - z) * n + z * h

                rf = t * B              # time-order row of fwd output (time t)
                rb = (T - 1 - t) * B    # time-order row of bwd output (time T-1-t)
                if not last:
                    # Next layer's input: time-ordered copy in cols [:2H] and a
                    # time-reversed copy in cols [2H:4H] (feeds its bwd gates).
                    act_ref[rf:rf + B, 0:H] = h[:, 0:H]
                    act_ref[rb:rb + B, H:H2] = h[:, H:H2]
                    act_ref[rb:rb + B, H2:H3] = h[:, 0:H]
                    act_ref[rf:rf + B, H3:H4] = h[:, H:H2]
                else:
                    # Last layer: store batch-major so the FC stage below can
                    # emit [B, O, T] directly (no post-kernel transpose).
                    for b in range(B):
                        act_ref[b * T + t:b * T + t + 1, 0:H] = h[b:b + 1, 0:H]
                        act_ref[b * T + (T - 1 - t):b * T + (T - t), H:H2] = \
                            h[b:b + 1, H:H2]

        # Fused Linear + Tanh + output permute: out[b] = tanh(W @ h_b^T + bias).
        for b in range(B):
            a_b = act_ref[b * T:(b + 1) * T, 0:H2]                   # [T, 2H]
            y_b = lax.dot_general(fcw_ref[...], a_b,
                                  (((1,), (1,)), ((), ())),
                                  preferred_element_type=jnp.float32)  # [O, T]
            out_ref[b] = jnp.tanh(y_b + fcb_ref[...]).astype(out_ref.dtype)

    return kernel


# -----------------------------------------------------------------------------
# Wrapper
# -----------------------------------------------------------------------------
def sequence_model_forward(x_bft, packed):
    """x_bft: [B, F, T] -> [B, output_size, T]."""
    B, F, T = x_bft.shape
    H = packed["layers"][0][2].shape[0] // 2      # whh is [2H, 6H]
    O = packed["fc_w_t"].shape[0]
    L = len(packed["layers"])

    # permute(0,2,1) -> time-major -> flatten; also build the time-reversed
    # copy the bwd direction consumes (second half of the input-feature axis).
    x_tm = jnp.transpose(x_bft, (2, 0, 1)).astype(jnp.float32)        # [T, B, F]
    xcat = jnp.concatenate([x_tm.reshape(T * B, F),
                            x_tm[::-1].reshape(T * B, F)], axis=1)    # [T*B, 2F]

    args = [xcat]
    for wih, bih, whh, bhh in packed["layers"]:
        args += [wih, bih, whh, bhh]
    args += [packed["fc_w_t"], packed["fc_b"]]

    return pl.pallas_call(
        make_sequence_model_kernel(L, T, B, H),
        out_shape=jax.ShapeDtypeStruct((B, O, T), jnp.float32),
        in_specs=[_VMEM_SPEC] * len(args),
        out_specs=_VMEM_SPEC,
        scratch_shapes=[pltpu.VMEM((T * B, 4 * H), jnp.float32)],
    )(*args)


# -----------------------------------------------------------------------------
# Parameter init (per-direction PyTorch-style weights) + packing for the kernel
# -----------------------------------------------------------------------------
def init_params(key, input_size, hidden_size, num_layers, output_size,
                bidirectional=True):
    num_dirs = 2 if bidirectional else 1
    params = {"gru": []}
    stdv = 1.0 / math.sqrt(hidden_size)
    for l in range(num_layers):
        layer_in = input_size if l == 0 else hidden_size * num_dirs
        layer_p = {}
        for name in ["fwd", "bwd"][:num_dirs]:
            key, k1, k2, k3, k4 = jax.random.split(key, 5)
            # stored transposed relative to PyTorch: [in, 3H] / [H, 3H], gates (r,z,n)
            w_ih = jax.random.uniform(k1, (layer_in, 3 * hidden_size),
                                      jnp.float32, -stdv, stdv)
            w_hh = jax.random.uniform(k2, (hidden_size, 3 * hidden_size),
                                      jnp.float32, -stdv, stdv)
            b_ih = jax.random.uniform(k3, (3 * hidden_size,),
                                      jnp.float32, -stdv, stdv)
            b_hh = jax.random.uniform(k4, (3 * hidden_size,),
                                      jnp.float32, -stdv, stdv)
            layer_p[name] = (w_ih, w_hh, b_ih, b_hh)
        params["gru"].append(layer_p)

    fc_in = hidden_size * num_dirs
    k_fc = 1.0 / math.sqrt(fc_in)
    key, k1, k2 = jax.random.split(key, 3)
    params["fc_w"] = jax.random.uniform(k1, (fc_in, output_size),
                                        jnp.float32, -k_fc, k_fc)
    params["fc_b"] = jax.random.uniform(k2, (output_size,),
                                        jnp.float32, -k_fc, k_fc)
    return params


def pack_params(params):
    """Re-pack per-direction GRU weights into the fused gate-major block layout.

    Per layer:
      wih [2I, 6H]: rows [:I] = W_ih_fwd (consumes time-ordered input),
                    rows [I:] = W_ih_bwd (consumes time-reversed input);
                    columns gate-major (r_f|r_b|z_f|z_b|n_f|n_b), zero off-block.
      whh [2H, 6H]: block-diagonal per direction, same gate-major columns.
    """
    layers = []
    for layer in params["gru"]:
        w_ih_f, w_hh_f, b_ih_f, b_hh_f = layer["fwd"]
        w_ih_b, w_hh_b, b_ih_b, b_hh_b = layer["bwd"]
        I = w_ih_f.shape[0]
        H = w_hh_f.shape[0]
        wih = jnp.zeros((2 * I, 6 * H), jnp.float32)
        whh = jnp.zeros((2 * H, 6 * H), jnp.float32)
        bih_parts, bhh_parts = [], []
        for g in range(3):                                # gate order: r, z, n
            cf = slice(2 * g * H, (2 * g + 1) * H)        # fwd gate columns
            cb = slice((2 * g + 1) * H, (2 * g + 2) * H)  # bwd gate columns
            gs = slice(g * H, (g + 1) * H)
            wih = wih.at[0:I, cf].set(w_ih_f[:, gs])
            wih = wih.at[I:2 * I, cb].set(w_ih_b[:, gs])
            whh = whh.at[0:H, cf].set(w_hh_f[:, gs])
            whh = whh.at[H:2 * H, cb].set(w_hh_b[:, gs])
            bih_parts += [b_ih_f[gs], b_ih_b[gs]]
            bhh_parts += [b_hh_f[gs], b_hh_b[gs]]
        bih = jnp.concatenate(bih_parts).reshape(1, 6 * H)
        bhh = jnp.concatenate(bhh_parts).reshape(1, 6 * H)
        layers.append((wih, bih, whh, bhh))
    return {
        "layers": layers,
        "fc_w_t": params["fc_w"].T,                 # [O, 2H]
        "fc_b": params["fc_b"].reshape(-1, 1),      # [O, 1]
    }


# -----------------------------------------------------------------------------
# Pure-JAX reference (for correctness check)
# -----------------------------------------------------------------------------
def _gru_layer_ref(x_tbi, w_ih, w_hh, b_ih, b_hh):
    H = w_hh.shape[0]

    def cell(h, x_t):
        gi = x_t @ w_ih + b_ih
        gh = h @ w_hh + b_hh
        i_r, i_z, i_n = gi[:, :H], gi[:, H:2 * H], gi[:, 2 * H:]
        h_r, h_z, h_n = gh[:, :H], gh[:, H:2 * H], gh[:, 2 * H:]
        r = jax.nn.sigmoid(i_r + h_r)
        z = jax.nn.sigmoid(i_z + h_z)
        n = jnp.tanh(i_n + r * h_n)
        h_new = (1.0 - z) * n + z * h
        return h_new, h_new

    h0 = jnp.zeros((x_tbi.shape[1], H), jnp.float32)
    _, ys = lax.scan(cell, h0, x_tbi)
    return ys


def sequence_model_ref(x_bft, params):
    h = jnp.transpose(x_bft, (2, 0, 1)).astype(jnp.float32)
    for layer in params["gru"]:
        fwd = _gru_layer_ref(h, *layer["fwd"])
        bwd = _gru_layer_ref(h[::-1], *layer["bwd"])[::-1]
        h = jnp.concatenate([fwd, bwd], axis=-1)
    o = jnp.tanh(h @ params["fc_w"] + params["fc_b"])
    return jnp.transpose(o, (1, 2, 0))


# -----------------------------------------------------------------------------
if __name__ == "__main__":
    B, F, T = 2, 16, 8          # batch, input feature size, time steps
    HIDDEN = 32
    NUM_LAYERS = 2
    OUTPUT_SIZE = 16            # -> output [B, 16, T]

    key = jax.random.PRNGKey(0)
    key, kx, kp = jax.random.split(key, 3)
    x = jax.random.normal(kx, (B, F, T), jnp.float32)
    params = init_params(kp, F, HIDDEN, NUM_LAYERS, OUTPUT_SIZE,
                         bidirectional=True)
    packed = pack_params(params)

    fwd_fn = jax.jit(sequence_model_forward)
    out = jax.block_until_ready(fwd_fn(x, packed))

    ref = jax.block_until_ready(sequence_model_ref(x, params))
    assert out.shape == (B, OUTPUT_SIZE, T), out.shape
    assert np.allclose(np.asarray(out), np.asarray(ref), atol=1e-4, rtol=1e-4)

    print("KERNEL_OK")
</pallas_src>

<mosaic_0001>
module attributes {stable_mosaic.version = 11 : i64} {
  func.func @kernel(%arg0: memref<16x32xf32, #tpu.memory_space<vmem>>, %arg1: memref<32x192xf32, #tpu.memory_space<vmem>>, %arg2: memref<1x192xf32, #tpu.memory_space<vmem>>, %arg3: memref<64x192xf32, #tpu.memory_space<vmem>>, %arg4: memref<1x192xf32, #tpu.memory_space<vmem>>, %arg5: memref<128x192xf32, #tpu.memory_space<vmem>>, %arg6: memref<1x192xf32, #tpu.memory_space<vmem>>, %arg7: memref<64x192xf32, #tpu.memory_space<vmem>>, %arg8: memref<1x192xf32, #tpu.memory_space<vmem>>, %arg9: memref<16x64xf32, #tpu.memory_space<vmem>>, %arg10: memref<16x1xf32, #tpu.memory_space<vmem>>, %arg11: memref<2x16x8xf32, #tpu.memory_space<vmem>>, %arg12: memref<16x128xf32, #tpu.memory_space<vmem>>) attributes {dimension_semantics = [], scalar_prefetch = 0 : i64, scratch_operands = 1 : i64, tpu.core_type = #tpu.core_type<tc>} {
    %c0 = arith.constant 0 : index
    %c0_0 = arith.constant 0 : index
    %0 = vector.load %arg0[%c0, %c0_0] : memref<16x32xf32, #tpu.memory_space<vmem>>, vector<16x32xf32>
    %c0_1 = arith.constant 0 : index
    %c0_2 = arith.constant 0 : index
    %1 = vector.load %arg1[%c0_1, %c0_2] : memref<32x192xf32, #tpu.memory_space<vmem>>, vector<32x192xf32>
    %cst = arith.constant dense<0.000000e+00> : vector<16x192xf32>
    %2 = tpu.matmul %0, %1, %cst {dimension_numbers = #tpu.dot_dimension_numbers<[1], [0], [0], [1], [0, 0, 1, 1], [], []>} : vector<16x32xf32>, vector<32x192xf32>, vector<16x192xf32> -> vector<16x192xf32>
    %c0_3 = arith.constant 0 : index
    %c0_4 = arith.constant 0 : index
    %3 = vector.load %arg2[%c0_3, %c0_4] : memref<1x192xf32, #tpu.memory_space<vmem>>, vector<1x192xf32>
    %4 = vector.broadcast %3 : vector<1x192xf32> to vector<16x192xf32>
    %5 = arith.addf %2, %4 : vector<16x192xf32>
    %cst_5 = arith.constant 0.000000e+00 : f32
    %6 = vector.broadcast %cst_5 : f32 to vector<2x64xf32>
    %7 = vector.extract_strided_slice %5 {offsets = [0, 0], sizes = [2, 192], strides = [1, 1]} : vector<16x192xf32> to vector<2x192xf32>
    %c0_6 = arith.constant 0 : index
    %c0_7 = arith.constant 0 : index
    %8 = vector.load %arg3[%c0_6, %c0_7] : memref<64x192xf32, #tpu.memory_space<vmem>>, vector<64x192xf32>
    %cst_8 = arith.constant dense<0.000000e+00> : vector<2x192xf32>
    %9 = tpu.matmul %6, %8, %cst_8 {dimension_numbers = #tpu.dot_dimension_numbers<[1], [0], [0], [1], [0, 0, 1, 1], [], []>} : vector<2x64xf32>, vector<64x192xf32>, vector<2x192xf32> -> vector<2x192xf32>
    %c0_9 = arith.constant 0 : index
    %c0_10 = arith.constant 0 : index
    %10 = vector.load %arg4[%c0_9, %c0_10] : memref<1x192xf32, #tpu.memory_space<vmem>>, vector<1x192xf32>
    %11 = vector.broadcast %10 : vector<1x192xf32> to vector<2x192xf32>
    %12 = arith.addf %9, %11 : vector<2x192xf32>
    %13 = vector.extract_strided_slice %7 {offsets = [0, 0], sizes = [2, 128], strides = [1, 1]} : vector<2x192xf32> to vector<2x128xf32>
    %14 = vector.extract_strided_slice %12 {offsets = [0, 0], sizes = [2, 128], strides = [1, 1]} : vector<2x192xf32> to vector<2x128xf32>
    %15 = arith.addf %13, %14 : vector<2x128xf32>
    %16 = arith.negf %15 : vector<2x128xf32>
    %17 = math.exp %16 : vector<2x128xf32>
    %cst_11 = arith.constant 1.000000e+00 : f32
    %18 = vector.broadcast %cst_11 : f32 to vector<2x128xf32>
    %19 = arith.addf %18, %17 : vector<2x128xf32>
    %20 = arith.divf %18, %19 : vector<2x128xf32>
    %21 = vector.extract_strided_slice %20 {offsets = [0, 0], sizes = [2, 64], strides = [1, 1]} : vector<2x128xf32> to vector<2x64xf32>
    %22 = vector.extract_strided_slice %20 {offsets = [0, 64], sizes = [2, 64], strides = [1, 1]} : vector<2x128xf32> to vector<2x64xf32>
    %23 = vector.extract_strided_slice %7 {offsets = [0, 128], sizes = [2, 64], strides = [1, 1]} : vector<2x192xf32> to vector<2x64xf32>
    %24 = vector.extract_strided_slice %12 {offsets = [0, 128], sizes = [2, 64], strides = [1, 1]} : vector<2x192xf32> to vector<2x64xf32>
    %25 = arith.mulf %21, %24 : vector<2x64xf32>
    %26 = arith.addf %23, %25 : vector<2x64xf32>
    %27 = math.tanh %26 : vector<2x64xf32>
    %cst_12 = arith.constant 1.000000e+00 : f32
    %28 = vector.broadcast %cst_12 : f32 to vector<2x64xf32>
    %29 = arith.subf %28, %22 : vector<2x64xf32>
    %30 = arith.mulf %29, %27 : vector<2x64xf32>
    %31 = arith.mulf %22, %6 : vector<2x64xf32>
    %32 = arith.addf %30, %31 : vector<2x64xf32>
    %33 = vector.extract_strided_slice %32 {offsets = [0, 0], sizes = [2, 32], strides = [1, 1]} : vector<2x64xf32> to vector<2x32xf32>
    %c0_13 = arith.constant 0 : index
    %c0_14 = arith.constant 0 : index
    %34 = vector.load %arg12[%c0_13, %c0_14] : memref<16x128xf32, #tpu.memory_space<vmem>>, vector<2x32xf32>
    tpu.vector_store %arg12[%c0_13, %c0_14], %33 {strides = array<i32>} : memref<16x128xf32, #tpu.memory_space<vmem>>, vector<2x32xf32>,
    %35 = vector.extract_strided_slice %32 {offsets = [0, 32], sizes = [2, 32], strides = [1, 1]} : vector<2x64xf32> to vector<2x32xf32>
    %c14 = arith.constant 14 : index
    %c32 = arith.constant 32 : index
    %36 = vector.load %arg12[%c14, %c32] : memref<16x128xf32, #tpu.memory_space<vmem>>, vector<2x32xf32>
    tpu.vector_store %arg12[%c14, %c32], %35 {strides = array<i32>} : memref<16x128xf32, #tpu.memory_space<vmem>>, vector<2x32xf32>,
    %37 = vector.extract_strided_slice %32 {offsets = [0, 0], sizes = [2, 32], strides = [1, 1]} : vector<2x64xf32> to vector<2x32xf32>
    %c14_15 = arith.constant 14 : index
    %c64 = arith.constant 64 : index
    %38 = vector.load %arg12[%c14_15, %c64] : memref<16x128xf32, #tpu.memory_space<vmem>>, vector<2x32xf32>
    tpu.vector_store %arg12[%c14_15, %c64], %37 {strides = array<i32>} : memref<16x128xf32, #tpu.memory_space<vmem>>, vector<2x32xf32>,
    %39 = vector.extract_strided_slice %32 {offsets = [0, 32], sizes = [2, 32], strides = [1, 1]} : vector<2x64xf32> to vector<2x32xf32>
    %c0_16 = arith.constant 0 : index
    %c96 = arith.constant 96 : index
    %40 = vector.load %arg12[%c0_16, %c96] : memref<16x128xf32, #tpu.memory_space<vmem>>, vector<2x32xf32>
    tpu.vector_store %arg12[%c0_16, %c96], %39 {strides = array<i32>} : memref<16x128xf32, #tpu.memory_space<vmem>>, vector<2x32xf32>,
    %41 = vector.extract_strided_slice %5 {offsets = [2, 0], sizes = [2, 192], strides = [1, 1]} : vector<16x192xf32> to vector<2x192xf32>
    %c0_17 = arith.constant 0 : index
    %c0_18 = arith.constant 0 : index
    %42 = vector.load %arg3[%c0_17, %c0_18] : memref<64x192xf32, #tpu.memory_space<vmem>>, vector<64x192xf32>
    %cst_19 = arith.constant dense<0.000000e+00> : vector<2x192xf32>
    %43 = tpu.matmul %32, %42, %cst_19 {dimension_numbers = #tpu.dot_dimension_numbers<[1], [0], [0], [1], [0, 0, 1, 1], [], []>} : vector<2x64xf32>, vector<64x192xf32>, vector<2x192xf32> -> vector<2x192xf32>
    %c0_20 = arith.constant 0 : index
    %c0_21 = arith.constant 0 : index
    %44 = vector.load %arg4[%c0_20, %c0_21] : memref<1x192xf32, #tpu.memory_space<vmem>>, vector<1x192xf32>
    %45 = vector.broadcast %44 : vector<1x192xf32> to vector<2x192xf32>
    %46 = arith.addf %43, %45 : vector<2x192xf32>
    %47 = vector.extract_strided_slice %41 {offsets = [0, 0], sizes = [2, 128], strides = [1, 1]} : vector<2x192xf32> to vector<2x128xf32>
    %48 = vector.extract_strided_slice %46 {offsets = [0, 0], sizes = [2, 128], strides = [1, 1]} : vector<2x192xf32> to vector<2x128xf32>
    %49 = arith.addf %47, %48 : vector<2x128xf32>
    %50 = arith.negf %49 : vector<2x128xf32>
    %51 = math.exp %50 : vector<2x128xf32>
    %cst_22 = arith.constant 1.000000e+00 : f32
    %52 = vector.broadcast %cst_22 : f32 to vector<2x128xf32>
    %53 = arith.addf %52, %51 : vector<2x128xf32>
    %54 = arith.divf %52, %53 : vector<2x128xf32>
    %55 = vector.extract_strided_slice %54 {offsets = [0, 0], sizes = [2, 64], strides = [1, 1]} : vector<2x128xf32> to vector<2x64xf32>
    %56 = vector.extract_strided_slice %54 {offsets = [0, 64], sizes = [2, 64], strides = [1, 1]} : vector<2x128xf32> to vector<2x64xf32>
    %57 = vector.extract_strided_slice %41 {offsets = [0, 128], sizes = [2, 64], strides = [1, 1]} : vector<2x192xf32> to vector<2x64xf32>
    %58 = vector.extract_strided_slice %46 {offsets = [0, 128], sizes = [2, 64], strides = [1, 1]} : vector<2x192xf32> to vector<2x64xf32>
    %59 = arith.mulf %55, %58 : vector<2x64xf32>
    %60 = arith.addf %57, %59 : vector<2x64xf32>
    %61 = math.tanh %60 : vector<2x64xf32>
    %cst_23 = arith.constant 1.000000e+00 : f32
    %62 = vector.broadcast %cst_23 : f32 to vector<2x64xf32>
    %63 = arith.subf %62, %56 : vector<2x64xf32>
    %64 = arith.mulf %63, %61 : vector<2x64xf32>
    %65 = arith.mulf %56, %32 : vector<2x64xf32>
    %66 = arith.addf %64, %65 : vector<2x64xf32>
    %67 = vector.extract_strided_slice %66 {offsets = [0, 0], sizes = [2, 32], strides = [1, 1]} : vector<2x64xf32> to vector<2x32xf32>
    %c2 = arith.constant 2 : index
    %c0_24 = arith.constant 0 : index
    %68 = vector.load %arg12[%c2, %c0_24] : memref<16x128xf32, #tpu.memory_space<vmem>>, vector<2x32xf32>
    tpu.vector_store %arg12[%c2, %c0_24], %67 {strides = array<i32>} : memref<16x128xf32, #tpu.memory_space<vmem>>, vector<2x32xf32>,
    %69 = vector.extract_strided_slice %66 {offsets = [0, 32], sizes = [2, 32], strides = [1, 1]} : vector<2x64xf32> to vector<2x32xf32>
    %c12 = arith.constant 12 : index
    %c32_25 = arith.constant 32 : index
    %70 = vector.load %arg12[%c12, %c32_25] : memref<16x128xf32, #tpu.memory_space<vmem>>, vector<2x32xf32>
    tpu.vector_store %arg12[%c12, %c32_25], %69 {strides = array<i32>} : memref<16x128xf32, #tpu.memory_space<vmem>>, vector<2x32xf32>,
    %71 = vector.extract_strided_slice %66 {offsets = [0, 0], sizes = [2, 32], strides = [1, 1]} : vector<2x64xf32> to vector<2x32xf32>
    %c12_26 = arith.constant 12 : index
    %c64_27 = arith.constant 64 : index
    %72 = vector.load %arg12[%c12_26, %c64_27] : memref<16x128xf32, #tpu.memory_space<vmem>>, vector<2x32xf32>
    tpu.vector_store %arg12[%c12_26, %c64_27], %71 {strides = array<i32>} : memref<16x128xf32, #tpu.memory_space<vmem>>, vector<2x32xf32>,
    %73 = vector.extract_strided_slice %66 {offsets = [0, 32], sizes = [2, 32], strides = [1, 1]} : vector<2x64xf32> to vector<2x32xf32>
    %c2_28 = arith.constant 2 : index
    %c96_29 = arith.constant 96 : index
    %74 = vector.load %arg12[%c2_28, %c96_29] : memref<16x128xf32, #tpu.memory_space<vmem>>, vector<2x32xf32>
    tpu.vector_store %arg12[%c2_28, %c96_29], %73 {strides = array<i32>} : memref<16x128xf32, #tpu.memory_space<vmem>>, vector<2x32xf32>,
    %75 = vector.extract_strided_slice %5 {offsets = [4, 0], sizes = [2, 192], strides = [1, 1]} : vector<16x192xf32> to vector<2x192xf32>
    %c0_30 = arith.constant 0 : index
    %c0_31 = arith.constant 0 : index
    %76 = vector.load %arg3[%c0_30, %c0_31] : memref<64x192xf32, #tpu.memory_space<vmem>>, vector<64x192xf32>
    %cst_32 = arith.constant dense<0.000000e+00> : vector<2x192xf32>
    %77 = tpu.matmul %66, %76, %cst_32 {dimension_numbers = #tpu.dot_dimension_numbers<[1], [0], [0], [1], [0, 0, 1, 1], [], []>} : vector<2x64xf32>, vector<64x192xf32>, vector<2x192xf32> -> vector<2x192xf32>
    %c0_33 = arith.constant 0 : index
    %c0_34 = arith.constant 0 : index
    %78 = vector.load %arg4[%c0_33, %c0_34] : memref<1x192xf32, #tpu.memory_space<vmem>>, vector<1x192xf32>
    %79 = vector.broadcast %78 : vector<1x192xf32> to vector<2x192xf32>
    %80 = arith.addf %77, %79 : vector<2x192xf32>
    %81 = vector.extract_strided_slice %75 {offsets = [0, 0], sizes = [2, 128], strides = [1, 1]} : vector<2x192xf32> to vector<2x128xf32>
    %82 = vector.extract_strided_slice %80 {offsets = [0, 0], sizes = [2, 128], strides = [1, 1]} : vector<2x192xf32> to vector<2x128xf32>
    %83 = arith.addf %81, %82 : vector<2x128xf32>
    %84 = arith.negf %83 : vector<2x128xf32>
    %85 = math.exp %84 : vector<2x128xf32>
    %cst_35 = arith.constant 1.000000e+00 : f32
    %86 = vector.broadcast %cst_35 : f32 to vector<2x128xf32>
    %87 = arith.addf %86, %85 : vector<2x128xf32>
    %88 = arith.divf %86, %87 : vector<2x128xf32>
    %89 = vector.extract_strided_slice %88 {offsets = [0, 0], sizes = [2, 64], strides = [1, 1]} : vector<2x128xf32> to vector<2x64xf32>
    %90 = vector.extract_strided_slice %88 {offsets = [0, 64], sizes = [2, 64], strides = [1, 1]} : vector<2x128xf32> to vector<2x64xf32>
    %91 = vector.extract_strided_slice %75 {offsets = [0, 128], sizes = [2, 64], strides = [1, 1]} : vector<2x192xf32> to vector<2x64xf32>
    %92 = vector.extract_strided_slice %80 {offsets = [0, 128], sizes = [2, 64], strides = [1, 1]} : vector<2x192xf32> to vector<2x64xf32>
    %93 = arith.mulf %89, %92 : vector<2x64xf32>
    %94 = arith.addf %91, %93 : vector<2x64xf32>
    %95 = math.tanh %94 : vector<2x64xf32>
    %cst_36 = arith.constant 1.000000e+00 : f32
    %96 = vector.broadcast %cst_36 : f32 to vector<2x64xf32>
    %97 = arith.subf %96, %90 : vector<2x64xf32>
    %98 = arith.mulf %97, %95 : vector<2x64xf32>
    %99 = arith.mulf %90, %66 : vector<2x64xf32>
    %100 = arith.addf %98, %99 : vector<2x64xf32>
    %101 = vector.extract_strided_slice %100 {offsets = [0, 0], sizes = [2, 32], strides = [1, 1]} : vector<2x64xf32> to vector<2x32xf32>
    %c4 = arith.constant 4 : index
    %c0_37 = arith.constant 0 : index
    %102 = vector.load %arg12[%c4, %c0_37] : memref<16x128xf32, #tpu.memory_space<vmem>>, vector<2x32xf32>
    tpu.vector_store %arg12[%c4, %c0_37], %101 {strides = array<i32>} : memref<16x128xf32, #tpu.memory_space<vmem>>, vector<2x32xf32>,
    %103 = vector.extract_strided_slice %100 {offsets = [0, 32], sizes = [2, 32], strides = [1, 1]} : vector<2x64xf32> to vector<2x32xf32>
    %c10 = arith.constant 10 : index
    %c32_38 = arith.constant 32 : index
    %104 = vector.load %arg12[%c10, %c32_38] : memref<16x128xf32, #tpu.memory_space<vmem>>, vector<2x32xf32>
    tpu.vector_store %arg12[%c10, %c32_38], %103 {strides = array<i32>} : memref<16x128xf32, #tpu.memory_space<vmem>>, vector<2x32xf32>,
    %105 = vector.extract_strided_slice %100 {offsets = [0, 0], sizes = [2, 32], strides = [1, 1]} : vector<2x64xf32> to vector<2x32xf32>
    %c10_39 = arith.constant 10 : index
    %c64_40 = arith.constant 64 : index
    %106 = vector.load %arg12[%c10_39, %c64_40] : memref<16x128xf32, #tpu.memory_space<vmem>>, vector<2x32xf32>
    tpu.vector_store %arg12[%c10_39, %c64_40], %105 {strides = array<i32>} : memref<16x128xf32, #tpu.memory_space<vmem>>, vector<2x32xf32>,
    %107 = vector.extract_strided_slice %100 {offsets = [0, 32], sizes = [2, 32], strides = [1, 1]} : vector<2x64xf32> to vector<2x32xf32>
    %c4_41 = arith.constant 4 : index
    %c96_42 = arith.constant 96 : index
    %108 = vector.load %arg12[%c4_41, %c96_42] : memref<16x128xf32, #tpu.memory_space<vmem>>, vector<2x32xf32>
    tpu.vector_store %arg12[%c4_41, %c96_42], %107 {strides = array<i32>} : memref<16x128xf32, #tpu.memory_space<vmem>>, vector<2x32xf32>,
    %109 = vector.extract_strided_slice %5 {offsets = [6, 0], sizes = [2, 192], strides = [1, 1]} : vector<16x192xf32> to vector<2x192xf32>
    %c0_43 = arith.constant 0 : index
    %c0_44 = arith.constant 0 : index
    %110 = vector.load %arg3[%c0_43, %c0_44] : memref<64x192xf32, #tpu.memory_space<vmem>>, vector<64x192xf32>
    %cst_45 = arith.constant dense<0.000000e+00> : vector<2x192xf32>
    %111 = tpu.matmul %100, %110, %cst_45 {dimension_numbers = #tpu.dot_dimension_numbers<[1], [0], [0], [1], [0, 0, 1, 1], [], []>} : vector<2x64xf32>, vector<64x192xf32>, vector<2x192xf32> -> vector<2x192xf32>
    %c0_46 = arith.constant 0 : index
    %c0_47 = arith.constant 0 : index
    %112 = vector.load %arg4[%c0_46, %c0_47] : memref<1x192xf32, #tpu.memory_space<vmem>>, vector<1x192xf32>
    %113 = vector.broadcast %112 : vector<1x192xf32> to vector<2x192xf32>
    %114 = arith.addf %111, %113 : vector<2x192xf32>
    %115 = vector.extract_strided_slice %109 {offsets = [0, 0], sizes = [2, 128], strides = [1, 1]} : vector<2x192xf32> to vector<2x128xf32>
    %116 = vector.extract_strided_slice %114 {offsets = [0, 0], sizes = [2, 128], strides = [1, 1]} : vector<2x192xf32> to vector<2x128xf32>
    %117 = arith.addf %115, %116 : vector<2x128xf32>
    %118 = arith.negf %117 : vector<2x128xf32>
    %119 = math.exp %118 : vector<2x128xf32>
    %cst_48 = arith.constant 1.000000e+00 : f32
    %120 = vector.broadcast %cst_48 : f32 to vector<2x128xf32>
    %121 = arith.addf %120, %119 : vector<2x128xf32>
    %122 = arith.divf %120, %121 : vector<2x128xf32>
    %123 = vector.extract_strided_slice %122 {offsets = [0, 0], sizes = [2, 64], strides = [1, 1]} : vector<2x128xf32> to vector<2x64xf32>
    %124 = vector.extract_strided_slice %122 {offsets = [0, 64], sizes = [2, 64], strides = [1, 1]} : vector<2x128xf32> to vector<2x64xf32>
    %125 = vector.extract_strided_slice %109 {offsets = [0, 128], sizes = [2, 64], strides = [1, 1]} : vector<2x192xf32> to vector<2x64xf32>
    %126 = vector.extract_strided_slice %114 {offsets = [0, 128], sizes = [2, 64], strides = [1, 1]} : vector<2x192xf32> to vector<2x64xf32>
    %127 = arith.mulf %123, %126 : vector<2x64xf32>
    %128 = arith.addf %125, %127 : vector<2x64xf32>
    %129 = math.tanh %128 : vector<2x64xf32>
    %cst_49 = arith.constant 1.000000e+00 : f32
    %130 = vector.broadcast %cst_49 : f32 to vector<2x64xf32>
    %131 = arith.subf %130, %124 : vector<2x64xf32>
    %132 = arith.mulf %131, %129 : vector<2x64xf32>
    %133 = arith.mulf %124, %100 : vector<2x64xf32>
    %134 = arith.addf %132, %133 : vector<2x64xf32>
    %135 = vector.extract_strided_slice %134 {offsets = [0, 0], sizes = [2, 32], strides = [1, 1]} : vector<2x64xf32> to vector<2x32xf32>
    %c6 = arith.constant 6 : index
    %c0_50 = arith.constant 0 : index
    %136 = vector.load %arg12[%c6, %c0_50] : memref<16x128xf32, #tpu.memory_space<vmem>>, vector<2x32xf32>
    tpu.vector_store %arg12[%c6, %c0_50], %135 {strides = array<i32>} : memref<16x128xf32, #tpu.memory_space<vmem>>, vector<2x32xf32>,
    %137 = vector.extract_strided_slice %134 {offsets = [0, 32], sizes = [2, 32], strides = [1, 1]} : vector<2x64xf32> to vector<2x32xf32>
    %c8 = arith.constant 8 : index
    %c32_51 = arith.constant 32 : index
    %138 = vector.load %arg12[%c8, %c32_51] : memref<16x128xf32, #tpu.memory_space<vmem>>, vector<2x32xf32>
    tpu.vector_store %arg12[%c8, %c32_51], %137 {strides = array<i32>} : memref<16x128xf32, #tpu.memory_space<vmem>>, vector<2x32xf32>,
    %139 = vector.extract_strided_slice %134 {offsets = [0, 0], sizes = [2, 32], strides = [1, 1]} : vector<2x64xf32> to vector<2x32xf32>
    %c8_52 = arith.constant 8 : index
    %c64_53 = arith.constant 64 : index
    %140 = vector.load %arg12[%c8_52, %c64_53] : memref<16x128xf32, #tpu.memory_space<vmem>>, vector<2x32xf32>
    tpu.vector_store %arg12[%c8_52, %c64_53], %139 {strides = array<i32>} : memref<16x128xf32, #tpu.memory_space<vmem>>, vector<2x32xf32>,
    %141 = vector.extract_strided_slice %134 {offsets = [0, 32], sizes = [2, 32], strides = [1, 1]} : vector<2x64xf32> to vector<2x32xf32>
    %c6_54 = arith.constant 6 : index
    %c96_55 = arith.constant 96 : index
    %142 = vector.load %arg12[%c6_54, %c96_55] : memref<16x128xf32, #tpu.memory_space<vmem>>, vector<2x32xf32>
    tpu.vector_store %arg12[%c6_54, %c96_55], %141 {strides = array<i32>} : memref<16x128xf32, #tpu.memory_space<vmem>>, vector<2x32xf32>,
    %143 = vector.extract_strided_slice %5 {offsets = [8, 0], sizes = [2, 192], strides = [1, 1]} : vector<16x192xf32> to vector<2x192xf32>
    %c0_56 = arith.constant 0 : index
    %c0_57 = arith.constant 0 : index
    %144 = vector.load %arg3[%c0_56, %c0_57] : memref<64x192xf32, #tpu.memory_space<vmem>>, vector<64x192xf32>
    %cst_58 = arith.constant dense<0.000000e+00> : vector<2x192xf32>
    %145 = tpu.matmul %134, %144, %cst_58 {dimension_numbers = #tpu.dot_dimension_numbers<[1], [0], [0], [1], [0, 0, 1, 1], [], []>} : vector<2x64xf32>, vector<64x192xf32>, vector<2x192xf32> -> vector<2x192xf32>
    %c0_59 = arith.constant 0 : index
    %c0_60 = arith.constant 0 : index
    %146 = vector.load %arg4[%c0_59, %c0_60] : memref<1x192xf32, #tpu.memory_space<vmem>>, vector<1x192xf32>
    %147 = vector.broadcast %146 : vector<1x192xf32> to vector<2x192xf32>
    %148 = arith.addf %145, %147 : vector<2x192xf32>
    %149 = vector.extract_strided_slice %143 {offsets = [0, 0], sizes = [2, 128], strides = [1, 1]} : vector<2x192xf32> to vector<2x128xf32>
    %150 = vector.extract_strided_slice %148 {offsets = [0, 0], sizes = [2, 128], strides = [1, 1]} : vector<2x192xf32> to vector<2x128xf32>
    %151 = arith.addf %149, %150 : vector<2x128xf32>
    %152 = arith.negf %151 : vector<2x128xf32>
    %153 = math.exp %152 : vector<2x128xf32>
    %cst_61 = arith.constant 1.000000e+00 : f32
    %154 = vector.broadcast %cst_61 : f32 to vector<2x128xf32>
    %155 = arith.addf %154, %153 : vector<2x128xf32>
    %156 = arith.divf %154, %155 : vector<2x128xf32>
    %157 = vector.extract_strided_slice %156 {offsets = [0, 0], sizes = [2, 64], strides = [1, 1]} : vector<2x128xf32> to vector<2x64xf32>
    %158 = vector.extract_strided_slice %156 {offsets = [0, 64], sizes = [2, 64], strides = [1, 1]} : vector<2x128xf32> to vector<2x64xf32>
    %159 = vector.extract_strided_slice %143 {offsets = [0, 128], sizes = [2, 64], strides = [1, 1]} : vector<2x192xf32> to vector<2x64xf32>
    %160 = vector.extract_strided_slice %148 {offsets = [0, 128], sizes = [2, 64], strides = [1, 1]} : vector<2x192xf32> to vector<2x64xf32>
    %161 = arith.mulf %157, %160 : vector<2x64xf32>
    %162 = arith.addf %159, %161 : vector<2x64xf32>
    %163 = math.tanh %162 : vector<2x64xf32>
    %cst_62 = arith.constant 1.000000e+00 : f32
    %164 = vector.broadcast %cst_62 : f32 to vector<2x64xf32>
    %165 = arith.subf %164, %158 : vector<2x64xf32>
    %166 = arith.mulf %165, %163 : vector<2x64xf32>
    %167 = arith.mulf %158, %134 : vector<2x64xf32>
    %168 = arith.addf %166, %167 : vector<2x64xf32>
    %169 = vector.extract_strided_slice %168 {offsets = [0, 0], sizes = [2, 32], strides = [1, 1]} : vector<2x64xf32> to vector<2x32xf32>
    %c8_63 = arith.constant 8 : index
    %c0_64 = arith.constant 0 : index
    %170 = vector.load %arg12[%c8_63, %c0_64] : memref<16x128xf32, #tpu.memory_space<vmem>>, vector<2x32xf32>
    tpu.vector_store %arg12[%c8_63, %c0_64], %169 {strides = array<i32>} : memref<16x128xf32, #tpu.memory_space<vmem>>, vector<2x32xf32>,
    %171 = vector.extract_strided_slice %168 {offsets = [0, 32], sizes = [2, 32], strides = [1, 1]} : vector<2x64xf32> to vector<2x32xf32>
    %c6_65 = arith.constant 6 : index
    %c32_66 = arith.constant 32 : index
    %172 = vector.load %arg12[%c6_65, %c32_66] : memref<16x128xf32, #tpu.memory_space<vmem>>, vector<2x32xf32>
    tpu.vector_store %arg12[%c6_65, %c32_66], %171 {strides = array<i32>} : memref<16x128xf32, #tpu.memory_space<vmem>>, vector<2x32xf32>,
    %173 = vector.extract_strided_slice %168 {offsets = [0, 0], sizes = [2, 32], strides = [1, 1]} : vector<2x64xf32> to vector<2x32xf32>
    %c6_67 = arith.constant 6 : index
    %c64_68 = arith.constant 64 : index
    %174 = vector.load %arg12[%c6_67, %c64_68] : memref<16x128xf32, #tpu.memory_space<vmem>>, vector<2x32xf32>
    tpu.vector_store %arg12[%c6_67, %c64_68], %173 {strides = array<i32>} : memref<16x128xf32, #tpu.memory_space<vmem>>, vector<2x32xf32>,
    %175 = vector.extract_strided_slice %168 {offsets = [0, 32], sizes = [2, 32], strides = [1, 1]} : vector<2x64xf32> to vector<2x32xf32>
    %c8_69 = arith.constant 8 : index
    %c96_70 = arith.constant 96 : index
    %176 = vector.load %arg12[%c8_69, %c96_70] : memref<16x128xf32, #tpu.memory_space<vmem>>, vector<2x32xf32>
    tpu.vector_store %arg12[%c8_69, %c96_70], %175 {strides = array<i32>} : memref<16x128xf32, #tpu.memory_space<vmem>>, vector<2x32xf32>,
    %177 = vector.extract_strided_slice %5 {offsets = [10, 0], sizes = [2, 192], strides = [1, 1]} : vector<16x192xf32> to vector<2x192xf32>
    %c0_71 = arith.constant 0 : index
    %c0_72 = arith.constant 0 : index
    %178 = vector.load %arg3[%c0_71, %c0_72] : memref<64x192xf32, #tpu.memory_space<vmem>>, vector<64x192xf32>
    %cst_73 = arith.constant dense<0.000000e+00> : vector<2x192xf32>
    %179 = tpu.matmul %168, %178, %cst_73 {dimension_numbers = #tpu.dot_dimension_numbers<[1], [0], [0], [1], [0, 0, 1, 1], [], []>} : vector<2x64xf32>, vector<64x192xf32>, vector<2x192xf32> -> vector<2x192xf32>
    %c0_74 = arith.constant 0 : index
    %c0_75 = arith.constant 0 : index
    %180 = vector.load %arg4[%c0_74, %c0_75] : memref<1x192xf32, #tpu.memory_space<vmem>>, vector<1x192xf32>
    %181 = vector.broadcast %180 : vector<1x192xf32> to vector<2x192xf32>
    %182 = arith.addf %179, %181 : vector<2x192xf32>
    %183 = vector.extract_strided_slice %177 {offsets = [0, 0], sizes = [2, 128], strides = [1, 1]} : vector<2x192xf32> to vector<2x128xf32>
    %184 = vector.extract_strided_slice %182 {offsets = [0, 0], sizes = [2, 128], strides = [1, 1]} : vector<2x192xf32> to vector<2x128xf32>
    %185 = arith.addf %183, %184 : vector<2x128xf32>
    %186 = arith.negf %185 : vector<2x128xf32>
    %187 = math.exp %186 : vector<2x128xf32>
    %cst_76 = arith.constant 1.000000e+00 : f32
    %188 = vector.broadcast %cst_76 : f32 to vector<2x128xf32>
    %189 = arith.addf %188, %187 : vector<2x128xf32>
    %190 = arith.divf %188, %189 : vector<2x128xf32>
    %191 = vector.extract_strided_slice %190 {offsets = [0, 0], sizes = [2, 64], strides = [1, 1]} : vector<2x128xf32> to vector<2x64xf32>
    %192 = vector.extract_strided_slice %190 {offsets = [0, 64], sizes = [2, 64], strides = [1, 1]} : vector<2x128xf32> to vector<2x64xf32>
    %193 = vector.extract_strided_slice %177 {offsets = [0, 128], sizes = [2, 64], strides = [1, 1]} : vector<2x192xf32> to vector<2x64xf32>
    %194 = vector.extract_strided_slice %182 {offsets = [0, 128], sizes = [2, 64], strides = [1, 1]} : vector<2x192xf32> to vector<2x64xf32>
    %195 = arith.mulf %191, %194 : vector<2x64xf32>
    %196 = arith.addf %193, %195 : vector<2x64xf32>
    %197 = math.tanh %196 : vector<2x64xf32>
    %cst_77 = arith.constant 1.000000e+00 : f32
    %198 = vector.broadcast %cst_77 : f32 to vector<2x64xf32>
    %199 = arith.subf %198, %192 : vector<2x64xf32>
    %200 = arith.mulf %199, %197 : vector<2x64xf32>
    %201 = arith.mulf %192, %168 : vector<2x64xf32>
    %202 = arith.addf %200, %201 : vector<2x64xf32>
    %203 = vector.extract_strided_slice %202 {offsets = [0, 0], sizes = [2, 32], strides = [1, 1]} : vector<2x64xf32> to vector<2x32xf32>
    %c10_78 = arith.constant 10 : index
    %c0_79 = arith.constant 0 : index
    %204 = vector.load %arg12[%c10_78, %c0_79] : memref<16x128xf32, #tpu.memory_space<vmem>>, vector<2x32xf32>
    tpu.vector_store %arg12[%c10_78, %c0_79], %203 {strides = array<i32>} : memref<16x128xf32, #tpu.memory_space<vmem>>, vector<2x32xf32>,
    %205 = vector.extract_strided_slice %202 {offsets = [0, 32], sizes = [2, 32], strides = [1, 1]} : vector<2x64xf32> to vector<2x32xf32>
    %c4_80 = arith.constant 4 : index
    %c32_81 = arith.constant 32 : index
    %206 = vector.load %arg12[%c4_80, %c32_81] : memref<16x128xf32, #tpu.memory_space<vmem>>, vector<2x32xf32>
    tpu.vector_store %arg12[%c4_80, %c32_81], %205 {strides = array<i32>} : memref<16x128xf32, #tpu.memory_space<vmem>>, vector<2x32xf32>,
    %207 = vector.extract_strided_slice %202 {offsets = [0, 0], sizes = [2, 32], strides = [1, 1]} : vector<2x64xf32> to vector<2x32xf32>
    %c4_82 = arith.constant 4 : index
    %c64_83 = arith.constant 64 : index
    %208 = vector.load %arg12[%c4_82, %c64_83] : memref<16x128xf32, #tpu.memory_space<vmem>>, vector<2x32xf32>
    tpu.vector_store %arg12[%c4_82, %c64_83], %207 {strides = array<i32>} : memref<16x128xf32, #tpu.memory_space<vmem>>, vector<2x32xf32>,
    %209 = vector.extract_strided_slice %202 {offsets = [0, 32], sizes = [2, 32], strides = [1, 1]} : vector<2x64xf32> to vector<2x32xf32>
    %c10_84 = arith.constant 10 : index
    %c96_85 = arith.constant 96 : index
    %210 = vector.load %arg12[%c10_84, %c96_85] : memref<16x128xf32, #tpu.memory_space<vmem>>, vector<2x32xf32>
    tpu.vector_store %arg12[%c10_84, %c96_85], %209 {strides = array<i32>} : memref<16x128xf32, #tpu.memory_space<vmem>>, vector<2x32xf32>,
    %211 = vector.extract_strided_slice %5 {offsets = [12, 0], sizes = [2, 192], strides = [1, 1]} : vector<16x192xf32> to vector<2x192xf32>
    %c0_86 = arith.constant 0 : index
    %c0_87 = arith.constant 0 : index
    %212 = vector.load %arg3[%c0_86, %c0_87] : memref<64x192xf32, #tpu.memory_space<vmem>>, vector<64x192xf32>
    %cst_88 = arith.constant dense<0.000000e+00> : vector<2x192xf32>
    %213 = tpu.matmul %202, %212, %cst_88 {dimension_numbers = #tpu.dot_dimension_numbers<[1], [0], [0], [1], [0, 0, 1, 1], [], []>} : vector<2x64xf32>, vector<64x192xf32>, vector<2x192xf32> -> vector<2x192xf32>
    %c0_89 = arith.constant 0 : index
    %c0_90 = arith.constant 0 : index
    %214 = vector.load %arg4[%c0_89, %c0_90] : memref<1x192xf32, #tpu.memory_space<vmem>>, vector<1x192xf32>
    %215 = vector.broadcast %214 : vector<1x192xf32> to vector<2x192xf32>
    %216 = arith.addf %213, %215 : vector<2x192xf32>
    %217 = vector.extract_strided_slice %211 {offsets = [0, 0], sizes = [2, 128], strides = [1, 1]} : vector<2x192xf32> to vector<2x128xf32>
    %218 = vector.extract_strided_slice %216 {offsets = [0, 0], sizes = [2, 128], strides = [1, 1]} : vector<2x192xf32> to vector<2x128xf32>
    %219 = arith.addf %217, %218 : vector<2x128xf32>
    %220 = arith.negf %219 : vector<2x128xf32>
    %221 = math.exp %220 : vector<2x128xf32>
    %cst_91 = arith.constant 1.000000e+00 : f32
    %222 = vector.broadcast %cst_91 : f32 to vector<2x128xf32>
    %223 = arith.addf %222, %221 : vector<2x128xf32>
    %224 = arith.divf %222, %223 : vector<2x128xf32>
    %225 = vector.extract_strided_slice %224 {offsets = [0, 0], sizes = [2, 64], strides = [1, 1]} : vector<2x128xf32> to vector<2x64xf32>
    %226 = vector.extract_strided_slice %224 {offsets = [0, 64], sizes = [2, 64], strides = [1, 1]} : vector<2x128xf32> to vector<2x64xf32>
    %227 = vector.extract_strided_slice %211 {offsets = [0, 128], sizes = [2, 64], strides = [1, 1]} : vector<2x192xf32> to vector<2x64xf32>
    %228 = vector.extract_strided_slice %216 {offsets = [0, 128], sizes = [2, 64], strides = [1, 1]} : vector<2x192xf32> to vector<2x64xf32>
    %229 = arith.mulf %225, %228 : vector<2x64xf32>
    %230 = arith.addf %227, %229 : vector<2x64xf32>
    %231 = math.tanh %230 : vector<2x64xf32>
    %cst_92 = arith.constant 1.000000e+00 : f32
    %232 = vector.broadcast %cst_92 : f32 to vector<2x64xf32>
    %233 = arith.subf %232, %226 : vector<2x64xf32>
    %234 = arith.mulf %233, %231 : vector<2x64xf32>
    %235 = arith.mulf %226, %202 : vector<2x64xf32>
    %236 = arith.addf %234, %235 : vector<2x64xf32>
    %237 = vector.extract_strided_slice %236 {offsets = [0, 0], sizes = [2, 32], strides = [1, 1]} : vector<2x64xf32> to vector<2x32xf32>
    %c12_93 = arith.constant 12 : index
    %c0_94 = arith.constant 0 : index
    %238 = vector.load %arg12[%c12_93, %c0_94] : memref<16x128xf32, #tpu.memory_space<vmem>>, vector<2x32xf32>
    tpu.vector_store %arg12[%c12_93, %c0_94], %237 {strides = array<i32>} : memref<16x128xf32, #tpu.memory_space<vmem>>, vector<2x32xf32>,
    %239 = vector.extract_strided_slice %236 {offsets = [0, 32], sizes = [2, 32], strides = [1, 1]} : vector<2x64xf32> to vector<2x32xf32>
    %c2_95 = arith.constant 2 : index
    %c32_96 = arith.constant 32 : index
    %240 = vector.load %arg12[%c2_95, %c32_96] : memref<16x128xf32, #tpu.memory_space<vmem>>, vector<2x32xf32>
    tpu.vector_store %arg12[%c2_95, %c32_96], %239 {strides = array<i32>} : memref<16x128xf32, #tpu.memory_space<vmem>>, vector<2x32xf32>,
    %241 = vector.extract_strided_slice %236 {offsets = [0, 0], sizes = [2, 32], strides = [1, 1]} : vector<2x64xf32> to vector<2x32xf32>
    %c2_97 = arith.constant 2 : index
    %c64_98 = arith.constant 64 : index
    %242 = vector.load %arg12[%c2_97, %c64_98] : memref<16x128xf32, #tpu.memory_space<vmem>>, vector<2x32xf32>
    tpu.vector_store %arg12[%c2_97, %c64_98], %241 {strides = array<i32>} : memref<16x128xf32, #tpu.memory_space<vmem>>, vector<2x32xf32>,
    %243 = vector.extract_strided_slice %236 {offsets = [0, 32], sizes = [2, 32], strides = [1, 1]} : vector<2x64xf32> to vector<2x32xf32>
    %c12_99 = arith.constant 12 : index
    %c96_100 = arith.constant 96 : index
    %244 = vector.load %arg12[%c12_99, %c96_100] : memref<16x128xf32, #tpu.memory_space<vmem>>, vector<2x32xf32>
    tpu.vector_store %arg12[%c12_99, %c96_100], %243 {strides = array<i32>} : memref<16x128xf32, #tpu.memory_space<vmem>>, vector<2x32xf32>,
    %245 = vector.extract_strided_slice %5 {offsets = [14, 0], sizes = [2, 192], strides = [1, 1]} : vector<16x192xf32> to vector<2x192xf32>
    %c0_101 = arith.constant 0 : index
    %c0_102 = arith.constant 0 : index
    %246 = vector.load %arg3[%c0_101, %c0_102] : memref<64x192xf32, #tpu.memory_space<vmem>>, vector<64x192xf32>
    %cst_103 = arith.constant dense<0.000000e+00> : vector<2x192xf32>
    %247 = tpu.matmul %236, %246, %cst_103 {dimension_numbers = #tpu.dot_dimension_numbers<[1], [0], [0], [1], [0, 0, 1, 1], [], []>} : vector<2x64xf32>, vector<64x192xf32>, vector<2x192xf32> -> vector<2x192xf32>
    %c0_104 = arith.constant 0 : index
    %c0_105 = arith.constant 0 : index
    %248 = vector.load %arg4[%c0_104, %c0_105] : memref<1x192xf32, #tpu.memory_space<vmem>>, vector<1x192xf32>
    %249 = vector.broadcast %248 : vector<1x192xf32> to vector<2x192xf32>
    %250 = arith.addf %247, %249 : vector<2x192xf32>
    %251 = vector.extract_strided_slice %245 {offsets = [0, 0], sizes = [2, 128], strides = [1, 1]} : vector<2x192xf32> to vector<2x128xf32>
    %252 = vector.extract_strided_slice %250 {offsets = [0, 0], sizes = [2, 128], strides = [1, 1]} : vector<2x192xf32> to vector<2x128xf32>
    %253 = arith.addf %251, %252 : vector<2x128xf32>
    %254 = arith.negf %253 : vector<2x128xf32>
    %255 = math.exp %254 : vector<2x128xf32>
    %cst_106 = arith.constant 1.000000e+00 : f32
    %256 = vector.broadcast %cst_106 : f32 to vector<2x128xf32>
    %257 = arith.addf %256, %255 : vector<2x128xf32>
    %258 = arith.divf %256, %257 : vector<2x128xf32>
    %259 = vector.extract_strided_slice %258 {offsets = [0, 0], sizes = [2, 64], strides = [1, 1]} : vector<2x128xf32> to vector<2x64xf32>
    %260 = vector.extract_strided_slice %258 {offsets = [0, 64], sizes = [2, 64], strides = [1, 1]} : vector<2x128xf32> to vector<2x64xf32>
    %261 = vector.extract_strided_slice %245 {offsets = [0, 128], sizes = [2, 64], strides = [1, 1]} : vector<2x192xf32> to vector<2x64xf32>
    %262 = vector.extract_strided_slice %250 {offsets = [0, 128], sizes = [2, 64], strides = [1, 1]} : vector<2x192xf32> to vector<2x64xf32>
    %263 = arith.mulf %259, %262 : vector<2x64xf32>
    %264 = arith.addf %261, %263 : vector<2x64xf32>
    %265 = math.tanh %264 : vector<2x64xf32>
    %cst_107 = arith.constant 1.000000e+00 : f32
    %266 = vector.broadcast %cst_107 : f32 to vector<2x64xf32>
    %267 = arith.subf %266, %260 : vector<2x64xf32>
    %268 = arith.mulf %267, %265 : vector<2x64xf32>
    %269 = arith.mulf %260, %236 : vector<2x64xf32>
    %270 = arith.addf %268, %269 : vector<2x64xf32>
    %271 = vector.extract_strided_slice %270 {offsets = [0, 0], sizes = [2, 32], strides = [1, 1]} : vector<2x64xf32> to vector<2x32xf32>
    %c14_108 = arith.constant 14 : index
    %c0_109 = arith.constant 0 : index
    %272 = vector.load %arg12[%c14_108, %c0_109] : memref<16x128xf32, #tpu.memory_space<vmem>>, vector<2x32xf32>
    tpu.vector_store %arg12[%c14_108, %c0_109], %271 {strides = array<i32>} : memref<16x128xf32, #tpu.memory_space<vmem>>, vector<2x32xf32>,
    %273 = vector.extract_strided_slice %270 {offsets = [0, 32], sizes = [2, 32], strides = [1, 1]} : vector<2x64xf32> to vector<2x32xf32>
    %c0_110 = arith.constant 0 : index
    %c32_111 = arith.constant 32 : index
    %274 = vector.load %arg12[%c0_110, %c32_111] : memref<16x128xf32, #tpu.memory_space<vmem>>, vector<2x32xf32>
    tpu.vector_store %arg12[%c0_110, %c32_111], %273 {strides = array<i32>} : memref<16x128xf32, #tpu.memory_space<vmem>>, vector<2x32xf32>,
    %275 = vector.extract_strided_slice %270 {offsets = [0, 0], sizes = [2, 32], strides = [1, 1]} : vector<2x64xf32> to vector<2x32xf32>
    %c0_112 = arith.constant 0 : index
    %c64_113 = arith.constant 64 : index
    %276 = vector.load %arg12[%c0_112, %c64_113] : memref<16x128xf32, #tpu.memory_space<vmem>>, vector<2x32xf32>
    tpu.vector_store %arg12[%c0_112, %c64_113], %275 {strides = array<i32>} : memref<16x128xf32, #tpu.memory_space<vmem>>, vector<2x32xf32>,
    %277 = vector.extract_strided_slice %270 {offsets = [0, 32], sizes = [2, 32], strides = [1, 1]} : vector<2x64xf32> to vector<2x32xf32>
    %c14_114 = arith.constant 14 : index
    %c96_115 = arith.constant 96 : index
    %278 = vector.load %arg12[%c14_114, %c96_115] : memref<16x128xf32, #tpu.memory_space<vmem>>, vector<2x32xf32>
    tpu.vector_store %arg12[%c14_114, %c96_115], %277 {strides = array<i32>} : memref<16x128xf32, #tpu.memory_space<vmem>>, vector<2x32xf32>,
    %c0_116 = arith.constant 0 : index
    %c0_117 = arith.constant 0 : index
    %279 = vector.load %arg12[%c0_116, %c0_117] : memref<16x128xf32, #tpu.memory_space<vmem>>, vector<16x128xf32>
    %c0_118 = arith.constant 0 : index
    %c0_119 = arith.constant 0 : index
    %280 = vector.load %arg5[%c0_118, %c0_119] : memref<128x192xf32, #tpu.memory_space<vmem>>, vector<128x192xf32>
    %cst_120 = arith.constant dense<0.000000e+00> : vector<16x192xf32>
    %281 = tpu.matmul %279, %280, %cst_120 {dimension_numbers = #tpu.dot_dimension_numbers<[1], [0], [0], [1], [0, 0, 1, 1], [], []>} : vector<16x128xf32>, vector<128x192xf32>, vector<16x192xf32> -> vector<16x192xf32>
    %c0_121 = arith.constant 0 : index
    %c0_122 = arith.constant 0 : index
    %282 = vector.load %arg6[%c0_121, %c0_122] : memref<1x192xf32, #tpu.memory_space<vmem>>, vector<1x192xf32>
    %283 = vector.broadcast %282 : vector<1x192xf32> to vector<16x192xf32>
    %284 = arith.addf %281, %283 : vector<16x192xf32>
    %cst_123 = arith.constant 0.000000e+00 : f32
    %285 = vector.broadcast %cst_123 : f32 to vector<2x64xf32>
    %286 = vector.extract_strided_slice %284 {offsets = [0, 0], sizes = [2, 192], strides = [1, 1]} : vector<16x192xf32> to vector<2x192xf32>
    %c0_124 = arith.constant 0 : index
    %c0_125 = arith.constant 0 : index
    %287 = vector.load %arg7[%c0_124, %c0_125] : memref<64x192xf32, #tpu.memory_space<vmem>>, vector<64x192xf32>
    %cst_126 = arith.constant dense<0.000000e+00> : vector<2x192xf32>
    %288 = tpu.matmul %285, %287, %cst_126 {dimension_numbers = #tpu.dot_dimension_numbers<[1], [0], [0], [1], [0, 0, 1, 1], [], []>} : vector<2x64xf32>, vector<64x192xf32>, vector<2x192xf32> -> vector<2x192xf32>
    %c0_127 = arith.constant 0 : index
    %c0_128 = arith.constant 0 : index
    %289 = vector.load %arg8[%c0_127, %c0_128] : memref<1x192xf32, #tpu.memory_space<vmem>>, vector<1x192xf32>
    %290 = vector.broadcast %289 : vector<1x192xf32> to vector<2x192xf32>
    %291 = arith.addf %288, %290 : vector<2x192xf32>
    %292 = vector.extract_strided_slice %286 {offsets = [0, 0], sizes = [2, 128], strides = [1, 1]} : vector<2x192xf32> to vector<2x128xf32>
    %293 = vector.extract_strided_slice %291 {offsets = [0, 0], sizes = [2, 128], strides = [1, 1]} : vector<2x192xf32> to vector<2x128xf32>
    %294 = arith.addf %292, %293 : vector<2x128xf32>
    %295 = arith.negf %294 : vector<2x128xf32>
    %296 = math.exp %295 : vector<2x128xf32>
    %cst_129 = arith.constant 1.000000e+00 : f32
    %297 = vector.broadcast %cst_129 : f32 to vector<2x128xf32>
    %298 = arith.addf %297, %296 : vector<2x128xf32>
    %299 = arith.divf %297, %298 : vector<2x128xf32>
    %300 = vector.extract_strided_slice %299 {offsets = [0, 0], sizes = [2, 64], strides = [1, 1]} : vector<2x128xf32> to vector<2x64xf32>
    %301 = vector.extract_strided_slice %299 {offsets = [0, 64], sizes = [2, 64], strides = [1, 1]} : vector<2x128xf32> to vector<2x64xf32>
    %302 = vector.extract_strided_slice %286 {offsets = [0, 128], sizes = [2, 64], strides = [1, 1]} : vector<2x192xf32> to vector<2x64xf32>
    %303 = vector.extract_strided_slice %291 {offsets = [0, 128], sizes = [2, 64], strides = [1, 1]} : vector<2x192xf32> to vector<2x64xf32>
    %304 = arith.mulf %300, %303 : vector<2x64xf32>
    %305 = arith.addf %302, %304 : vector<2x64xf32>
    %306 = math.tanh %305 : vector<2x64xf32>
    %cst_130 = arith.constant 1.000000e+00 : f32
    %307 = vector.broadcast %cst_130 : f32 to vector<2x64xf32>
    %308 = arith.subf %307, %301 : vector<2x64xf32>
    %309 = arith.mulf %308, %306 : vector<2x64xf32>
    %310 = arith.mulf %301, %285 : vector<2x64xf32>
    %311 = arith.addf %309, %310 : vector<2x64xf32>
    %312 = vector.extract_strided_slice %311 {offsets = [0, 0], sizes = [1, 32], strides = [1, 1]} : vector<2x64xf32> to vector<1x32xf32>
    %c0_131 = arith.constant 0 : index
    %c0_132 = arith.constant 0 : index
    %313 = vector.load %arg12[%c0_131, %c0_132] : memref<16x128xf32, #tpu.memory_space<vmem>>, vector<1x32xf32>
    tpu.vector_store %arg12[%c0_131, %c0_132], %312 {strides = array<i32>} : memref<16x128xf32, #tpu.memory_space<vmem>>, vector<1x32xf32>,
    %314 = vector.extract_strided_slice %311 {offsets = [0, 32], sizes = [1, 32], strides = [1, 1]} : vector<2x64xf32> to vector<1x32xf32>
    %c7 = arith.constant 7 : index
    %c32_133 = arith.constant 32 : index
    %315 = vector.load %arg12[%c7, %c32_133] : memref<16x128xf32, #tpu.memory_space<vmem>>, vector<1x32xf32>
    tpu.vector_store %arg12[%c7, %c32_133], %314 {strides = array<i32>} : memref<16x128xf32, #tpu.memory_space<vmem>>, vector<1x32xf32>,
    %316 = vector.extract_strided_slice %311 {offsets = [1, 0], sizes = [1, 32], strides = [1, 1]} : vector<2x64xf32> to vector<1x32xf32>
    %c8_134 = arith.constant 8 : index
    %c0_135 = arith.constant 0 : index
    %317 = vector.load %arg12[%c8_134, %c0_135] : memref<16x128xf32, #tpu.memory_space<vmem>>, vector<1x32xf32>
    tpu.vector_store %arg12[%c8_134, %c0_135], %316 {strides = array<i32>} : memref<16x128xf32, #tpu.memory_space<vmem>>, vector<1x32xf32>,
    %318 = vector.extract_strided_slice %311 {offsets = [1, 32], sizes = [1, 32], strides = [1, 1]} : vector<2x64xf32> to vector<1x32xf32>
    %c15 = arith.constant 15 : index
    %c32_136 = arith.constant 32 : index
    %319 = vector.load %arg12[%c15, %c32_136] : memref<16x128xf32, #tpu.memory_space<vmem>>, vector<1x32xf32>
    tpu.vector_store %arg12[%c15, %c32_136], %318 {strides = array<i32>} : memref<16x128xf32, #tpu.memory_space<vmem>>, vector<1x32xf32>,
    %320 = vector.extract_strided_slice %284 {offsets = [2, 0], sizes = [2, 192], strides = [1, 1]} : vector<16x192xf32> to vector<2x192xf32>
    %c0_137 = arith.constant 0 : index
    %c0_138 = arith.constant 0 : index
    %321 = vector.load %arg7[%c0_137, %c0_138] : memref<64x192xf32, #tpu.memory_space<vmem>>, vector<64x192xf32>
    %cst_139 = arith.constant dense<0.000000e+00> : vector<2x192xf32>
    %322 = tpu.matmul %311, %321, %cst_139 {dimension_numbers = #tpu.dot_dimension_numbers<[1], [0], [0], [1], [0, 0, 1, 1], [], []>} : vector<2x64xf32>, vector<64x192xf32>, vector<2x192xf32> -> vector<2x192xf32>
    %c0_140 = arith.constant 0 : index
    %c0_141 = arith.constant 0 : index
    %323 = vector.load %arg8[%c0_140, %c0_141] : memref<1x192xf32, #tpu.memory_space<vmem>>, vector<1x192xf32>
    %324 = vector.broadcast %323 : vector<1x192xf32> to vector<2x192xf32>
    %325 = arith.addf %322, %324 : vector<2x192xf32>
    %326 = vector.extract_strided_slice %320 {offsets = [0, 0], sizes = [2, 128], strides = [1, 1]} : vector<2x192xf32> to vector<2x128xf32>
    %327 = vector.extract_strided_slice %325 {offsets = [0, 0], sizes = [2, 128], strides = [1, 1]} : vector<2x192xf32> to vector<2x128xf32>
    %328 = arith.addf %326, %327 : vector<2x128xf32>
    %329 = arith.negf %328 : vector<2x128xf32>
    %330 = math.exp %329 : vector<2x128xf32>
    %cst_142 = arith.constant 1.000000e+00 : f32
    %331 = vector.broadcast %cst_142 : f32 to vector<2x128xf32>
    %332 = arith.addf %331, %330 : vector<2x128xf32>
    %333 = arith.divf %331, %332 : vector<2x128xf32>
    %334 = vector.extract_strided_slice %333 {offsets = [0, 0], sizes = [2, 64], strides = [1, 1]} : vector<2x128xf32> to vector<2x64xf32>
    %335 = vector.extract_strided_slice %333 {offsets = [0, 64], sizes = [2, 64], strides = [1, 1]} : vector<2x128xf32> to vector<2x64xf32>
    %336 = vector.extract_strided_slice %320 {offsets = [0, 128], sizes = [2, 64], strides = [1, 1]} : vector<2x192xf32> to vector<2x64xf32>
    %337 = vector.extract_strided_slice %325 {offsets = [0, 128], sizes = [2, 64], strides = [1, 1]} : vector<2x192xf32> to vector<2x64xf32>
    %338 = arith.mulf %334, %337 : vector<2x64xf32>
    %339 = arith.addf %336, %338 : vector<2x64xf32>
    %340 = math.tanh %339 : vector<2x64xf32>
    %cst_143 = arith.constant 1.000000e+00 : f32
    %341 = vector.broadcast %cst_143 : f32 to vector<2x64xf32>
    %342 = arith.subf %341, %335 : vector<2x64xf32>
    %343 = arith.mulf %342, %340 : vector<2x64xf32>
    %344 = arith.mulf %335, %311 : vector<2x64xf32>
    %345 = arith.addf %343, %344 : vector<2x64xf32>
    %346 = vector.extract_strided_slice %345 {offsets = [0, 0], sizes = [1, 32], strides = [1, 1]} : vector<2x64xf32> to vector<1x32xf32>
    %c1 = arith.constant 1 : index
    %c0_144 = arith.constant 0 : index
    %347 = vector.load %arg12[%c1, %c0_144] : memref<16x128xf32, #tpu.memory_space<vmem>>, vector<1x32xf32>
    tpu.vector_store %arg12[%c1, %c0_144], %346 {strides = array<i32>} : memref<16x128xf32, #tpu.memory_space<vmem>>, vector<1x32xf32>,
    %348 = vector.extract_strided_slice %345 {offsets = [0, 32], sizes = [1, 32], strides = [1, 1]} : vector<2x64xf32> to vector<1x32xf32>
    %c6_145 = arith.constant 6 : index
    %c32_146 = arith.constant 32 : index
    %349 = vector.load %arg12[%c6_145, %c32_146] : memref<16x128xf32, #tpu.memory_space<vmem>>, vector<1x32xf32>
    tpu.vector_store %arg12[%c6_145, %c32_146], %348 {strides = array<i32>} : memref<16x128xf32, #tpu.memory_space<vmem>>, vector<1x32xf32>,
    %350 = vector.extract_strided_slice %345 {offsets = [1, 0], sizes = [1, 32], strides = [1, 1]} : vector<2x64xf32> to vector<1x32xf32>
    %c9 = arith.constant 9 : index
    %c0_147 = arith.constant 0 : index
    %351 = vector.load %arg12[%c9, %c0_147] : memref<16x128xf32, #tpu.memory_space<vmem>>, vector<1x32xf32>
    tpu.vector_store %arg12[%c9, %c0_147], %350 {strides = array<i32>} : memref<16x128xf32, #tpu.memory_space<vmem>>, vector<1x32xf32>,
    %352 = vector.extract_strided_slice %345 {offsets = [1, 32], sizes = [1, 32], strides = [1, 1]} : vector<2x64xf32> to vector<1x32xf32>
    %c14_148 = arith.constant 14 : index
    %c32_149 = arith.constant 32 : index
    %353 = vector.load %arg12[%c14_148, %c32_149] : memref<16x128xf32, #tpu.memory_space<vmem>>, vector<1x32xf32>
    tpu.vector_store %arg12[%c14_148, %c32_149], %352 {strides = array<i32>} : memref<16x128xf32, #tpu.memory_space<vmem>>, vector<1x32xf32>,
    %354 = vector.extract_strided_slice %284 {offsets = [4, 0], sizes = [2, 192], strides = [1, 1]} : vector<16x192xf32> to vector<2x192xf32>
    %c0_150 = arith.constant 0 : index
    %c0_151 = arith.constant 0 : index
    %355 = vector.load %arg7[%c0_150, %c0_151] : memref<64x192xf32, #tpu.memory_space<vmem>>, vector<64x192xf32>
    %cst_152 = arith.constant dense<0.000000e+00> : vector<2x192xf32>
    %356 = tpu.matmul %345, %355, %cst_152 {dimension_numbers = #tpu.dot_dimension_numbers<[1], [0], [0], [1], [0, 0, 1, 1], [], []>} : vector<2x64xf32>, vector<64x192xf32>, vector<2x192xf32> -> vector<2x192xf32>
    %c0_153 = arith.constant 0 : index
    %c0_154 = arith.constant 0 : index
    %357 = vector.load %arg8[%c0_153, %c0_154] : memref<1x192xf32, #tpu.memory_space<vmem>>, vector<1x192xf32>
    %358 = vector.broadcast %357 : vector<1x192xf32> to vector<2x192xf32>
    %359 = arith.addf %356, %358 : vector<2x192xf32>
    %360 = vector.extract_strided_slice %354 {offsets = [0, 0], sizes = [2, 128], strides = [1, 1]} : vector<2x192xf32> to vector<2x128xf32>
    %361 = vector.extract_strided_slice %359 {offsets = [0, 0], sizes = [2, 128], strides = [1, 1]} : vector<2x192xf32> to vector<2x128xf32>
    %362 = arith.addf %360, %361 : vector<2x128xf32>
    %363 = arith.negf %362 : vector<2x128xf32>
    %364 = math.exp %363 : vector<2x128xf32>
    %cst_155 = arith.constant 1.000000e+00 : f32
    %365 = vector.broadcast %cst_155 : f32 to vector<2x128xf32>
    %366 = arith.addf %365, %364 : vector<2x128xf32>
    %367 = arith.divf %365, %366 : vector<2x128xf32>
    %368 = vector.extract_strided_slice %367 {offsets = [0, 0], sizes = [2, 64], strides = [1, 1]} : vector<2x128xf32> to vector<2x64xf32>
    %369 = vector.extract_strided_slice %367 {offsets = [0, 64], sizes = [2, 64], strides = [1, 1]} : vector<2x128xf32> to vector<2x64xf32>
    %370 = vector.extract_strided_slice %354 {offsets = [0, 128], sizes = [2, 64], strides = [1, 1]} : vector<2x192xf32> to vector<2x64xf32>
    %371 = vector.extract_strided_slice %359 {offsets = [0, 128], sizes = [2, 64], strides = [1, 1]} : vector<2x192xf32> to vector<2x64xf32>
    %372 = arith.mulf %368, %371 : vector<2x64xf32>
    %373 = arith.addf %370, %372 : vector<2x64xf32>
    %374 = math.tanh %373 : vector<2x64xf32>
    %cst_156 = arith.constant 1.000000e+00 : f32
    %375 = vector.broadcast %cst_156 : f32 to vector<2x64xf32>
    %376 = arith.subf %375, %369 : vector<2x64xf32>
    %377 = arith.mulf %376, %374 : vector<2x64xf32>
    %378 = arith.mulf %369, %345 : vector<2x64xf32>
    %379 = arith.addf %377, %378 : vector<2x64xf32>
    %380 = vector.extract_strided_slice %379 {offsets = [0, 0], sizes = [1, 32], strides = [1, 1]} : vector<2x64xf32> to vector<1x32xf32>
    %c2_157 = arith.constant 2 : index
    %c0_158 = arith.constant 0 : index
    %381 = vector.load %arg12[%c2_157, %c0_158] : memref<16x128xf32, #tpu.memory_space<vmem>>, vector<1x32xf32>
    tpu.vector_store %arg12[%c2_157, %c0_158], %380 {strides = array<i32>} : memref<16x128xf32, #tpu.memory_space<vmem>>, vector<1x32xf32>,
    %382 = vector.extract_strided_slice %379 {offsets = [0, 32], sizes = [1, 32], strides = [1, 1]} : vector<2x64xf32> to vector<1x32xf32>
    %c5 = arith.constant 5 : index
    %c32_159 = arith.constant 32 : index
    %383 = vector.load %arg12[%c5, %c32_159] : memref<16x128xf32, #tpu.memory_space<vmem>>, vector<1x32xf32>
    tpu.vector_store %arg12[%c5, %c32_159], %382 {strides = array<i32>} : memref<16x128xf32, #tpu.memory_space<vmem>>, vector<1x32xf32>,
    %384 = vector.extract_strided_slice %379 {offsets = [1, 0], sizes = [1, 32], strides = [1, 1]} : vector<2x64xf32> to vector<1x32xf32>
    %c10_160 = arith.constant 10 : index
    %c0_161 = arith.constant 0 : index
    %385 = vector.load %arg12[%c10_160, %c0_161] : memref<16x128xf32, #tpu.memory_space<vmem>>, vector<1x32xf32>
    tpu.vector_store %arg12[%c10_160, %c0_161], %384 {strides = array<i32>} : memref<16x128xf32, #tpu.memory_space<vmem>>, vector<1x32xf32>,
    %386 = vector.extract_strided_slice %379 {offsets = [1, 32], sizes = [1, 32], strides = [1, 1]} : vector<2x64xf32> to vector<1x32xf32>
    %c13 = arith.constant 13 : index
    %c32_162 = arith.constant 32 : index
    %387 = vector.load %arg12[%c13, %c32_162] : memref<16x128xf32, #tpu.memory_space<vmem>>, vector<1x32xf32>
    tpu.vector_store %arg12[%c13, %c32_162], %386 {strides = array<i32>} : memref<16x128xf32, #tpu.memory_space<vmem>>, vector<1x32xf32>,
    %388 = vector.extract_strided_slice %284 {offsets = [6, 0], sizes = [2, 192], strides = [1, 1]} : vector<16x192xf32> to vector<2x192xf32>
    %c0_163 = arith.constant 0 : index
    %c0_164 = arith.constant 0 : index
    %389 = vector.load %arg7[%c0_163, %c0_164] : memref<64x192xf32, #tpu.memory_space<vmem>>, vector<64x192xf32>
    %cst_165 = arith.constant dense<0.000000e+00> : vector<2x192xf32>
    %390 = tpu.matmul %379, %389, %cst_165 {dimension_numbers = #tpu.dot_dimension_numbers<[1], [0], [0], [1], [0, 0, 1, 1], [], []>} : vector<2x64xf32>, vector<64x192xf32>, vector<2x192xf32> -> vector<2x192xf32>
    %c0_166 = arith.constant 0 : index
    %c0_167 = arith.constant 0 : index
    %391 = vector.load %arg8[%c0_166, %c0_167] : memref<1x192xf32, #tpu.memory_space<vmem>>, vector<1x192xf32>
    %392 = vector.broadcast %391 : vector<1x192xf32> to vector<2x192xf32>
    %393 = arith.addf %390, %392 : vector<2x192xf32>
    %394 = vector.extract_strided_slice %388 {offsets = [0, 0], sizes = [2, 128], strides = [1, 1]} : vector<2x192xf32> to vector<2x128xf32>
    %395 = vector.extract_strided_slice %393 {offsets = [0, 0], sizes = [2, 128], strides = [1, 1]} : vector<2x192xf32> to vector<2x128xf32>
    %396 = arith.addf %394, %395 : vector<2x128xf32>
    %397 = arith.negf %396 : vector<2x128xf32>
    %398 = math.exp %397 : vector<2x128xf32>
    %cst_168 = arith.constant 1.000000e+00 : f32
    %399 = vector.broadcast %cst_168 : f32 to vector<2x128xf32>
    %400 = arith.addf %399, %398 : vector<2x128xf32>
    %401 = arith.divf %399, %400 : vector<2x128xf32>
    %402 = vector.extract_strided_slice %401 {offsets = [0, 0], sizes = [2, 64], strides = [1, 1]} : vector<2x128xf32> to vector<2x64xf32>
    %403 = vector.extract_strided_slice %401 {offsets = [0, 64], sizes = [2, 64], strides = [1, 1]} : vector<2x128xf32> to vector<2x64xf32>
    %404 = vector.extract_strided_slice %388 {offsets = [0, 128], sizes = [2, 64], strides = [1, 1]} : vector<2x192xf32> to vector<2x64xf32>
    %405 = vector.extract_strided_slice %393 {offsets = [0, 128], sizes = [2, 64], strides = [1, 1]} : vector<2x192xf32> to vector<2x64xf32>
    %406 = arith.mulf %402, %405 : vector<2x64xf32>
    %407 = arith.addf %404, %406 : vector<2x64xf32>
    %408 = math.tanh %407 : vector<2x64xf32>
    %cst_169 = arith.constant 1.000000e+00 : f32
    %409 = vector.broadcast %cst_169 : f32 to vector<2x64xf32>
    %410 = arith.subf %409, %403 : vector<2x64xf32>
    %411 = arith.mulf %410, %408 : vector<2x64xf32>
    %412 = arith.mulf %403, %379 : vector<2x64xf32>
    %413 = arith.addf %411, %412 : vector<2x64xf32>
    %414 = vector.extract_strided_slice %413 {offsets = [0, 0], sizes = [1, 32], strides = [1, 1]} : vector<2x64xf32> to vector<1x32xf32>
    %c3 = arith.constant 3 : index
    %c0_170 = arith.constant 0 : index
    %415 = vector.load %arg12[%c3, %c0_170] : memref<16x128xf32, #tpu.memory_space<vmem>>, vector<1x32xf32>
    tpu.vector_store %arg12[%c3, %c0_170], %414 {strides = array<i32>} : memref<16x128xf32, #tpu.memory_space<vmem>>, vector<1x32xf32>,
    %416 = vector.extract_strided_slice %413 {offsets = [0, 32], sizes = [1, 32], strides = [1, 1]} : vector<2x64xf32> to vector<1x32xf32>
    %c4_171 = arith.constant 4 : index
    %c32_172 = arith.constant 32 : index
    %417 = vector.load %arg12[%c4_171, %c32_172] : memref<16x128xf32, #tpu.memory_space<vmem>>, vector<1x32xf32>
    tpu.vector_store %arg12[%c4_171, %c32_172], %416 {strides = array<i32>} : memref<16x128xf32, #tpu.memory_space<vmem>>, vector<1x32xf32>,
    %418 = vector.extract_strided_slice %413 {offsets = [1, 0], sizes = [1, 32], strides = [1, 1]} : vector<2x64xf32> to vector<1x32xf32>
    %c11 = arith.constant 11 : index
    %c0_173 = arith.constant 0 : index
    %419 = vector.load %arg12[%c11, %c0_173] : memref<16x128xf32, #tpu.memory_space<vmem>>, vector<1x32xf32>
    tpu.vector_store %arg12[%c11, %c0_173], %418 {strides = array<i32>} : memref<16x128xf32, #tpu.memory_space<vmem>>, vector<1x32xf32>,
    %420 = vector.extract_strided_slice %413 {offsets = [1, 32], sizes = [1, 32], strides = [1, 1]} : vector<2x64xf32> to vector<1x32xf32>
    %c12_174 = arith.constant 12 : index
    %c32_175 = arith.constant 32 : index
    %421 = vector.load %arg12[%c12_174, %c32_175] : memref<16x128xf32, #tpu.memory_space<vmem>>, vector<1x32xf32>
    tpu.vector_store %arg12[%c12_174, %c32_175], %420 {strides = array<i32>} : memref<16x128xf32, #tpu.memory_space<vmem>>, vector<1x32xf32>,
    %422 = vector.extract_strided_slice %284 {offsets = [8, 0], sizes = [2, 192], strides = [1, 1]} : vector<16x192xf32> to vector<2x192xf32>
    %c0_176 = arith.constant 0 : index
    %c0_177 = arith.constant 0 : index
    %423 = vector.load %arg7[%c0_176, %c0_177] : memref<64x192xf32, #tpu.memory_space<vmem>>, vector<64x192xf32>
    %cst_178 = arith.constant dense<0.000000e+00> : vector<2x192xf32>
    %424 = tpu.matmul %413, %423, %cst_178 {dimension_numbers = #tpu.dot_dimension_numbers<[1], [0], [0], [1], [0, 0, 1, 1], [], []>} : vector<2x64xf32>, vector<64x192xf32>, vector<2x192xf32> -> vector<2x192xf32>
    %c0_179 = arith.constant 0 : index
    %c0_180 = arith.constant 0 : index
    %425 = vector.load %arg8[%c0_179, %c0_180] : memref<1x192xf32, #tpu.memory_space<vmem>>, vector<1x192xf32>
    %426 = vector.broadcast %425 : vector<1x192xf32> to vector<2x192xf32>
    %427 = arith.addf %424, %426 : vector<2x192xf32>
    %428 = vector.extract_strided_slice %422 {offsets = [0, 0], sizes = [2, 128], strides = [1, 1]} : vector<2x192xf32> to vector<2x128xf32>
    %429 = vector.extract_strided_slice %427 {offsets = [0, 0], sizes = [2, 128], strides = [1, 1]} : vector<2x192xf32> to vector<2x128xf32>
    %430 = arith.addf %428, %429 : vector<2x128xf32>
    %431 = arith.negf %430 : vector<2x128xf32>
    %432 = math.exp %431 : vector<2x128xf32>
    %cst_181 = arith.constant 1.000000e+00 : f32
    %433 = vector.broadcast %cst_181 : f32 to vector<2x128xf32>
    %434 = arith.addf %433, %432 : vector<2x128xf32>
    %435 = arith.divf %433, %434 : vector<2x128xf32>
    %436 = vector.extract_strided_slice %435 {offsets = [0, 0], sizes = [2, 64], strides = [1, 1]} : vector<2x128xf32> to vector<2x64xf32>
    %437 = vector.extract_strided_slice %435 {offsets = [0, 64], sizes = [2, 64], strides = [1, 1]} : vector<2x128xf32> to vector<2x64xf32>
    %438 = vector.extract_strided_slice %422 {offsets = [0, 128], sizes = [2, 64], strides = [1, 1]} : vector<2x192xf32> to vector<2x64xf32>
    %439 = vector.extract_strided_slice %427 {offsets = [0, 128], sizes = [2, 64], strides = [1, 1]} : vector<2x192xf32> to vector<2x64xf32>
    %440 = arith.mulf %436, %439 : vector<2x64xf32>
    %441 = arith.addf %438, %440 : vector<2x64xf32>
    %442 = math.tanh %441 : vector<2x64xf32>
    %cst_182 = arith.constant 1.000000e+00 : f32
    %443 = vector.broadcast %cst_182 : f32 to vector<2x64xf32>
    %444 = arith.subf %443, %437 : vector<2x64xf32>
    %445 = arith.mulf %444, %442 : vector<2x64xf32>
    %446 = arith.mulf %437, %413 : vector<2x64xf32>
    %447 = arith.addf %445, %446 : vector<2x64xf32>
    %448 = vector.extract_strided_slice %447 {offsets = [0, 0], sizes = [1, 32], strides = [1, 1]} : vector<2x64xf32> to vector<1x32xf32>
    %c4_183 = arith.constant 4 : index
    %c0_184 = arith.constant 0 : index
    %449 = vector.load %arg12[%c4_183, %c0_184] : memref<16x128xf32, #tpu.memory_space<vmem>>, vector<1x32xf32>
    tpu.vector_store %arg12[%c4_183, %c0_184], %448 {strides = array<i32>} : memref<16x128xf32, #tpu.memory_space<vmem>>, vector<1x32xf32>,
    %450 = vector.extract_strided_slice %447 {offsets = [0, 32], sizes = [1, 32], strides = [1, 1]} : vector<2x64xf32> to vector<1x32xf32>
    %c3_185 = arith.constant 3 : index
    %c32_186 = arith.constant 32 : index
    %451 = vector.load %arg12[%c3_185, %c32_186] : memref<16x128xf32, #tpu.memory_space<vmem>>, vector<1x32xf32>
    tpu.vector_store %arg12[%c3_185, %c32_186], %450 {strides = array<i32>} : memref<16x128xf32, #tpu.memory_space<vmem>>, vector<1x32xf32>,
    %452 = vector.extract_strided_slice %447 {offsets = [1, 0], sizes = [1, 32], strides = [1, 1]} : vector<2x64xf32> to vector<1x32xf32>
    %c12_187 = arith.constant 12 : index
    %c0_188 = arith.constant 0 : index
    %453 = vector.load %arg12[%c12_187, %c0_188] : memref<16x128xf32, #tpu.memory_space<vmem>>, vector<1x32xf32>
    tpu.vector_store %arg12[%c12_187, %c0_188], %452 {strides = array<i32>} : memref<16x128xf32, #tpu.memory_space<vmem>>, vector<1x32xf32>,
    %454 = vector.extract_strided_slice %447 {offsets = [1, 32], sizes = [1, 32], strides = [1, 1]} : vector<2x64xf32> to vector<1x32xf32>
    %c11_189 = arith.constant 11 : index
    %c32_190 = arith.constant 32 : index
    %455 = vector.load %arg12[%c11_189, %c32_190] : memref<16x128xf32, #tpu.memory_space<vmem>>, vector<1x32xf32>
    tpu.vector_store %arg12[%c11_189, %c32_190], %454 {strides = array<i32>} : memref<16x128xf32, #tpu.memory_space<vmem>>, vector<1x32xf32>,
    %456 = vector.extract_strided_slice %284 {offsets = [10, 0], sizes = [2, 192], strides = [1, 1]} : vector<16x192xf32> to vector<2x192xf32>
    %c0_191 = arith.constant 0 : index
    %c0_192 = arith.constant 0 : index
    %457 = vector.load %arg7[%c0_191, %c0_192] : memref<64x192xf32, #tpu.memory_space<vmem>>, vector<64x192xf32>
    %cst_193 = arith.constant dense<0.000000e+00> : vector<2x192xf32>
    %458 = tpu.matmul %447, %457, %cst_193 {dimension_numbers = #tpu.dot_dimension_numbers<[1], [0], [0], [1], [0, 0, 1, 1], [], []>} : vector<2x64xf32>, vector<64x192xf32>, vector<2x192xf32> -> vector<2x192xf32>
    %c0_194 = arith.constant 0 : index
    %c0_195 = arith.constant 0 : index
    %459 = vector.load %arg8[%c0_194, %c0_195] : memref<1x192xf32, #tpu.memory_space<vmem>>, vector<1x192xf32>
    %460 = vector.broadcast %459 : vector<1x192xf32> to vector<2x192xf32>
    %461 = arith.addf %458, %460 : vector<2x192xf32>
    %462 = vector.extract_strided_slice %456 {offsets = [0, 0], sizes = [2, 128], strides = [1, 1]} : vector<2x192xf32> to vector<2x128xf32>
    %463 = vector.extract_strided_slice %461 {offsets = [0, 0], sizes = [2, 128], strides = [1, 1]} : vector<2x192xf32> to vector<2x128xf32>
    %464 = arith.addf %462, %463 : vector<2x128xf32>
    %465 = arith.negf %464 : vector<2x128xf32>
    %466 = math.exp %465 : vector<2x128xf32>
    %cst_196 = arith.constant 1.000000e+00 : f32
    %467 = vector.broadcast %cst_196 : f32 to vector<2x128xf32>
    %468 = arith.addf %467, %466 : vector<2x128xf32>
    %469 = arith.divf %467, %468 : vector<2x128xf32>
    %470 = vector.extract_strided_slice %469 {offsets = [0, 0], sizes = [2, 64], strides = [1, 1]} : vector<2x128xf32> to vector<2x64xf32>
    %471 = vector.extract_strided_slice %469 {offsets = [0, 64], sizes = [2, 64], strides = [1, 1]} : vector<2x128xf32> to vector<2x64xf32>
    %472 = vector.extract_strided_slice %456 {offsets = [0, 128], sizes = [2, 64], strides = [1, 1]} : vector<2x192xf32> to vector<2x64xf32>
    %473 = vector.extract_strided_slice %461 {offsets = [0, 128], sizes = [2, 64], strides = [1, 1]} : vector<2x192xf32> to vector<2x64xf32>
    %474 = arith.mulf %470, %473 : vector<2x64xf32>
    %475 = arith.addf %472, %474 : vector<2x64xf32>
    %476 = math.tanh %475 : vector<2x64xf32>
    %cst_197 = arith.constant 1.000000e+00 : f32
    %477 = vector.broadcast %cst_197 : f32 to vector<2x64xf32>
    %478 = arith.subf %477, %471 : vector<2x64xf32>
    %479 = arith.mulf %478, %476 : vector<2x64xf32>
    %480 = arith.mulf %471, %447 : vector<2x64xf32>
    %481 = arith.addf %479, %480 : vector<2x64xf32>
    %482 = vector.extract_strided_slice %481 {offsets = [0, 0], sizes = [1, 32], strides = [1, 1]} : vector<2x64xf32> to vector<1x32xf32>
    %c5_198 = arith.constant 5 : index
    %c0_199 = arith.constant 0 : index
    %483 = vector.load %arg12[%c5_198, %c0_199] : memref<16x128xf32, #tpu.memory_space<vmem>>, vector<1x32xf32>
    tpu.vector_store %arg12[%c5_198, %c0_199], %482 {strides = array<i32>} : memref<16x128xf32, #tpu.memory_space<vmem>>, vector<1x32xf32>,
    %484 = vector.extract_strided_slice %481 {offsets = [0, 32], sizes = [1, 32], strides = [1, 1]} : vector<2x64xf32> to vector<1x32xf32>
    %c2_200 = arith.constant 2 : index
    %c32_201 = arith.constant 32 : index
    %485 = vector.load %arg12[%c2_200, %c32_201] : memref<16x128xf32, #tpu.memory_space<vmem>>, vector<1x32xf32>
    tpu.vector_store %arg12[%c2_200, %c32_201], %484 {strides = array<i32>} : memref<16x128xf32, #tpu.memory_space<vmem>>, vector<1x32xf32>,
    %486 = vector.extract_strided_slice %481 {offsets = [1, 0], sizes = [1, 32], strides = [1, 1]} : vector<2x64xf32> to vector<1x32xf32>
    %c13_202 = arith.constant 13 : index
    %c0_203 = arith.constant 0 : index
    %487 = vector.load %arg12[%c13_202, %c0_203] : memref<16x128xf32, #tpu.memory_space<vmem>>, vector<1x32xf32>
    tpu.vector_store %arg12[%c13_202, %c0_203], %486 {strides = array<i32>} : memref<16x128xf32, #tpu.memory_space<vmem>>, vector<1x32xf32>,
    %488 = vector.extract_strided_slice %481 {offsets = [1, 32], sizes = [1, 32], strides = [1, 1]} : vector<2x64xf32> to vector<1x32xf32>
    %c10_204 = arith.constant 10 : index
    %c32_205 = arith.constant 32 : index
    %489 = vector.load %arg12[%c10_204, %c32_205] : memref<16x128xf32, #tpu.memory_space<vmem>>, vector<1x32xf32>
    tpu.vector_store %arg12[%c10_204, %c32_205], %488 {strides = array<i32>} : memref<16x128xf32, #tpu.memory_space<vmem>>, vector<1x32xf32>,
    %490 = vector.extract_strided_slice %284 {offsets = [12, 0], sizes = [2, 192], strides = [1, 1]} : vector<16x192xf32> to vector<2x192xf32>
    %c0_206 = arith.constant 0 : index
    %c0_207 = arith.constant 0 : index
    %491 = vector.load %arg7[%c0_206, %c0_207] : memref<64x192xf32, #tpu.memory_space<vmem>>, vector<64x192xf32>
    %cst_208 = arith.constant dense<0.000000e+00> : vector<2x192xf32>
    %492 = tpu.matmul %481, %491, %cst_208 {dimension_numbers = #tpu.dot_dimension_numbers<[1], [0], [0], [1], [0, 0, 1, 1], [], []>} : vector<2x64xf32>, vector<64x192xf32>, vector<2x192xf32> -> vector<2x192xf32>
    %c0_209 = arith.constant 0 : index
    %c0_210 = arith.constant 0 : index
    %493 = vector.load %arg8[%c0_209, %c0_210] : memref<1x192xf32, #tpu.memory_space<vmem>>, vector<1x192xf32>
    %494 = vector.broadcast %493 : vector<1x192xf32> to vector<2x192xf32>
    %495 = arith.addf %492, %494 : vector<2x192xf32>
    %496 = vector.extract_strided_slice %490 {offsets = [0, 0], sizes = [2, 128], strides = [1, 1]} : vector<2x192xf32> to vector<2x128xf32>
    %497 = vector.extract_strided_slice %495 {offsets = [0, 0], sizes = [2, 128], strides = [1, 1]} : vector<2x192xf32> to vector<2x128xf32>
    %498 = arith.addf %496, %497 : vector<2x128xf32>
    %499 = arith.negf %498 : vector<2x128xf32>
    %500 = math.exp %499 : vector<2x128xf32>
    %cst_211 = arith.constant 1.000000e+00 : f32
    %501 = vector.broadcast %cst_211 : f32 to vector<2x128xf32>
    %502 = arith.addf %501, %500 : vector<2x128xf32>
    %503 = arith.divf %501, %502 : vector<2x128xf32>
    %504 = vector.extract_strided_slice %503 {offsets = [0, 0], sizes = [2, 64], strides = [1, 1]} : vector<2x128xf32> to vector<2x64xf32>
    %505 = vector.extract_strided_slice %503 {offsets = [0, 64], sizes = [2, 64], strides = [1, 1]} : vector<2x128xf32> to vector<2x64xf32>
    %506 = vector.extract_strided_slice %490 {offsets = [0, 128], sizes = [2, 64], strides = [1, 1]} : vector<2x192xf32> to vector<2x64xf32>
    %507 = vector.extract_strided_slice %495 {offsets = [0, 128], sizes = [2, 64], strides = [1, 1]} : vector<2x192xf32> to vector<2x64xf32>
    %508 = arith.mulf %504, %507 : vector<2x64xf32>
    %509 = arith.addf %506, %508 : vector<2x64xf32>
    %510 = math.tanh %509 : vector<2x64xf32>
    %cst_212 = arith.constant 1.000000e+00 : f32
    %511 = vector.broadcast %cst_212 : f32 to vector<2x64xf32>
    %512 = arith.subf %511, %505 : vector<2x64xf32>
    %513 = arith.mulf %512, %510 : vector<2x64xf32>
    %514 = arith.mulf %505, %481 : vector<2x64xf32>
    %515 = arith.addf %513, %514 : vector<2x64xf32>
    %516 = vector.extract_strided_slice %515 {offsets = [0, 0], sizes = [1, 32], strides = [1, 1]} : vector<2x64xf32> to vector<1x32xf32>
    %c6_213 = arith.constant 6 : index
    %c0_214 = arith.constant 0 : index
    %517 = vector.load %arg12[%c6_213, %c0_214] : memref<16x128xf32, #tpu.memory_space<vmem>>, vector<1x32xf32>
    tpu.vector_store %arg12[%c6_213, %c0_214], %516 {strides = array<i32>} : memref<16x128xf32, #tpu.memory_space<vmem>>, vector<1x32xf32>,
    %518 = vector.extract_strided_slice %515 {offsets = [0, 32], sizes = [1, 32], strides = [1, 1]} : vector<2x64xf32> to vector<1x32xf32>
    %c1_215 = arith.constant 1 : index
    %c32_216 = arith.constant 32 : index
    %519 = vector.load %arg12[%c1_215, %c32_216] : memref<16x128xf32, #tpu.memory_space<vmem>>, vector<1x32xf32>
    tpu.vector_store %arg12[%c1_215, %c32_216], %518 {strides = array<i32>} : memref<16x128xf32, #tpu.memory_space<vmem>>, vector<1x32xf32>,
    %520 = vector.extract_strided_slice %515 {offsets = [1, 0], sizes = [1, 32], strides = [1, 1]} : vector<2x64xf32> to vector<1x32xf32>
    %c14_217 = arith.constant 14 : index
    %c0_218 = arith.constant 0 : index
    %521 = vector.load %arg12[%c14_217, %c0_218] : memref<16x128xf32, #tpu.memory_space<vmem>>, vector<1x32xf32>
    tpu.vector_store %arg12[%c14_217, %c0_218], %520 {strides = array<i32>} : memref<16x128xf32, #tpu.memory_space<vmem>>, vector<1x32xf32>,
    %522 = vector.extract_strided_slice %515 {offsets = [1, 32], sizes = [1, 32], strides = [1, 1]} : vector<2x64xf32> to vector<1x32xf32>
    %c9_219 = arith.constant 9 : index
    %c32_220 = arith.constant 32 : index
    %523 = vector.load %arg12[%c9_219, %c32_220] : memref<16x128xf32, #tpu.memory_space<vmem>>, vector<1x32xf32>
    tpu.vector_store %arg12[%c9_219, %c32_220], %522 {strides = array<i32>} : memref<16x128xf32, #tpu.memory_space<vmem>>, vector<1x32xf32>,
    %524 = vector.extract_strided_slice %284 {offsets = [14, 0], sizes = [2, 192], strides = [1, 1]} : vector<16x192xf32> to vector<2x192xf32>
    %c0_221 = arith.constant 0 : index
    %c0_222 = arith.constant 0 : index
    %525 = vector.load %arg7[%c0_221, %c0_222] : memref<64x192xf32, #tpu.memory_space<vmem>>, vector<64x192xf32>
    %cst_223 = arith.constant dense<0.000000e+00> : vector<2x192xf32>
    %526 = tpu.matmul %515, %525, %cst_223 {dimension_numbers = #tpu.dot_dimension_numbers<[1], [0], [0], [1], [0, 0, 1, 1], [], []>} : vector<2x64xf32>, vector<64x192xf32>, vector<2x192xf32> -> vector<2x192xf32>
    %c0_224 = arith.constant 0 : index
    %c0_225 = arith.constant 0 : index
    %527 = vector.load %arg8[%c0_224, %c0_225] : memref<1x192xf32, #tpu.memory_space<vmem>>, vector<1x192xf32>
    %528 = vector.broadcast %527 : vector<1x192xf32> to vector<2x192xf32>
    %529 = arith.addf %526, %528 : vector<2x192xf32>
    %530 = vector.extract_strided_slice %524 {offsets = [0, 0], sizes = [2, 128], strides = [1, 1]} : vector<2x192xf32> to vector<2x128xf32>
    %531 = vector.extract_strided_slice %529 {offsets = [0, 0], sizes = [2, 128], strides = [1, 1]} : vector<2x192xf32> to vector<2x128xf32>
    %532 = arith.addf %530, %531 : vector<2x128xf32>
    %533 = arith.negf %532 : vector<2x128xf32>
    %534 = math.exp %533 : vector<2x128xf32>
    %cst_226 = arith.constant 1.000000e+00 : f32
    %535 = vector.broadcast %cst_226 : f32 to vector<2x128xf32>
    %536 = arith.addf %535, %534 : vector<2x128xf32>
    %537 = arith.divf %535, %536 : vector<2x128xf32>
    %538 = vector.extract_strided_slice %537 {offsets = [0, 0], sizes = [2, 64], strides = [1, 1]} : vector<2x128xf32> to vector<2x64xf32>
    %539 = vector.extract_strided_slice %537 {offsets = [0, 64], sizes = [2, 64], strides = [1, 1]} : vector<2x128xf32> to vector<2x64xf32>
    %540 = vector.extract_strided_slice %524 {offsets = [0, 128], sizes = [2, 64], strides = [1, 1]} : vector<2x192xf32> to vector<2x64xf32>
    %541 = vector.extract_strided_slice %529 {offsets = [0, 128], sizes = [2, 64], strides = [1, 1]} : vector<2x192xf32> to vector<2x64xf32>
    %542 = arith.mulf %538, %541 : vector<2x64xf32>
    %543 = arith.addf %540, %542 : vector<2x64xf32>
    %544 = math.tanh %543 : vector<2x64xf32>
    %cst_227 = arith.constant 1.000000e+00 : f32
    %545 = vector.broadcast %cst_227 : f32 to vector<2x64xf32>
    %546 = arith.subf %545, %539 : vector<2x64xf32>
    %547 = arith.mulf %546, %544 : vector<2x64xf32>
    %548 = arith.mulf %539, %515 : vector<2x64xf32>
    %549 = arith.addf %547, %548 : vector<2x64xf32>
    %550 = vector.extract_strided_slice %549 {offsets = [0, 0], sizes = [1, 32], strides = [1, 1]} : vector<2x64xf32> to vector<1x32xf32>
    %c7_228 = arith.constant 7 : index
    %c0_229 = arith.constant 0 : index
    %551 = vector.load %arg12[%c7_228, %c0_229] : memref<16x128xf32, #tpu.memory_space<vmem>>, vector<1x32xf32>
    tpu.vector_store %arg12[%c7_228, %c0_229], %550 {strides = array<i32>} : memref<16x128xf32, #tpu.memory_space<vmem>>, vector<1x32xf32>,
    %552 = vector.extract_strided_slice %549 {offsets = [0, 32], sizes = [1, 32], strides = [1, 1]} : vector<2x64xf32> to vector<1x32xf32>
    %c0_230 = arith.constant 0 : index
    %c32_231 = arith.constant 32 : index
    %553 = vector.load %arg12[%c0_230, %c32_231] : memref<16x128xf32, #tpu.memory_space<vmem>>, vector<1x32xf32>
    tpu.vector_store %arg12[%c0_230, %c32_231], %552 {strides = array<i32>} : memref<16x128xf32, #tpu.memory_space<vmem>>, vector<1x32xf32>,
    %554 = vector.extract_strided_slice %549 {offsets = [1, 0], sizes = [1, 32], strides = [1, 1]} : vector<2x64xf32> to vector<1x32xf32>
    %c15_232 = arith.constant 15 : index
    %c0_233 = arith.constant 0 : index
    %555 = vector.load %arg12[%c15_232, %c0_233] : memref<16x128xf32, #tpu.memory_space<vmem>>, vector<1x32xf32>
    tpu.vector_store %arg12[%c15_232, %c0_233], %554 {strides = array<i32>} : memref<16x128xf32, #tpu.memory_space<vmem>>, vector<1x32xf32>,
    %556 = vector.extract_strided_slice %549 {offsets = [1, 32], sizes = [1, 32], strides = [1, 1]} : vector<2x64xf32> to vector<1x32xf32>
    %c8_234 = arith.constant 8 : index
    %c32_235 = arith.constant 32 : index
    %557 = vector.load %arg12[%c8_234, %c32_235] : memref<16x128xf32, #tpu.memory_space<vmem>>, vector<1x32xf32>
    tpu.vector_store %arg12[%c8_234, %c32_235], %556 {strides = array<i32>} : memref<16x128xf32, #tpu.memory_space<vmem>>, vector<1x32xf32>,
    %c0_236 = arith.constant 0 : index
    %c0_237 = arith.constant 0 : index
    %558 = vector.load %arg12[%c0_236, %c0_237] : memref<16x128xf32, #tpu.memory_space<vmem>>, vector<8x64xf32>
    %c0_238 = arith.constant 0 : index
    %c0_239 = arith.constant 0 : index
    %559 = vector.load %arg9[%c0_238, %c0_239] : memref<16x64xf32, #tpu.memory_space<vmem>>, vector<16x64xf32>
    %cst_240 = arith.constant dense<0.000000e+00> : vector<16x8xf32>
    %560 = tpu.matmul %559, %558, %cst_240 {dimension_numbers = #tpu.dot_dimension_numbers<[1], [1], [0], [0], [0, 0, 1, 0], [], []>} : vector<16x64xf32>, vector<8x64xf32>, vector<16x8xf32> -> vector<16x8xf32>
    %c0_241 = arith.constant 0 : index
    %c0_242 = arith.constant 0 : index
    %561 = vector.load %arg10[%c0_241, %c0_242] : memref<16x1xf32, #tpu.memory_space<vmem>>, vector<16x1xf32>
    %562 = vector.broadcast %561 : vector<16x1xf32> to vector<16x8xf32>
    %563 = arith.addf %560, %562 : vector<16x8xf32>
    %564 = math.tanh %563 : vector<16x8xf32>
    %c0_243 = arith.constant 0 : index
    %c0_244 = arith.constant 0 : index
    %c0_245 = arith.constant 0 : index
    %565 = vector.load %arg11[%c0_243, %c0_244, %c0_245] : memref<2x16x8xf32, #tpu.memory_space<vmem>>, vector<1x16x8xf32>
    %566 = vector.shape_cast %565 : vector<1x16x8xf32> to vector<16x8xf32>
    %567 = vector.shape_cast %564 : vector<16x8xf32> to vector<1x16x8xf32>
    tpu.vector_store %arg11[%c0_243, %c0_244, %c0_245], %567 {strides = array<i32>} : memref<2x16x8xf32, #tpu.memory_space<vmem>>, vector<1x16x8xf32>,
    %c8_246 = arith.constant 8 : index
    %c0_247 = arith.constant 0 : index
    %568 = vector.load %arg12[%c8_246, %c0_247] : memref<16x128xf32, #tpu.memory_space<vmem>>, vector<8x64xf32>
    %c0_248 = arith.constant 0 : index
    %c0_249 = arith.constant 0 : index
    %569 = vector.load %arg9[%c0_248, %c0_249] : memref<16x64xf32, #tpu.memory_space<vmem>>, vector<16x64xf32>
    %cst_250 = arith.constant dense<0.000000e+00> : vector<16x8xf32>
    %570 = tpu.matmul %569, %568, %cst_250 {dimension_numbers = #tpu.dot_dimension_numbers<[1], [1], [0], [0], [0, 0, 1, 0], [], []>} : vector<16x64xf32>, vector<8x64xf32>, vector<16x8xf32> -> vector<16x8xf32>
    %c0_251 = arith.constant 0 : index
    %c0_252 = arith.constant 0 : index
    %571 = vector.load %arg10[%c0_251, %c0_252] : memref<16x1xf32, #tpu.memory_space<vmem>>, vector<16x1xf32>
    %572 = vector.broadcast %571 : vector<16x1xf32> to vector<16x8xf32>
    %573 = arith.addf %570, %572 : vector<16x8xf32>
    %574 = math.tanh %573 : vector<16x8xf32>
    %c1_253 = arith.constant 1 : index
    %c0_254 = arith.constant 0 : index
    %c0_255 = arith.constant 0 : index
    %575 = vector.load %arg11[%c1_253, %c0_254, %c0_255] : memref<2x16x8xf32, #tpu.memory_space<vmem>>, vector<1x16x8xf32>
    %576 = vector.shape_cast %575 : vector<1x16x8xf32> to vector<16x8xf32>
    %577 = vector.shape_cast %574 : vector<16x8xf32> to vector<1x16x8xf32>
    tpu.vector_store %arg11[%c1_253, %c0_254, %c0_255], %577 {strides = array<i32>} : memref<2x16x8xf32, #tpu.memory_space<vmem>>, vector<1x16x8xf32>,
    return
  }
}

</mosaic_0001>

<bundles_post_ra>
// kernel: sequence_model_forward.1
= control target key start
LH: loop header
LB: loop body
LE: loop exit
PB: predicated region body
PF: predicated region fallthrough
CT: control target
= control target key end

     0   :  { %v3132_v3 = vmov 0.0   ;;  %vm60_vm0 = vcmask 261120   ;;  %v50_v38 = vlaneseq  ;;  %s3133_s13 = smov 64   ;;  %vm269_vm1 = vcmask 254976   ;;  %s3985_s3 = inlined_call_operand.vmem [shape: f32[64,192], index: 3, kind: input, shape index: {}]   ;;  %s3986_s1 = inlined_call_operand.vmem [shape: f32[32,192], index: 1, kind: input, shape index: {}]   ;;  %s3987_s0 = inlined_call_operand.vmem [shape: f32[16,32], index: 0, kind: input, shape index: {}]   ;;  %s3988_s2 = inlined_call_operand.vmem [shape: f32[1,192], index: 2, kind: input, shape index: {}]   ;;  %s3989_s4 = inlined_call_operand.vmem [shape: f32[1,192], index: 4, kind: input, shape index: {}]   ;;  %s3990_s5 = inlined_call_operand.vmem [shape: f32[128,192], index: 5, kind: input, shape index: {}]   ;;  %s3991_s7 = inlined_call_operand.vmem [shape: f32[64,192], index: 7, kind: input, shape index: {}]   ;;  %s3992_s8 = inlined_call_operand.vmem [shape: f32[1,192], index: 8, kind: input, shape index: {}]   ;;  %s3993_s6 = inlined_call_operand.vmem [shape: f32[1,192], index: 6, kind: input, shape index: {}]   ;;  %s3994_s9 = inlined_call_operand.vmem [shape: f32[16,64], index: 9, kind: input, shape index: {}]   ;;  %s3995_s10 = inlined_call_operand.vmem [shape: f32[16,1], index: 10, kind: input, shape index: {}]   ;;  %s3996_s11 = inlined_call_operand.vmem [shape: f32[2,16,8], index: 11, kind: output, shape index: {}]  }
   0x1   :  { %v145_v0 = vld [vmem:[%s3985_s3 + $0x8] sm:$0xff]  ;;  %v147_v1 = vld [vmem:[%s3985_s3 + $0x18] sm:$0xff]  ;;  %v144_v2 = vld [vmem:[%s3985_s3] sm:$0xff]  ;;  %131 = vmatprep.mubr.f32.mxu0 %v3132_v3  ;;  %240 = vmatprep.mubr.f32.mxu1 %v3132_v3  ;;  %vm271_vm2 = vcmask 517376   ;;  %vm3997_vm3 = vcmask 523264   ;;  %vm273_vm4 = vcmask 779776  }
   0x2   :  { %v3206_v4 = vpack.c.bf16 %v147_v1, %v145_v0  ;;  %v146_v5 = vld [vmem:[%s3985_s3 + $0x10] sm:$0xff]  ;;  %v149_v6 = vld [vmem:[%s3985_s3 + $0x28] sm:$0xff]  ;;  %v151_v7 = vld [vmem:[%s3985_s3 + $0x38] sm:$0xff]  ;;  %v51_v39 = vshrl.u32 %v50_v38, 7  ;;  %vm275_vm5 = vcmask 1042176   ;;  %vm408_vm6 = vcmask 257026  }
   0x3   :  { %v3217_v8 = vpack.c.bf16 %v146_v5, %v144_v2  ;;  %v3219_v9 = vpack.c.bf16 %v151_v7, %v149_v6  ;;  %v148_v10 = vld [vmem:[%s3985_s3 + $0x20] sm:$0xff]  ;;  %v150_v11 = vld [vmem:[%s3985_s3 + $0x30] sm:$0xff]  ;;  %v41_v12 = vld [vmem:[%s3986_s1 + $0x8] sm:$0xff]  ;;  %vm410_vm7 = vcmask 519426   ;;  %vm412_vm8 = vcmask 781826  }
   0x4   :  { %2736 = vmatprep.subr.bf16.mxu1 %v3206_v4  ;;  %v43_v13 = vld [vmem:[%s3986_s1 + $0x18] sm:$0xff]  ;;  %v40_v14 = vld [vmem:[%s3986_s1] sm:$0xff]  ;;  %v42_v15 = vld [vmem:[%s3986_s1 + $0x10] sm:$0xff]  ;;  %v3241_v16 = vpack.c.bf16 %v150_v11, %v148_v10  ;;  %v3318_v40 = vsub.s32 0, %v51_v39  ;;  %v3334_v55 = vsub.s32 1, %v51_v39  ;;  %vm414_vm9 = vcmask 1044226  }
   0x5   :  { %2738 = vmatpush1.bf16.msra.mxu1 %v3217_v8  ;;  %v2727_v17 = vpack.c.bf16 %v43_v13, %v41_v12  ;;  %v2729_v18 = vpack.c.bf16 %v42_v15, %v40_v14  ;;  %v153_v19 = vld [vmem:[%s3985_s3 + $0x48] sm:$0xff]  ;;  %v155_v20 = vld [vmem:[%s3985_s3 + $0x58] sm:$0xff]  ;;  %v152_v21 = vld [vmem:[%s3985_s3 + $0x40] sm:$0xff]  ;;  %vm692_vm10 = vcmask 261126   ;;  %vm694_vm11 = vcmask 523526  }
   0x6   :  { %2740 = vmatprep.subr.bf16.mxu1 %v3219_v9  ;;  %v3253_v22 = vpack.c.bf16 %v155_v20, %v153_v19  ;;  %v154_v23 = vld [vmem:[%s3985_s3 + $0x50] sm:$0xff]  ;;  %v45_v24 = vld [vmem:[%s3986_s1 + $0x28] sm:$0xff]  ;;  %v47_v25 = vld [vmem:[%s3986_s1 + $0x38] sm:$0xff]  ;;  %vm696_vm12 = vcmask 785926   ;;  %vm698_vm13 = vcmask 1048326   ;;  %vm550_vm14 = vcmask 259076  }
   0x7   :  { %2728 = vmatprep.subr.bf16.mxu0 %v2727_v17  ;;  %v2731_v26 = vpack.c.bf16 %v47_v25, %v45_v24  ;;  %v44_v27 = vld [vmem:[%s3986_s1 + $0x20] sm:$0xff]  ;;  %v46_v28 = vld [vmem:[%s3986_s1 + $0x30] sm:$0xff]  ;;  %v157_v29 = vld [vmem:[%s3985_s3 + $0x68] sm:$0xff]  ;;  %v3277_v32 = vpack.c.bf16 %v154_v23, %v152_v21  ;;  %vm552_vm15 = vcmask 521476  }
   0x8   :  { %2730 = vmatpush1.bf16.msra.mxu0 %v2729_v18  ;;  %v2733_v30 = vpack.c.bf16 %v46_v28, %v44_v27  ;;  %v159_v31 = vld [vmem:[%s3985_s3 + $0x78] sm:$0xff]  ;;  %v156_v34 = vld [vmem:[%s3985_s3 + $0x60] sm:$0xff]  ;;  %v158_v35 = vld [vmem:[%s3985_s3 + $0x70] sm:$0xff] }
   0x9   :  { %2742 = vmatpush1.bf16.msra.mxu1 %v3241_v16  ;;  %2732 = vmatprep.subr.bf16.mxu0 %v2731_v26  ;;  %v3280_v33 = vpack.c.bf16 %v159_v31, %v157_v29  ;;  %v38_v36 = vld [vmem:[%s3987_s0] sm:$0xff]  ;;  %v3292_v37 = vpack.c.bf16 %v158_v35, %v156_v34  ;;  %v39_v63 = vld [vmem:[%s3987_s0 + $0x8] sm:$0xff] }
   0xa   :  { %2744 = vmatprep.subr.bf16.mxu1 %v3253_v22  ;;  %v48_v41 = vld [vmem:[%s3988_s2] sm:$0x3] }
   0xb   :  { %v160_v42 = vld [vmem:[%s3989_s4] sm:$0x3]  ;;  %v3327_v43 = vrot.slane %v48_v41, %v3318_v40  ;;  %v3338_v57 = vrot.slane %v48_v41, %v3334_v55 }
   0xc   :  { %2734 = vmatpush1.bf16.msra.mxu0 %v2733_v30  ;;  %v165_v46 = vrot.slane %v160_v42, %v3318_v40  ;;  %v169_v56 = vrot.slane %v160_v42, %v3334_v55  ;;  %v293_v13 = vld [vmem:[%s3989_s4] sm:$0x3] }
   0xd   :  { %2746 = vmatpush1.bf16.msra.mxu1 %v3277_v32  ;;  %2752 = vmatprep.subr.bf16.mxu0 %v3206_v4  ;;  %v298_v14 = vrot.slane %v293_v13, %v3318_v40  ;;  %v302_v25 = vrot.slane %v293_v13, %v3334_v55 }
   0xe   :  { %2748 = vmatprep.subr.bf16.mxu1 %v3280_v33 }
   0xf   :  { %2671 = vmatmul.mubr.msk.f32.vlgmr.msra.gmra.mrb[0].mxu0 %vm60_vm0, %v38_v36 }
  0x10   :  { %2754 = vmatpush1.bf16.msra.mxu0 %v3217_v8  ;;  %137 = vmatprep.mubr.f32.mxu0 %v3132_v3 }
  0x11   :  { %2750 = vmatpush1.bf16.msra.mxu1 %v3292_v37  ;;  %2756 = vmatprep.subr.bf16.mxu0 %v3219_v9 }
  0x12   :  { %2768 = vmatprep.subr.bf16.mxu1 %v3206_v4 }
  0x13   :  { %2672 = vmatmul.mubr.msk.f32.gmra.mrb[2].mxu0 %vm60_vm0, %v39_v63  ;;  %vm554_vm0 = vcmask 783876  }
  0x14   :  { %241 = vmatmul.mubr.f32.vlgmr.msra.gmra.mrb[0].mxu1 %v3132_v3  ;;  %2758 = vmatpush1.bf16.msra.mxu0 %v3241_v16 }
  0x15   :  { %2760 = vmatprep.subr.bf16.mxu0 %v3253_v22  ;;  %2770 = vmatpush1.bf16.msra.mxu1 %v3217_v8 }
  0x16   :  { %2772 = vmatprep.subr.bf16.mxu1 %v3219_v9  ;;  %513 = vmatprep.mubr.f32.mxu1 %v3132_v3 }
  0x17   :  { %371 = vmatprep.mubr.f32.mxu0 %v3132_v3 }
  0x18   :  { %2762 = vmatpush1.bf16.msra.mxu0 %v3277_v32 }
  0x19   :  { %2764 = vmatprep.subr.bf16.mxu0 %v3280_v33  ;;  %2774 = vmatpush1.bf16.msra.mxu1 %v3241_v16 }
  0x1a   :  { %2776 = vmatprep.subr.bf16.mxu1 %v3253_v22 }
  0x1c   :  { %2766 = vmatpush1.bf16.msra.mxu0 %v3292_v37 }
  0x1d   :  { %2778 = vmatpush1.bf16.msra.mxu1 %v3277_v32  ;;  %2784 = vmatprep.subr.bf16.mxu0 %v3206_v4 }
  0x1e   :  { %2780 = vmatprep.subr.bf16.mxu1 %v3280_v33 }
  0x21   :  { %2782 = vmatpush1.bf16.msra.mxu1 %v3292_v37 }
  0x22   :  { %2800 = vmatprep.subr.bf16.mxu1 %v3206_v4 }
  0xe2   :  { %v133_v44 = vpop.f32.mrb[0].mxu0 }
  0xe3   :  { %v135_v45 = vpop.f32.mrb[1].mxu0  ;;  %v3331_v47 = vadd.f32 %v133_v44, %v3327_v43 }
  0xe4   :  { %v3341_v60 = vadd.f32 %v135_v45, %v3338_v57  ;;  %v432_v45 = vld [vmem:[%s3989_s4] sm:$0x3] }
  0xe6   :  { %v3351_v10 = vpop.f32.mrb[2].mxu0 }
  0xe7   :  { %v242_v48 = vpop.f32.mrb[0].mxu1  ;;  %v3353_v11 = vpop.f32.mrb[3].mxu0 }
  0xe8   :  { %v243_v49 = vadd.f32 %v242_v48, %v165_v46  ;;  %v244_v50 = vpop.f32.mrb[1].mxu1  ;;  %v437_v46 = vrot.slane %v432_v45, %v3318_v40 }
  0xe9   :  { %v245_v58 = vadd.f32 %v244_v50, %v169_v56 }
  0xea   :  { %v247_v51 = vadd.f32 %v243_v49, %v3331_v47 }
  0xec   :  { %v2673_v52 = vmul.f32 -1.442695, %v247_v51 }
  0xee   :  { %3028 = vpow2.f32 %v2673_v52 }
  0xf8   :  { %v3029_v53 = vpop.eup %3028 }
  0xf9   :  { %v251_v54 = vadd.f32 1.0, %v3029_v53 }
  0xfb   :  { %3030 = vrcp.f32 %v251_v54 }
 0x105   :  { %v3031_v59 = vpop.eup %3030 }
 0x106   :  { %v254_v61 = vmul.f32 %v3031_v59, %v245_v58  ;;  %v257_v1 = vsub.f32 1.0, %v3031_v59  ;;  %v263_v5 = vmul.f32 0.0, %v3031_v59  ;;  %v441_v58 = vrot.slane %v432_v45, %v3334_v55 }
 0x108   :  { %v255_v62 = vadd.f32 %v254_v61, %v3341_v60 }
 0x10a   :  { %3032 = vtanh.f32 %v255_v62 }
 0x114   :  { %v3033_v0 = vpop.eup %3032 }
 0x115   :  { %259 = vrot.lane.b32.xlu0 %v3033_v0, %s3133_s13 }
 0x187   :  { %v260_v2 = vpop.permute.xlu0 %259 }
 0x188   :  { %v262_v6 = vmul.f32 %v260_v2, %v257_v1 }
 0x18a   :  { %v264_v7 = vadd.f32 %v263_v5, %v262_v6 }
 0x18c   :  { %266 = vrot.lane.b32.xlu0 %v264_v7, %s3133_s13  ;;  %v400_v35 = vrot.slane %v264_v7, 6 }
 0x1fe   :  { %v267_v12 = vpop.permute.xlu0 %266 }
 0x1ff   :  { %270 = vst.msk [vmem:[#allocation2] sm:$0x3] %vm269_vm1, %v267_v12  ;;  %2674 = vmatmul.mubr.msk.f32.vlgmr.msra.gmra.mrb[4].mxu0 %vm3997_vm3, %v267_v12 }
 0x200   :  { %272 = vst.msk [vmem:[#allocation2 + $0xe] sm:$0x3] %vm271_vm2, %v267_v12  ;;  %2786 = vmatpush1.bf16.msra.mxu0 %v3217_v8  ;;  %655 = vmatprep.mubr.f32.mxu0 %v3132_v3 }
 0x201   :  { %274 = vst.msk [vmem:[#allocation2 + $0xe] sm:$0x3] %vm273_vm4, %v264_v7  ;;  %2788 = vmatprep.subr.bf16.mxu0 %v3219_v9 }
 0x202   :  { %276 = vst.msk [vmem:[#allocation2] sm:$0x3] %vm275_vm5, %v264_v7 }
 0x204   :  { %2790 = vmatpush1.bf16.msra.mxu0 %v3241_v16 }
 0x205   :  { %2792 = vmatprep.subr.bf16.mxu0 %v3253_v22 }
 0x208   :  { %2794 = vmatpush1.bf16.msra.mxu0 %v3277_v32 }
 0x209   :  { %2796 = vmatprep.subr.bf16.mxu0 %v3280_v33 }
 0x20c   :  { %2798 = vmatpush1.bf16.msra.mxu0 %v3292_v37 }
 0x20d   :  { %2816 = vmatprep.subr.bf16.mxu0 %v3206_v4 }
 0x2d2   :  { %v373_v15 = vpop.f32.mrb[4].mxu0 }
 0x2d3   :  { %v374_v17 = vadd.f32 %v373_v15, %v298_v14  ;;  %v375_v18 = vpop.f32.mrb[5].mxu0 }
 0x2d4   :  { %v376_v26 = vadd.f32 %v375_v18, %v302_v25 }
 0x2d5   :  { %v379_v19 = vrot.slane %v374_v17, 6  ;;  %v574_v17 = vld [vmem:[%s3989_s4] sm:$0x3] }
 0x2d6   :  { %v389_v27 = vrot.slane %v376_v26, 6  ;;  %v579_v18 = vrot.slane %v574_v17, %v3318_v40 }
 0x2d7   :  { %v381_v20 = vadd.f32 %v379_v19, %v3331_v47 }
 0x2d9   :  { %v2675_v21 = vmul.f32 -1.442695, %v381_v20 }
 0x2db   :  { %3034 = vpow2.f32 %v2675_v21 }
 0x2e5   :  { %v3035_v23 = vpop.eup %3034 }
 0x2e6   :  { %v385_v24 = vadd.f32 1.0, %v3035_v23 }
 0x2e8   :  { %3036 = vrcp.f32 %v385_v24 }
 0x2f2   :  { %v3037_v28 = vpop.eup %3036 }
 0x2f3   :  { %v391_v29 = vmul.f32 %v3037_v28, %v389_v27  ;;  %v394_v34 = vsub.f32 1.0, %v3037_v28  ;;  %v402_v39 = vmul.f32 %v3037_v28, %v400_v35  ;;  %v583_v28 = vrot.slane %v574_v17, %v3334_v55 }
 0x2f5   :  { %v392_v30 = vadd.f32 %v391_v29, %v3341_v60 }
 0x2f7   :  { %3038 = vtanh.f32 %v392_v30 }
 0x301   :  { %v3039_v31 = vpop.eup %3038 }
 0x302   :  { %396 = vrot.lane.b32.xlu1 %v3039_v31, %s3133_s13 }
 0x374   :  { %v397_v36 = vpop.permute.xlu1 %396 }
 0x375   :  { %v399_v38 = vmul.f32 %v397_v36, %v394_v34 }
 0x377   :  { %v3377_v41 = vadd.f32 %v402_v39, %v399_v38 }
 0x379   :  { %v444_v42 = vrot.slane %v3377_v41, 2  ;;  %v542_v5 = vrot.slane %v3377_v41, 6 }
 0x37b   :  { %445 = vrot.lane.b32.xlu1 %v444_v42, %s3133_s13 }
 0x3ed   :  { %v446_v44 = vpop.permute.xlu1 %445 }
 0x3ee   :  { %2676 = vmatmul.mubr.msk.f32.vlgmr.msra.gmra.mrb[2].mxu1 %vm3997_vm3, %v446_v44 }
 0x3ef   :  { %2802 = vmatpush1.bf16.msra.mxu1 %v3217_v8  ;;  %797 = vmatprep.mubr.f32.mxu1 %v3132_v3 }
 0x3f0   :  { %2804 = vmatprep.subr.bf16.mxu1 %v3219_v9 }
 0x3f3   :  { %2806 = vmatpush1.bf16.msra.mxu1 %v3241_v16 }
 0x3f4   :  { %2808 = vmatprep.subr.bf16.mxu1 %v3253_v22 }
 0x3f7   :  { %2810 = vmatpush1.bf16.msra.mxu1 %v3277_v32 }
 0x3f8   :  { %2812 = vmatprep.subr.bf16.mxu1 %v3280_v33 }
 0x3fb   :  { %2814 = vmatpush1.bf16.msra.mxu1 %v3292_v37 }
 0x3fc   :  { %2832 = vmatprep.subr.bf16.mxu1 %v3206_v4 }
 0x4c1   :  { %v515_v48 = vpop.f32.mrb[2].mxu1 }
 0x4c2   :  { %v516_v49 = vadd.f32 %v515_v48, %v437_v46  ;;  %v517_v50 = vpop.f32.mrb[3].mxu1 }
 0x4c3   :  { %v518_v59 = vadd.f32 %v517_v50, %v441_v58  ;;  %v3442_v50 = vadd.f32 %v3351_v10, %v3327_v43 }
 0x4c4   :  { %v521_v51 = vrot.slane %v516_v49, 4 }
 0x4c5   :  { %v531_v61 = vrot.slane %v518_v59, 4 }
 0x4c6   :  { %v523_v52 = vadd.f32 %v521_v51, %v3331_v47 }
 0x4c8   :  { %v2677_v53 = vmul.f32 -1.442695, %v523_v52 }
 0x4ca   :  { %3040 = vpow2.f32 %v2677_v53 }
 0x4d4   :  { %v3041_v54 = vpop.eup %3040 }
 0x4d5   :  { %v527_v56 = vadd.f32 1.0, %v3041_v54 }
 0x4d7   :  { %3042 = vrcp.f32 %v527_v56 }
 0x4e1   :  { %v3043_v62 = vpop.eup %3042 }
 0x4e2   :  { %v533_v63 = vmul.f32 %v3043_v62, %v531_v61  ;;  %v536_v2 = vsub.f32 1.0, %v3043_v62  ;;  %v544_v7 = vmul.f32 %v3043_v62, %v542_v5 }
 0x4e4   :  { %v534_v0 = vadd.f32 %v533_v63, %v3341_v60  ;;  %v3448_v63 = vadd.f32 %v3353_v11, %v3338_v57  ;;  %v847_v57 = vld [vmem:[%s3989_s4] sm:$0x3] }
 0x4e6   :  { %3044 = vtanh.f32 %v534_v0 }
 0x4f0   :  { %v3045_v1 = vpop.eup %3044 }
 0x4f1   :  { %538 = vrot.lane.b32.xlu0 %v3045_v1, %s3133_s13 }
 0x563   :  { %v539_v6 = vpop.permute.xlu0 %538 }
 0x564   :  { %v541_v12 = vmul.f32 %v539_v6, %v536_v2 }
 0x566   :  { %v3400_v13 = vadd.f32 %v544_v7, %v541_v12 }
 0x568   :  { %v586_v14 = vrot.slane %v3400_v13, 4 }
 0x56a   :  { %587 = vrot.lane.b32.xlu1 %v586_v14, %s3133_s13 }
 0x5dc   :  { %v588_v15 = vpop.permute.xlu1 %587 }
 0x5dd   :  { %2678 = vmatmul.mubr.msk.f32.vlgmr.msra.gmra.mrb[6].mxu0 %vm3997_vm3, %v588_v15 }
 0x5de   :  { %2818 = vmatpush1.bf16.msra.mxu0 %v3217_v8  ;;  %925 = vmatprep.mubr.f32.mxu0 %v3132_v3 }
 0x5df   :  { %2820 = vmatprep.subr.bf16.mxu0 %v3219_v9 }
 0x5e2   :  { %2822 = vmatpush1.bf16.msra.mxu0 %v3241_v16 }
 0x5e3   :  { %2824 = vmatprep.subr.bf16.mxu0 %v3253_v22 }
 0x5e6   :  { %2826 = vmatpush1.bf16.msra.mxu0 %v3277_v32 }
 0x5e7   :  { %2828 = vmatprep.subr.bf16.mxu0 %v3280_v33 }
 0x5ea   :  { %2830 = vmatpush1.bf16.msra.mxu0 %v3292_v37 }
 0x5eb   :  { %2848 = vmatprep.subr.bf16.mxu0 %v3206_v4 }
 0x6b0   :  { %v657_v19 = vpop.f32.mrb[6].mxu0 }
 0x6b1   :  { %v658_v20 = vadd.f32 %v657_v19, %v579_v18  ;;  %v659_v21 = vpop.f32.mrb[7].mxu0 }
 0x6b2   :  { %v660_v4 = vadd.f32 %v659_v21, %v583_v28 }
 0x6b3   :  { %v663_v23 = vrot.slane %v658_v20, 2 }
 0x6b4   :  { %v673_v29 = vrot.slane %v660_v4, 2 }
 0x6b5   :  { %v665_v24 = vadd.f32 %v663_v23, %v3331_v47  ;;  %v684_v47 = vrot.slane %v3400_v13, 6 }
 0x6b7   :  { %v2679_v25 = vmul.f32 -1.442695, %v665_v24 }
 0x6b9   :  { %3046 = vpow2.f32 %v2679_v25 }
 0x6c3   :  { %v3047_v26 = vpop.eup %3046 }
 0x6c4   :  { %v669_v27 = vadd.f32 1.0, %v3047_v26 }
 0x6c6   :  { %3048 = vrcp.f32 %v669_v27 }
 0x6d0   :  { %v3049_v30 = vpop.eup %3048 }
 0x6d1   :  { %v675_v31 = vmul.f32 %v3049_v30, %v673_v29  ;;  %v678_v36 = vsub.f32 1.0, %v3049_v30  ;;  %v686_v39 = vmul.f32 %v3049_v30, %v684_v47 }
 0x6d3   :  { %v676_v34 = vadd.f32 %v675_v31, %v3341_v60  ;;  %v716_v60 = vld [vmem:[%s3989_s4] sm:$0x3] }
 0x6d4   :  { %v721_v48 = vrot.slane %v716_v60, %v3318_v40  ;;  %v725_v59 = vrot.slane %v716_v60, %v3334_v55  ;;  %v982_v31 = vld [vmem:[%s3989_s4] sm:$0x3] }
 0x6d5   :  { %3050 = vtanh.f32 %v676_v34  ;;  %v987_v34 = vrot.slane %v982_v31, %v3318_v40  ;;  %v991_v60 = vrot.slane %v982_v31, %v3334_v55  ;;  %v1252_v31 = vld [vmem:[%s3990_s5 + $0x40] sm:$0xff] }
 0x6df   :  { %v3051_v35 = vpop.eup %3050 }
 0x6e0   :  { %680 = vrot.lane.b32.xlu0 %v3051_v35, %s3133_s13 }
 0x752   :  { %v681_v38 = vpop.permute.xlu0 %680 }
 0x753   :  { %v683_v42 = vmul.f32 %v681_v38, %v678_v36 }
 0x755   :  { %v3423_v44 = vadd.f32 %v686_v39, %v683_v42 }
 0x757   :  { %v728_v45 = vrot.slane %v3423_v44, 6 }
 0x759   :  { %729 = vrot.lane.b32.xlu1 %v728_v45, %s3133_s13 }
 0x7cb   :  { %v730_v46 = vpop.permute.xlu1 %729 }
 0x7cc   :  { %2680 = vmatmul.mubr.msk.f32.vlgmr.msra.gmra.mrb[4].mxu1 %vm3997_vm3, %v730_v46 }
 0x7cd   :  { %2834 = vmatpush1.bf16.msra.mxu1 %v3217_v8  ;;  %1063 = vmatprep.mubr.f32.mxu1 %v3132_v3 }
 0x7ce   :  { %2836 = vmatprep.subr.bf16.mxu1 %v3219_v9 }
 0x7d1   :  { %2838 = vmatpush1.bf16.msra.mxu1 %v3241_v16 }
 0x7d2   :  { %2840 = vmatprep.subr.bf16.mxu1 %v3253_v22 }
 0x7d5   :  { %2842 = vmatpush1.bf16.msra.mxu1 %v3277_v32 }
 0x7d6   :  { %2844 = vmatprep.subr.bf16.mxu1 %v3280_v33 }
 0x7d9   :  { %2846 = vmatpush1.bf16.msra.mxu1 %v3292_v37 }
 0x89f   :  { %v799_v49 = vpop.f32.mrb[4].mxu1 }
 0x8a0   :  { %v800_v51 = vadd.f32 %v799_v49, %v721_v48  ;;  %v801_v52 = vpop.f32.mrb[5].mxu1 }
 0x8a1   :  { %v802_v61 = vadd.f32 %v801_v52, %v725_v59 }
 0x8a2   :  { %v804_v53 = vadd.f32 %v800_v51, %v3442_v50 }
 0x8a4   :  { %v2681_v54 = vmul.f32 -1.442695, %v804_v53 }
 0x8a6   :  { %3052 = vpow2.f32 %v2681_v54 }
 0x8b0   :  { %v3053_v56 = vpop.eup %3052 }
 0x8b1   :  { %v808_v58 = vadd.f32 1.0, %v3053_v56 }
 0x8b3   :  { %3054 = vrcp.f32 %v808_v58 }
 0x8bd   :  { %v3055_v62 = vpop.eup %3054 }
 0x8be   :  { %v811_v0 = vmul.f32 %v3055_v62, %v802_v61  ;;  %v814_v1 = vsub.f32 1.0, %v3055_v62  ;;  %v821_v5 = vmul.f32 %v3055_v62, %v728_v45 }
 0x8c0   :  { %v812_v43 = vadd.f32 %v811_v0, %v3448_v63 }
 0x8c2   :  { %3056 = vtanh.f32 %v812_v43 }
 0x8cc   :  { %v3057_v10 = vpop.eup %3056 }
 0x8cd   :  { %816 = vrot.lane.b32.xlu0 %v3057_v10, %s3133_s13 }
 0x93f   :  { %v817_v2 = vpop.permute.xlu0 %816 }
 0x940   :  { %v819_v6 = vmul.f32 %v817_v2, %v814_v1 }
 0x942   :  { %v3452_v7 = vadd.f32 %v821_v5, %v819_v6 }
 0x944   :  { %824 = vrot.lane.b32.xlu1 %v3452_v7, %s3133_s13  ;;  %v954_v25 = vrot.slane %v3452_v7, 6 }
 0x9b6   :  { %v3456_v12 = vpop.permute.xlu1 %824 }
 0x9b7   :  { %2682 = vmatmul.mubr.msk.f32.vlgmr.msra.gmra.mrb[8].mxu0 %vm3997_vm3, %v3456_v12 }
 0x9b8   :  { %2850 = vmatpush1.bf16.msra.mxu0 %v3217_v8  ;;  %1201 = vmatprep.mubr.f32.mxu0 %v3132_v3  ;;  %v852_v8 = vrot.slane %v847_v57, %v3318_v40 }
 0x9b9   :  { %2852 = vmatprep.subr.bf16.mxu0 %v3219_v9 }
 0x9bc   :  { %2854 = vmatpush1.bf16.msra.mxu0 %v3241_v16 }
 0x9bd   :  { %2856 = vmatprep.subr.bf16.mxu0 %v3253_v22 }
 0x9c0   :  { %2858 = vmatpush1.bf16.msra.mxu0 %v3277_v32 }
 0x9c1   :  { %2860 = vmatprep.subr.bf16.mxu0 %v3280_v33  ;;  %v856_v33 = vrot.slane %v847_v57, %v3334_v55 }
 0x9c4   :  { %2862 = vmatpush1.bf16.msra.mxu0 %v3292_v37 }
 0xa8a   :  { %v927_v11 = vpop.f32.mrb[8].mxu0 }
 0xa8b   :  { %v928_v14 = vadd.f32 %v927_v11, %v852_v8  ;;  %v929_v15 = vpop.f32.mrb[9].mxu0 }
 0xa8c   :  { %v930_v37 = vadd.f32 %v929_v15, %v856_v33 }
 0xa8d   :  { %v933_v9 = vrot.slane %v928_v14, 6 }
 0xa8e   :  { %v943_v18 = vrot.slane %v930_v37, 6  ;;  %v1247_v37 = vld [vmem:[%s3990_s5 + $0x18] sm:$0xff] }
 0xa8f   :  { %v935_v16 = vadd.f32 %v933_v9, %v3442_v50 }
 0xa91   :  { %v2683_v17 = vmul.f32 -1.442695, %v935_v16 }
 0xa93   :  { %3058 = vpow2.f32 %v2683_v17 }
 0xa9d   :  { %v3059_v22 = vpop.eup %3058 }
 0xa9e   :  { %v939_v32 = vadd.f32 1.0, %v3059_v22 }
 0xaa0   :  { %3060 = vrcp.f32 %v939_v32 }
 0xaaa   :  { %v3061_v19 = vpop.eup %3060 }
 0xaab   :  { %v945_v20 = vmul.f32 %v3061_v19, %v943_v18  ;;  %v948_v24 = vsub.f32 1.0, %v3061_v19  ;;  %v956_v28 = vmul.f32 %v3061_v19, %v954_v25  ;;  %v1244_v18 = vld [vmem:[%s3990_s5] sm:$0xff] }
 0xaad   :  { %v946_v21 = vadd.f32 %v945_v20, %v3448_v63  ;;  %v1246_v20 = vld [vmem:[%s3990_s5 + $0x10] sm:$0xff] }
 0xaaf   :  { %3062 = vtanh.f32 %v946_v21  ;;  %v1251_v21 = vld [vmem:[%s3990_s5 + $0x38] sm:$0xff] }
 0xab9   :  { %v3063_v23 = vpop.eup %3062 }
 0xaba   :  { %950 = vrot.lane.b32.xlu0 %v3063_v23, %s3133_s13 }
 0xb2c   :  { %v951_v26 = vpop.permute.xlu0 %950 }
 0xb2d   :  { %v953_v27 = vmul.f32 %v951_v26, %v948_v24  ;;  %v2865_v24 = vpack.c.bf16 %v1246_v20, %v1244_v18  ;;  %v1248_v26 = vld [vmem:[%s3990_s5 + $0x20] sm:$0xff]  ;;  %v1378_v20 = vld [vmem:[%s3991_s7 + $0x68] sm:$0xff] }
 0xb2f   :  { %v3477_v4 = vadd.f32 %v956_v28, %v953_v27  ;;  %v1250_v27 = vld [vmem:[%s3990_s5 + $0x30] sm:$0xff]  ;;  %v1253_v28 = vld [vmem:[%s3990_s5 + $0x48] sm:$0xff] }
 0xb31   :  { %v994_v29 = vrot.slane %v3477_v4, 2  ;;  %v1092_v58 = vrot.slane %v3477_v4, 6 }
 0xb33   :  { %995 = vrot.lane.b32.xlu1 %v994_v29, %s3133_s13  ;;  %v1255_v29 = vld [vmem:[%s3990_s5 + $0x58] sm:$0xff] }
 0xba5   :  { %v996_v30 = vpop.permute.xlu1 %995 }
 0xba6   :  { %2684 = vmatmul.mubr.msk.f32.vlgmr.msra.gmra.mrb[6].mxu1 %vm3997_vm3, %v996_v30  ;;  %v2869_v30 = vpack.c.bf16 %v1250_v27, %v1248_v26  ;;  %v1379_v27 = vld [vmem:[%s3991_s7 + $0x70] sm:$0xff] }
 0xba7   :  { %1352 = vmatprep.mubr.f32.mxu1 %v3132_v3 }
 0xc79   :  { %v1065_v35 = vpop.f32.mrb[6].mxu1 }
 0xc7a   :  { %v1066_v36 = vadd.f32 %v1065_v35, %v987_v34  ;;  %v1067_v47 = vpop.f32.mrb[7].mxu1  ;;  %v2871_v34 = vpack.c.bf16 %v1255_v29, %v1253_v28  ;;  %v1254_v35 = vld [vmem:[%s3990_s5 + $0x50] sm:$0xff]  ;;  %v1272_v28 = vld [vmem:[%s3990_s5 + $0xe0] sm:$0xff] }
 0xc7b   :  { %v1068_v48 = vadd.f32 %v1067_v47, %v991_v60  ;;  %v1368_v47 = vld [vmem:[%s3991_s7 + $0x18] sm:$0xff]  ;;  %v2873_v60 = vpack.c.bf16 %v1254_v35, %v1252_v31  ;;  %v1274_v29 = vld [vmem:[%s3990_s5 + $0xf0] sm:$0xff] }
 0xc7c   :  { %v1071_v38 = vrot.slane %v1066_v36, 4  ;;  %v1366_v36 = vld [vmem:[%s3991_s7 + $0x8] sm:$0xff]  ;;  %v2893_v31 = vpack.c.bf16 %v1274_v29, %v1272_v28 }
 0xc7d   :  { %v1081_v49 = vrot.slane %v1068_v48, 4  ;;  %v1256_v48 = vld [vmem:[%s3990_s5 + $0x60] sm:$0xff] }
 0xc7e   :  { %v1073_v39 = vadd.f32 %v1071_v38, %v3442_v50  ;;  %v1257_v38 = vld [vmem:[%s3990_s5 + $0x68] sm:$0xff] }
 0xc80   :  { %v2685_v42 = vmul.f32 -1.442695, %v1073_v39  ;;  %v1259_v39 = vld [vmem:[%s3990_s5 + $0x78] sm:$0xff] }
 0xc82   :  { %3064 = vpow2.f32 %v2685_v42  ;;  %v3589_v42 = vpack.c.bf16 %v1368_v47, %v1366_v36 }
 0xc84   :  { %2896 = vmatprep.subr.bf16.mxu0 %v3589_v42 }
 0xc8c   :  { %v3065_v45 = vpop.eup %3064 }
 0xc8d   :  { %v1077_v46 = vadd.f32 1.0, %v3065_v45  ;;  %v1365_v45 = vld [vmem:[%s3991_s7] sm:$0xff] }
 0xc8f   :  { %3066 = vrcp.f32 %v1077_v46  ;;  %v1367_v46 = vld [vmem:[%s3991_s7 + $0x10] sm:$0xff] }
 0xc99   :  { %v3067_v51 = vpop.eup %3066 }
 0xc9a   :  { %v1083_v52 = vmul.f32 %v3067_v51, %v1081_v49  ;;  %v1086_v56 = vsub.f32 1.0, %v3067_v51  ;;  %v1094_v61 = vmul.f32 %v3067_v51, %v1092_v58  ;;  %v3603_v49 = vpack.c.bf16 %v1367_v46, %v1365_v45  ;;  %v1370_v51 = vld [vmem:[%s3991_s7 + $0x28] sm:$0xff]  ;;  %v1369_v58 = vld [vmem:[%s3991_s7 + $0x20] sm:$0xff] }
 0xc9c   :  { %v1084_v53 = vadd.f32 %v1083_v52, %v3448_v63  ;;  %v1372_v52 = vld [vmem:[%s3991_s7 + $0x38] sm:$0xff] }
 0xc9e   :  { %3068 = vtanh.f32 %v1084_v53  ;;  %v2875_v53 = vpack.c.bf16 %v1259_v39, %v1257_v38 }
 0xca8   :  { %v3069_v54 = vpop.eup %3068 }
 0xca9   :  { %1088 = vrot.lane.b32.xlu0 %v3069_v54, %s3133_s13  ;;  %v1258_v54 = vld [vmem:[%s3990_s5 + $0x70] sm:$0xff] }
 0xd1b   :  { %v1089_v59 = vpop.permute.xlu0 %1088 }
 0xd1c   :  { %v1091_v62 = vmul.f32 %v1089_v59, %v1086_v56  ;;  %v3614_v56 = vpack.c.bf16 %v1372_v52, %v1370_v51  ;;  %v1371_v59 = vld [vmem:[%s3991_s7 + $0x30] sm:$0xff]  ;;  %v1276_v51 = vld [vmem:[%s3993_s6] sm:$0x3] }
 0xd1e   :  { %v3492_v0 = vadd.f32 %v1094_v61, %v1091_v62  ;;  %v1261_v61 = vld [vmem:[%s3990_s5 + $0x88] sm:$0xff]  ;;  %v1263_v62 = vld [vmem:[%s3990_s5 + $0x98] sm:$0xff] }
 0xd20   :  { %v1132_v43 = vrot.slane %v3492_v0, 4  ;;  %v1230_v35 = vrot.slane %v3492_v0, 6 }
 0xd22   :  { %1133 = vrot.lane.b32.xlu1 %v1132_v43, %s3133_s13  ;;  %v3629_v43 = vpack.c.bf16 %v1371_v59, %v1369_v58 }
 0xd26   :  { %405 = vrot.lane.b32.xlu1 %v3377_v41, %s3133_s13 }
 0xd2a   :  { %689 = vrot.lane.b32.xlu1 %v3423_v44, %s3133_s13 }
 0xd2e   :  { %1097 = vrot.lane.b32.xlu1 %v3492_v0, %s3133_s13 }
 0xd94   :  { %v1134_v10 = vpop.permute.xlu1 %1133 }
 0xd95   :  { %2686 = vmatmul.mubr.msk.f32.vlgmr.msra.gmra.mrb[10].mxu0 %vm3997_vm3, %v1134_v10  ;;  %vm556_vm3 = vcmask 1046276   ;;  %v2877_v10 = vpack.c.bf16 %v1258_v54, %v1256_v48  ;;  %v1381_v48 = vld [vmem:[%s3992_s8] sm:$0x3] }
 0xd96   :  { %1457 = vmatprep.mubr.f32.mxu0 %v3132_v3  ;;  %2898 = vmatpush1.bf16.msra.mxu0 %v3603_v49  ;;  %v1386_v52 = vrot.slane %v1381_v48, %v3318_v40 }
 0xd97   :  { %2900 = vmatprep.subr.bf16.mxu0 %v3614_v56 }
 0xd98   :  { %v406_v1 = vpop.permute.xlu1 %405 }
 0xd99   :  { %409 = vst.msk [vmem:[#allocation2] sm:$0xc] %vm408_vm6, %v406_v1 }
 0xd9a   :  { %411 = vst.msk [vmem:[#allocation2 + $0xa] sm:$0xc] %vm410_vm7, %v406_v1  ;;  %v2879_v1 = vpack.c.bf16 %v1263_v62, %v1261_v61  ;;  %2902 = vmatpush1.bf16.msra.mxu0 %v3629_v43 }
 0xd9b   :  { %413 = vst.msk [vmem:[#allocation2 + $0xa] sm:$0xc] %vm412_vm8, %v3377_v41 }
 0xd9c   :  { %415 = vst.msk [vmem:[#allocation2] sm:$0xc] %vm414_vm9, %v3377_v41  ;;  %v690_v2 = vpop.permute.xlu1 %689 }
 0xd9d   :  { %693 = vst.msk [vmem:[#allocation2] sm:$0xc0] %vm692_vm10, %v690_v2 }
 0xd9e   :  { %695 = vst.msk [vmem:[#allocation2 + $0x2] sm:$0xc0] %vm694_vm11, %v690_v2  ;;  %v1260_v2 = vld [vmem:[%s3990_s5 + $0x80] sm:$0xff] }
 0xd9f   :  { %697 = vst.msk [vmem:[#allocation2 + $0x2] sm:$0xc0] %vm696_vm12, %v3423_v44 }
 0xda0   :  { %699 = vst.msk [vmem:[#allocation2] sm:$0xc0] %vm698_vm13, %v3423_v44  ;;  %v1098_v41 = vpop.permute.xlu1 %1097  ;;  %v1120_v44 = vld [vmem:[%s3989_s4] sm:$0x3] }
 0xda1   :  { %827 = vst.msk [vmem:[#allocation2 + $0x8] sm:$0x3] %vm269_vm1, %v3456_v12  ;;  %v1125_v5 = vrot.slane %v1120_v44, %v3318_v40  ;;  %v1129_v9 = vrot.slane %v1120_v44, %v3334_v55  ;;  %v1265_v44 = vld [vmem:[%s3990_s5 + $0xa8] sm:$0xff]  ;;  %vm1486_vm1 = vcmask 253952  }
 0xda2   :  { %828 = vst.msk [vmem:[#allocation2 + $0x6] sm:$0x3] %vm271_vm2, %v3456_v12  ;;  %vm1488_vm2 = vcmask 516352  }
 0xda3   :  { %829 = vst.msk [vmem:[#allocation2 + $0x6] sm:$0x3] %vm273_vm4, %v3452_v7  ;;  %vm1492_vm4 = vcmask 517377  }
 0xda4   :  { %830 = vst.msk [vmem:[#allocation2 + $0x8] sm:$0x3] %vm275_vm5, %v3452_v7  ;;  %vm3998_vm5 = vcmask 523264  }
 0xda5   :  { %1100 = vst.msk [vmem:[#allocation2 + $0x8] sm:$0x30] %vm550_vm14, %v1098_v41 }
 0xda6   :  { %1101 = vst.msk [vmem:[#allocation2 - $0x2] sm:$0x30] %vm552_vm15, %v1098_v41  ;;  %v1262_v41 = vld [vmem:[%s3990_s5 + $0x90] sm:$0xff] }
 0xda7   :  { %1102 = vst.msk [vmem:[#allocation2 - $0x2] sm:$0x30] %vm554_vm0, %v3492_v0 }
 0xda8   :  { %1103 = vst.msk [vmem:[#allocation2 + $0x8] sm:$0x30] %vm556_vm3, %v3492_v0 }
 0xe68   :  { %v1203_v6 = vpop.f32.mrb[10].mxu0 }
 0xe69   :  { %v1204_v12 = vadd.f32 %v1203_v6, %v1125_v5  ;;  %v1205_v57 = vpop.f32.mrb[11].mxu0  ;;  %v1267_v5 = vld [vmem:[%s3990_s5 + $0xb8] sm:$0xff]  ;;  %v2881_v6 = vpack.c.bf16 %v1262_v41, %v1260_v2 }
 0xe6a   :  { %v1206_v16 = vadd.f32 %v1205_v57, %v1129_v9  ;;  %v1264_v57 = vld [vmem:[%s3990_s5 + $0xa0] sm:$0xff]  ;;  %v1269_v9 = vld [vmem:[%s3990_s5 + $0xc8] sm:$0xff] }
 0xe6b   :  { %v1209_v7 = vrot.slane %v1204_v12, 2  ;;  %v2883_v12 = vpack.c.bf16 %v1267_v5, %v1265_v44 }
 0xe6c   :  { %v1219_v17 = vrot.slane %v1206_v16, 2  ;;  %v1271_v16 = vld [vmem:[%s3990_s5 + $0xd8] sm:$0xff] }
 0xe6d   :  { %v1211_v8 = vadd.f32 %v1209_v7, %v3442_v50  ;;  %v1245_v50 = vld [vmem:[%s3990_s5 + $0x8] sm:$0xff]  ;;  %v1266_v7 = vld [vmem:[%s3990_s5 + $0xb0] sm:$0xff] }
 0xe6e   :  { %v2863_v19 = vpack.c.bf16 %v1247_v37, %v1245_v50  ;;  %v1268_v50 = vld [vmem:[%s3990_s5 + $0xc0] sm:$0xff]  ;;  %v1270_v37 = vld [vmem:[%s3990_s5 + $0xd0] sm:$0xff] }
 0xe6f   :  { %v2687_v11 = vmul.f32 -1.442695, %v1211_v8  ;;  %v2885_v8 = vpack.c.bf16 %v1266_v7, %v1264_v57  ;;  %v1390_v57 = vrot.slane %v1381_v48, %v3334_v55 }
 0xe70   :  { %2864 = vmatprep.subr.bf16.mxu1 %v2863_v19  ;;  %v2889_v19 = vpack.c.bf16 %v1270_v37, %v1268_v50 }
 0xe71   :  { %3070 = vpow2.f32 %v2687_v11  ;;  %2866 = vmatpush1.bf16.msra.mxu1 %v2865_v24  ;;  %v1374_v11 = vld [vmem:[%s3991_s7 + $0x48] sm:$0xff]  ;;  %v1275_v24 = vld [vmem:[%s3990_s5 + $0xf8] sm:$0xff] }
 0xe7b   :  { %v3071_v14 = vpop.eup %3070 }
 0xe7c   :  { %v1215_v15 = vadd.f32 1.0, %v3071_v14  ;;  %v1376_v14 = vld [vmem:[%s3991_s7 + $0x58] sm:$0xff] }
 0xe7e   :  { %3072 = vrcp.f32 %v1215_v15  ;;  %v3659_v15 = vpack.c.bf16 %v1376_v14, %v1374_v11 }
 0xe80   :  { %2904 = vmatprep.subr.bf16.mxu0 %v3659_v15 }
 0xe88   :  { %v3536_v22 = vpop.eup %3072 }
 0xe89   :  { %v1221_v32 = vmul.f32 %v3536_v22, %v1219_v17  ;;  %v1373_v17 = vld [vmem:[%s3991_s7 + $0x40] sm:$0xff]  ;;  %v1232_v47 = vmul.f32 %v3536_v22, %v1230_v35 }
 0xe8b   :  { %v1222_v33 = vadd.f32 %v1221_v32, %v3448_v63  ;;  %v1249_v63 = vld [vmem:[%s3990_s5 + $0x28] sm:$0xff]  ;;  %v2887_v32 = vpack.c.bf16 %v1271_v16, %v1269_v9 }
 0xe8c   :  { %v2867_v25 = vpack.c.bf16 %v1251_v21, %v1249_v63  ;;  %v1380_v63 = vld [vmem:[%s3991_s7 + $0x78] sm:$0xff] }
 0xe8d   :  { %3074 = vtanh.f32 %v1222_v33  ;;  %v1375_v33 = vld [vmem:[%s3991_s7 + $0x50] sm:$0xff]  ;;  %v3689_v21 = vpack.c.bf16 %v1380_v63, %v1378_v20  ;;  %v1510_v20 = vld [vmem:[%s3992_s8] sm:$0x3] }
 0xe8e   :  { %2868 = vmatprep.subr.bf16.mxu1 %v2867_v25  ;;  %v3680_v18 = vpack.c.bf16 %v1375_v33, %v1373_v17  ;;  %v1377_v25 = vld [vmem:[%s3991_s7 + $0x60] sm:$0xff]  ;;  %v1515_v63 = vrot.slane %v1510_v20, %v3318_v40 }
 0xe8f   :  { %2870 = vmatpush1.bf16.msra.mxu1 %v2869_v30  ;;  %v3710_v30 = vpack.c.bf16 %v1379_v27, %v1377_v25 }
 0xe90   :  { %2872 = vmatprep.subr.bf16.mxu1 %v2871_v34  ;;  %2906 = vmatpush1.bf16.msra.mxu0 %v3680_v18  ;;  %v1224_v34 = vsub.f32 1.0, %v3536_v22 }
 0xe91   :  { %2908 = vmatprep.subr.bf16.mxu0 %v3689_v21 }
 0xe93   :  { %2874 = vmatpush1.bf16.msra.mxu1 %v2873_v60 }
 0xe94   :  { %2876 = vmatprep.subr.bf16.mxu1 %v2875_v53  ;;  %2910 = vmatpush1.bf16.msra.mxu0 %v3710_v30  ;;  %v1281_v53 = vrot.slane %v1276_v51, %v3318_v40 }
 0xe95   :  { %2912 = vmatprep.subr.bf16.mxu0 %v3589_v42 }
 0xe97   :  { %v3075_v23 = vpop.eup %3074  ;;  %2878 = vmatpush1.bf16.msra.mxu1 %v2877_v10  ;;  %1458 = vmatmul.mubr.f32.vlgmr.msra.gmra.mrb[12].mxu0 %v3132_v3  ;;  %v1285_v10 = vrot.slane %v1276_v51, %v3334_v55 }
 0xe98   :  { %1226 = vrot.lane.b32.xlu0 %v3075_v23, %s3133_s13  ;;  %2880 = vmatprep.subr.bf16.mxu1 %v2879_v1  ;;  %v1273_v23 = vld [vmem:[%s3990_s5 + $0xe8] sm:$0xff] }
 0xe99   :  { %v2891_v26 = vpack.c.bf16 %v1275_v24, %v1273_v23  ;;  %2914 = vmatpush1.bf16.msra.mxu0 %v3603_v49  ;;  %1588 = vmatprep.mubr.f32.mxu0 %v3132_v3 }
 0xe9a   :  { %2916 = vmatprep.subr.bf16.mxu0 %v3614_v56 }
 0xe9b   :  { %2882 = vmatpush1.bf16.msra.mxu1 %v2881_v6 }
 0xe9c   :  { %547 = vrot.lane.b32.xlu0 %v3400_v13, %s3133_s13  ;;  %2884 = vmatprep.subr.bf16.mxu1 %v2883_v12 }
 0xe9d   :  { %2918 = vmatpush1.bf16.msra.mxu0 %v3629_v43 }
 0xe9e   :  { %2920 = vmatprep.subr.bf16.mxu0 %v3659_v15 }
 0xe9f   :  { %2886 = vmatpush1.bf16.msra.mxu1 %v2885_v8 }
 0xea0   :  { %959 = vrot.lane.b32.xlu0 %v3477_v4, %s3133_s13  ;;  %2888 = vmatprep.subr.bf16.mxu1 %v2887_v32 }
 0xea1   :  { %2922 = vmatpush1.bf16.msra.mxu0 %v3680_v18 }
 0xea2   :  { %2924 = vmatprep.subr.bf16.mxu0 %v3689_v21 }
 0xea3   :  { %2890 = vmatpush1.bf16.msra.mxu1 %v2889_v19 }
 0xea4   :  { %2892 = vmatprep.subr.bf16.mxu1 %v2891_v26 }
 0xea5   :  { %2926 = vmatpush1.bf16.msra.mxu0 %v3710_v30 }
 0xea6   :  { %2944 = vmatprep.subr.bf16.mxu0 %v3589_v42 }
 0xea7   :  { %2894 = vmatpush1.bf16.msra.mxu1 %v2893_v31 }
 0xea8   :  { %2928 = vmatprep.subr.bf16.mxu1 %v3589_v42 }
 0xf0a   :  { %v1227_v36 = vpop.permute.xlu0 %1226 }
 0xf0b   :  { %v1229_v38 = vmul.f32 %v1227_v36, %v1224_v34  ;;  %v1519_v34 = vrot.slane %v1510_v20, %v3334_v55 }
 0xf0d   :  { %v1233_v39 = vadd.f32 %v1232_v47, %v1229_v38 }
 0xf0e   :  { %v548_v45 = vpop.permute.xlu0 %547 }
 0xf0f   :  { %551 = vst.msk [vmem:[#allocation2] sm:$0x30] %vm550_vm14, %v548_v45  ;;  %1235 = vrot.lane.b32.xlu0 %v1233_v39, %s3133_s13  ;;  %vm1629_vm14 = vcmask 257027  }
 0xf10   :  { %553 = vst.msk [vmem:[#allocation2 + $0x6] sm:$0x30] %vm552_vm15, %v548_v45  ;;  %vm1631_vm15 = vcmask 519427  }
 0xf11   :  { %555 = vst.msk [vmem:[#allocation2 + $0x6] sm:$0x30] %vm554_vm0, %v3400_v13  ;;  %vm1909_vm0 = vcmask 260102  }
 0xf12   :  { %557 = vst.msk [vmem:[#allocation2] sm:$0x30] %vm556_vm3, %v3400_v13  ;;  %v960_v0 = vpop.permute.xlu0 %959  ;;  %vm1490_vm3 = vcmask 254977  }
 0xf13   :  { %962 = vst.msk [vmem:[#allocation2 + $0x8] sm:$0xc] %vm408_vm6, %v960_v0  ;;  %vm3999_vm6 = vmmov %vm3998_vm5 }
 0xf14   :  { %963 = vst.msk [vmem:[#allocation2 + $0x2] sm:$0xc] %vm410_vm7, %v960_v0  ;;  %vm4000_vm7 = vmmov %vm3998_vm5 }
 0xf15   :  { %964 = vst.msk [vmem:[#allocation2 + $0x2] sm:$0xc] %vm412_vm8, %v3477_v4  ;;  %vm4001_vm8 = vmmov %vm3998_vm5 }
 0xf16   :  { %965 = vst.msk [vmem:[#allocation2 + $0x8] sm:$0xc] %vm414_vm9, %v3477_v4  ;;  %vm4002_vm9 = vmmov %vm3998_vm5 }
 0xf6a   :  { %v1459_v46 = vpop.f32.mrb[12].mxu0 }
 0xf6b   :  { %v1461_v60 = vpop.f32.mrb[13].mxu0  ;;  %v1460_v54 = vadd.f32 %v1459_v46, %v1386_v52  ;;  %v1649_v52 = vld [vmem:[%s3992_s8] sm:$0x3] }
 0xf6c   :  { %v1462_v7 = vadd.f32 %v1461_v60, %v1390_v57 }
 0xf81   :  { %v1236_v13 = vpop.permute.xlu0 %1235 }
 0xf82   :  { %1238 = vst.msk [vmem:[#allocation2 + $0x8] sm:$0xc0] %vm692_vm10, %v1236_v13  ;;  %vm4003_vm10 = vmmov %vm3998_vm5 }
 0xf83   :  { %1239 = vst.msk [vmem:[#allocation2 - $0x6] sm:$0xc0] %vm694_vm11, %v1236_v13  ;;  %vm4004_vm11 = vmmov %vm3998_vm5 }
 0xf84   :  { %1240 = vst.msk [vmem:[#allocation2 - $0x6] sm:$0xc0] %vm696_vm12, %v1233_v39  ;;  %vm1625_vm12 = vcmask 256002  }
 0xf85   :  { %1241 = vst.msk [vmem:[#allocation2 + $0x8] sm:$0xc0] %vm698_vm13, %v1233_v39  ;;  %vm1627_vm13 = vcmask 518402  }
 0xf8b   :  { %v1242_v22 = vld [vmem:[#allocation2] sm:$0xff] }
 0xf8c   :  { %1353 = vmatmul.mubr.f32.vlgmr.msra.gmra.mrb[8].mxu1 %v1242_v22  ;;  %v1243_v4 = vld [vmem:[#allocation2 + $0x8] sm:$0xff] }
 0xf8d   :  { %1358 = vmatprep.mubr.f32.mxu1 %v3132_v3  ;;  %2930 = vmatpush1.bf16.msra.mxu1 %v3603_v49 }
 0xf8e   :  { %2932 = vmatprep.subr.bf16.mxu1 %v3614_v56 }
 0xf90   :  { %1359 = vmatmul.mubr.f32.gmra.mrb[10].mxu1 %v1243_v4 }
 0xf91   :  { %2934 = vmatpush1.bf16.msra.mxu1 %v3629_v43  ;;  %1730 = vmatprep.mubr.f32.mxu1 %v3132_v3 }
 0xf92   :  { %2936 = vmatprep.subr.bf16.mxu1 %v3659_v15 }
 0xf95   :  { %2938 = vmatpush1.bf16.msra.mxu1 %v3680_v18 }
 0xf96   :  { %2940 = vmatprep.subr.bf16.mxu1 %v3689_v21 }
 0xf99   :  { %2942 = vmatpush1.bf16.msra.mxu1 %v3710_v30 }
 0xf9a   :  { %2960 = vmatprep.subr.bf16.mxu1 %v3589_v42 }
0x105f   :  { %v1354_v58 = vpop.f32.mrb[8].mxu1 }
0x1060   :  { %v3763_v59 = vadd.f32 %v1354_v58, %v1281_v53  ;;  %v1356_v61 = vpop.f32.mrb[9].mxu1 }
0x1061   :  { %v3772_v14 = vadd.f32 %v1356_v61, %v1285_v10 }
0x1062   :  { %v1464_v62 = vadd.f32 %v1460_v54, %v3763_v59 }
0x1063   :  { %v1360_v1 = vpop.f32.mrb[10].mxu1 }
0x1064   :  { %v2688_v2 = vmul.f32 -1.442695, %v1464_v62  ;;  %v3767_v41 = vadd.f32 %v1360_v1, %v1281_v53  ;;  %v1362_v44 = vpop.f32.mrb[11].mxu1  ;;  %v1654_v53 = vrot.slane %v1649_v52, %v3318_v40 }
0x1065   :  { %v3769_v5 = vadd.f32 %v1362_v44, %v1285_v10 }
0x1066   :  { %3076 = vpow2.f32 %v2688_v2 }
0x1070   :  { %v3077_v6 = vpop.eup %3076 }
0x1071   :  { %v1468_v12 = vadd.f32 1.0, %v3077_v6  ;;  %v1658_v6 = vrot.slane %v1649_v52, %v3334_v55 }
0x1073   :  { %3078 = vrcp.f32 %v1468_v12 }
0x107d   :  { %v3079_v8 = vpop.eup %3078 }
0x107e   :  { %v1471_v11 = vmul.f32 %v3079_v8, %v1462_v7  ;;  %v1474_v17 = vsub.f32 1.0, %v3079_v8  ;;  %v1480_v33 = vmul.f32 0.0, %v3079_v8 }
0x1080   :  { %v1472_v9 = vadd.f32 %v1471_v11, %v3772_v14 }
0x1082   :  { %3080 = vtanh.f32 %v1472_v9 }
0x108c   :  { %v3081_v16 = vpop.eup %3080 }
0x108d   :  { %1476 = vrot.lane.b32.xlu1 %v3081_v16, %s3133_s13 }
0x10ff   :  { %v1477_v32 = vpop.permute.xlu1 %1476 }
0x1100   :  { %v1479_v50 = vmul.f32 %v1477_v32, %v1474_v17 }
0x1102   :  { %v1481_v37 = vadd.f32 %v1480_v33, %v1479_v50 }
0x1104   :  { %1483 = vrot.lane.b32.xlu0 %v1481_v37, %s3133_s13  ;;  %v1617_v36 = vrot.slane %v1481_v37, 6 }
0x1176   :  { %v1484_v19 = vpop.permute.xlu0 %1483 }
0x1177   :  { %1487 = vst.msk [vmem:[#allocation2] sm:$0x1] %vm1486_vm1, %v1484_v19  ;;  %2689 = vmatmul.mubr.msk.f32.vlgmr.msra.gmra.mrb[14].mxu0 %vm3998_vm5, %v1484_v19  ;;  %vm1911_vm5 = vcmask 522502  }
0x1178   :  { %1489 = vst.msk [vmem:[#allocation2 + $0x7] sm:$0x1] %vm1488_vm2, %v1484_v19  ;;  %2946 = vmatpush1.bf16.msra.mxu0 %v3603_v49  ;;  %1872 = vmatprep.mubr.f32.mxu0 %v3132_v3 }
0x1179   :  { %1491 = vst.msk [vmem:[#allocation2 + $0x7] sm:$0x2] %vm1490_vm3, %v1484_v19  ;;  %2948 = vmatprep.subr.bf16.mxu0 %v3614_v56 }
0x117a   :  { %1493 = vst.msk [vmem:[#allocation2 + $0xe] sm:$0x2] %vm1492_vm4, %v1484_v19 }
0x117c   :  { %2950 = vmatpush1.bf16.msra.mxu0 %v3629_v43 }
0x117d   :  { %2952 = vmatprep.subr.bf16.mxu0 %v3659_v15 }
0x1180   :  { %2954 = vmatpush1.bf16.msra.mxu0 %v3680_v18 }
0x1181   :  { %2956 = vmatprep.subr.bf16.mxu0 %v3689_v21 }
0x1184   :  { %2958 = vmatpush1.bf16.msra.mxu0 %v3710_v30 }
0x1185   :  { %2976 = vmatprep.subr.bf16.mxu0 %v3589_v42 }
0x124a   :  { %v1590_v23 = vpop.f32.mrb[14].mxu0 }
0x124b   :  { %v1591_v24 = vadd.f32 %v1590_v23, %v1515_v63  ;;  %v1592_v25 = vpop.f32.mrb[15].mxu0  ;;  %v1791_v63 = vld [vmem:[%s3992_s8] sm:$0x3] }
0x124c   :  { %v1593_v35 = vadd.f32 %v1592_v25, %v1519_v34  ;;  %v1796_v23 = vrot.slane %v1791_v63, %v3318_v40 }
0x124d   :  { %v1596_v26 = vrot.slane %v1591_v24, 6 }
0x124e   :  { %v1606_v47 = vrot.slane %v1593_v35, 6  ;;  %v1800_v35 = vrot.slane %v1791_v63, %v3334_v55 }
0x124f   :  { %v1598_v27 = vadd.f32 %v1596_v26, %v3763_v59 }
0x1251   :  { %v2690_v28 = vmul.f32 -1.442695, %v1598_v27 }
0x1253   :  { %3082 = vpow2.f32 %v2690_v28 }
0x125d   :  { %v3083_v29 = vpop.eup %3082 }
0x125e   :  { %v1602_v31 = vadd.f32 1.0, %v3083_v29 }
0x1260   :  { %3084 = vrcp.f32 %v1602_v31 }
0x126a   :  { %v3085_v38 = vpop.eup %3084 }
0x126b   :  { %v1608_v39 = vmul.f32 %v3085_v38, %v1606_v47  ;;  %v1619_v45 = vmul.f32 %v3085_v38, %v1617_v36  ;;  %v1611_v22 = vsub.f32 1.0, %v3085_v38 }
0x126d   :  { %v1609_v0 = vadd.f32 %v1608_v39, %v3772_v14 }
0x126f   :  { %3086 = vtanh.f32 %v1609_v0 }
0x1279   :  { %v3087_v13 = vpop.eup %3086 }
0x127a   :  { %1613 = vrot.lane.b32.xlu1 %v3087_v13, %s3133_s13 }
0x12ec   :  { %v1614_v4 = vpop.permute.xlu1 %1613 }
0x12ed   :  { %v1616_v46 = vmul.f32 %v1614_v4, %v1611_v22 }
0x12ef   :  { %v3799_v60 = vadd.f32 %v1619_v45, %v1616_v46 }
0x12f1   :  { %v1661_v48 = vrot.slane %v3799_v60, 2  ;;  %v1759_v17 = vrot.slane %v3799_v60, 6 }
0x12f3   :  { %1662 = vrot.lane.b32.xlu0 %v1661_v48, %s3133_s13 }
0x1365   :  { %v1663_v51 = vpop.permute.xlu0 %1662 }
0x1366   :  { %2691 = vmatmul.mubr.msk.f32.vlgmr.msra.gmra.mrb[12].mxu1 %vm3999_vm6, %v1663_v51  ;;  %vm1913_vm6 = vcmask 261127  }
0x1367   :  { %2962 = vmatpush1.bf16.msra.mxu1 %v3603_v49  ;;  %2014 = vmatprep.mubr.f32.mxu1 %v3132_v3 }
0x1368   :  { %2964 = vmatprep.subr.bf16.mxu1 %v3614_v56 }
0x136b   :  { %2966 = vmatpush1.bf16.msra.mxu1 %v3629_v43 }
0x136c   :  { %2968 = vmatprep.subr.bf16.mxu1 %v3659_v15 }
0x136f   :  { %2970 = vmatpush1.bf16.msra.mxu1 %v3680_v18 }
0x1370   :  { %2972 = vmatprep.subr.bf16.mxu1 %v3689_v21 }
0x1373   :  { %2974 = vmatpush1.bf16.msra.mxu1 %v3710_v30 }
0x1374   :  { %2992 = vmatprep.subr.bf16.mxu1 %v3589_v42 }
0x1439   :  { %v1732_v54 = vpop.f32.mrb[12].mxu1 }
0x143a   :  { %v1733_v58 = vadd.f32 %v1732_v54, %v1654_v53  ;;  %v1734_v61 = vpop.f32.mrb[13].mxu1 }
0x143b   :  { %v1735_v12 = vadd.f32 %v1734_v61, %v1658_v6 }
0x143c   :  { %v1738_v62 = vrot.slane %v1733_v58, 4 }
0x143d   :  { %v1748_v57 = vrot.slane %v1735_v12, 4 }
0x143e   :  { %v1740_v10 = vadd.f32 %v1738_v62, %v3763_v59 }
0x1440   :  { %v2692_v1 = vmul.f32 -1.442695, %v1740_v10 }
0x1442   :  { %3088 = vpow2.f32 %v2692_v1 }
0x144c   :  { %v3089_v2 = vpop.eup %3088 }
0x144d   :  { %v1744_v44 = vadd.f32 1.0, %v3089_v2 }
0x144f   :  { %3090 = vrcp.f32 %v1744_v44 }
0x1459   :  { %v3091_v7 = vpop.eup %3090 }
0x145a   :  { %v1750_v8 = vmul.f32 %v3091_v7, %v1748_v57  ;;  %v1753_v16 = vsub.f32 1.0, %v3091_v7  ;;  %v1761_v33 = vmul.f32 %v3091_v7, %v1759_v17 }
0x145c   :  { %v1751_v11 = vadd.f32 %v1750_v8, %v3772_v14 }
0x145e   :  { %3092 = vtanh.f32 %v1751_v11 }
0x1468   :  { %v3093_v9 = vpop.eup %3092 }
0x1469   :  { %1755 = vrot.lane.b32.xlu1 %v3093_v9, %s3133_s13 }
0x14db   :  { %v1756_v32 = vpop.permute.xlu1 %1755 }
0x14dc   :  { %v1758_v50 = vmul.f32 %v1756_v32, %v1753_v16 }
0x14de   :  { %v3822_v37 = vadd.f32 %v1761_v33, %v1758_v50  ;;  %v2064_v33 = vld [vmem:[%s3992_s8] sm:$0x3] }
0x14e0   :  { %v1803_v19 = vrot.slane %v3822_v37, 4 }
0x14e2   :  { %1804 = vrot.lane.b32.xlu0 %v1803_v19, %s3133_s13 }
0x1554   :  { %v1805_v20 = vpop.permute.xlu0 %1804 }
0x1555   :  { %2693 = vmatmul.mubr.msk.f32.vlgmr.msra.gmra.mrb[16].mxu0 %vm4000_vm7, %v1805_v20  ;;  %vm1915_vm7 = vcmask 523527  }
0x1556   :  { %2978 = vmatpush1.bf16.msra.mxu0 %v3603_v49  ;;  %2142 = vmatprep.mubr.f32.mxu0 %v3132_v3 }
0x1557   :  { %2980 = vmatprep.subr.bf16.mxu0 %v3614_v56 }
0x155a   :  { %2982 = vmatpush1.bf16.msra.mxu0 %v3629_v43 }
0x155b   :  { %2984 = vmatprep.subr.bf16.mxu0 %v3659_v15 }
0x155e   :  { %2986 = vmatpush1.bf16.msra.mxu0 %v3680_v18 }
0x155f   :  { %2988 = vmatprep.subr.bf16.mxu0 %v3689_v21 }
0x1562   :  { %2990 = vmatpush1.bf16.msra.mxu0 %v3710_v30 }
0x1563   :  { %3008 = vmatprep.subr.bf16.mxu0 %v3589_v42 }
0x1628   :  { %v1874_v24 = vpop.f32.mrb[16].mxu0 }
0x1629   :  { %v1875_v25 = vadd.f32 %v1874_v24, %v1796_v23  ;;  %v1876_v26 = vpop.f32.mrb[17].mxu0 }
0x162a   :  { %v1877_v42 = vadd.f32 %v1876_v26, %v1800_v35 }
0x162b   :  { %v1880_v27 = vrot.slane %v1875_v25, 2 }
0x162c   :  { %v1890_v36 = vrot.slane %v1877_v42, 2 }
0x162d   :  { %v1882_v28 = vadd.f32 %v1880_v27, %v3763_v59  ;;  %v1901_v59 = vrot.slane %v3822_v37, 6 }
0x162f   :  { %v2694_v29 = vmul.f32 -1.442695, %v1882_v28 }
0x1631   :  { %3094 = vpow2.f32 %v2694_v29 }
0x163b   :  { %v3095_v31 = vpop.eup %3094 }
0x163c   :  { %v1886_v34 = vadd.f32 1.0, %v3095_v31 }
0x163e   :  { %3096 = vrcp.f32 %v1886_v34 }
0x1648   :  { %v3097_v47 = vpop.eup %3096 }
0x1649   :  { %v1892_v38 = vmul.f32 %v3097_v47, %v1890_v36  ;;  %v1895_v0 = vsub.f32 1.0, %v3097_v47  ;;  %v1903_v22 = vmul.f32 %v3097_v47, %v1901_v59  ;;  %v2199_v47 = vld [vmem:[%s3992_s8] sm:$0x3] }
0x164b   :  { %v1893_v39 = vadd.f32 %v1892_v38, %v3772_v14  ;;  %v1933_v14 = vld [vmem:[%s3992_s8] sm:$0x3]  ;;  %v2204_v38 = vrot.slane %v2199_v47, %v3318_v40 }
0x164c   :  { %v1938_v52 = vrot.slane %v1933_v14, %v3318_v40  ;;  %v1942_v2 = vrot.slane %v1933_v14, %v3334_v55 }
0x164d   :  { %3098 = vtanh.f32 %v1893_v39 }
0x1657   :  { %v3099_v45 = vpop.eup %3098 }
0x1658   :  { %1897 = vrot.lane.b32.xlu1 %v3099_v45, %s3133_s13 }
0x16ca   :  { %v1898_v13 = vpop.permute.xlu1 %1897 }
0x16cb   :  { %v1900_v4 = vmul.f32 %v1898_v13, %v1895_v0 }
0x16cd   :  { %v3845_v46 = vadd.f32 %v1903_v22, %v1900_v4 }
0x16cf   :  { %v1945_v48 = vrot.slane %v3845_v46, 6 }
0x16d1   :  { %1946 = vrot.lane.b32.xlu0 %v1945_v48, %s3133_s13 }
0x1743   :  { %v1947_v51 = vpop.permute.xlu0 %1946 }
0x1744   :  { %2695 = vmatmul.mubr.msk.f32.vlgmr.msra.gmra.mrb[14].mxu1 %vm4001_vm8, %v1947_v51  ;;  %v2208_v51 = vrot.slane %v2199_v47, %v3334_v55  ;;  %vm1767_vm8 = vcmask 258052  }
0x1745   :  { %2994 = vmatpush1.bf16.msra.mxu1 %v3603_v49  ;;  %2280 = vmatprep.mubr.f32.mxu1 %v3132_v3 }
0x1746   :  { %2996 = vmatprep.subr.bf16.mxu1 %v3614_v56 }
0x1749   :  { %2998 = vmatpush1.bf16.msra.mxu1 %v3629_v43 }
0x174a   :  { %3000 = vmatprep.subr.bf16.mxu1 %v3659_v15 }
0x174d   :  { %3002 = vmatpush1.bf16.msra.mxu1 %v3680_v18 }
0x174e   :  { %3004 = vmatprep.subr.bf16.mxu1 %v3689_v21 }
0x1751   :  { %3006 = vmatpush1.bf16.msra.mxu1 %v3710_v30 }
0x1817   :  { %v2016_v53 = vpop.f32.mrb[14].mxu1 }
0x1818   :  { %v2017_v54 = vadd.f32 %v2016_v53, %v1938_v52  ;;  %v2018_v58 = vpop.f32.mrb[15].mxu1 }
0x1819   :  { %v2019_v44 = vadd.f32 %v2018_v58, %v1942_v2 }
0x181a   :  { %v2021_v61 = vadd.f32 %v2017_v54, %v3767_v41 }
0x181c   :  { %v2696_v62 = vmul.f32 -1.442695, %v2021_v61 }
0x181e   :  { %3100 = vpow2.f32 %v2696_v62 }
0x1828   :  { %v3101_v10 = vpop.eup %3100 }
0x1829   :  { %v2025_v1 = vadd.f32 1.0, %v3101_v10 }
0x182b   :  { %3102 = vrcp.f32 %v2025_v1 }
0x1835   :  { %v3103_v6 = vpop.eup %3102 }
0x1836   :  { %v2028_v12 = vmul.f32 %v3103_v6, %v2019_v44  ;;  %v2031_v8 = vsub.f32 1.0, %v3103_v6  ;;  %v2038_v9 = vmul.f32 %v3103_v6, %v1945_v48 }
0x1838   :  { %v2029_v57 = vadd.f32 %v2028_v12, %v3769_v5 }
0x183a   :  { %3104 = vtanh.f32 %v2029_v57 }
0x1844   :  { %v3105_v7 = vpop.eup %3104 }
0x1845   :  { %2033 = vrot.lane.b32.xlu1 %v3105_v7, %s3133_s13 }
0x18b7   :  { %v2034_v11 = vpop.permute.xlu1 %2033 }
0x18b8   :  { %v2036_v16 = vmul.f32 %v2034_v11, %v2031_v8  ;;  %v2337_v8 = vld [vmem:[%s3992_s8] sm:$0x3] }
0x18b9   :  { %v2342_v11 = vrot.slane %v2337_v8, %v3318_v40 }
0x18ba   :  { %v2039_v17 = vadd.f32 %v2038_v9, %v2036_v16 }
0x18bc   :  { %2041 = vrot.lane.b32.xlu0 %v2039_v17, %s3133_s13  ;;  %v2171_v63 = vrot.slane %v2039_v17, 6 }
0x192e   :  { %v3867_v32 = vpop.permute.xlu0 %2041 }
0x192f   :  { %2697 = vmatmul.mubr.msk.f32.vlgmr.msra.gmra.mrb[18].mxu0 %vm4002_vm9, %v3867_v32  ;;  %vm1769_vm9 = vcmask 520452  }
0x1930   :  { %3010 = vmatpush1.bf16.msra.mxu0 %v3603_v49  ;;  %2418 = vmatprep.mubr.f32.mxu0 %v3132_v3  ;;  %v2069_v49 = vrot.slane %v2064_v33, %v3318_v40 }
0x1931   :  { %3012 = vmatprep.subr.bf16.mxu0 %v3614_v56 }
0x1934   :  { %3014 = vmatpush1.bf16.msra.mxu0 %v3629_v43 }
0x1935   :  { %3016 = vmatprep.subr.bf16.mxu0 %v3659_v15 }
0x1938   :  { %3018 = vmatpush1.bf16.msra.mxu0 %v3680_v18 }
0x1939   :  { %3020 = vmatprep.subr.bf16.mxu0 %v3689_v21  ;;  %v2073_v21 = vrot.slane %v2064_v33, %v3334_v55 }
0x193c   :  { %3022 = vmatpush1.bf16.msra.mxu0 %v3710_v30 }
0x1a02   :  { %v2144_v50 = vpop.f32.mrb[18].mxu0 }
0x1a03   :  { %v2145_v3 = vadd.f32 %v2144_v50, %v2069_v49  ;;  %v2146_v19 = vpop.f32.mrb[19].mxu0 }
0x1a04   :  { %v2147_v30 = vadd.f32 %v2146_v19, %v2073_v21  ;;  %v2346_v19 = vrot.slane %v2337_v8, %v3334_v55 }
0x1a05   :  { %v2150_v56 = vrot.slane %v2145_v3, 6 }
0x1a06   :  { %v2160_v23 = vrot.slane %v2147_v30, 6 }
0x1a07   :  { %v2152_v43 = vadd.f32 %v2150_v56, %v3767_v41 }
0x1a09   :  { %v2698_v20 = vmul.f32 -1.442695, %v2152_v43 }
0x1a0b   :  { %3106 = vpow2.f32 %v2698_v20 }
0x1a15   :  { %v3107_v15 = vpop.eup %3106 }
0x1a16   :  { %v2156_v18 = vadd.f32 1.0, %v3107_v15 }
0x1a18   :  { %3108 = vrcp.f32 %v2156_v18 }
0x1a22   :  { %v3109_v24 = vpop.eup %3108 }
0x1a23   :  { %v2162_v25 = vmul.f32 %v3109_v24, %v2160_v23  ;;  %v2173_v26 = vmul.f32 %v3109_v24, %v2171_v63  ;;  %v2165_v29 = vsub.f32 1.0, %v3109_v24  ;;  %v2460_v23 = vld [vmem:[%s3994_s9] sm:$0xff] }
0x1a25   :  { %v2163_v27 = vadd.f32 %v2162_v25, %v3769_v5  ;;  %v3134_v25 = vmov 0  }
0x1a26   :  { %3027 = vset.pattern.permute.xlu1 %v3134_v25  ;;  %3026 = vset.pattern.permute.xlu0 %v3134_v25 }
0x1a27   :  { %3110 = vtanh.f32 %v2163_v27  ;;  %v2463_v27 = vld [vmem:[%s3995_s10 + $0x8] sm:$0xff] }
0x1a31   :  { %v3111_v28 = vpop.eup %3110 }
0x1a32   :  { %2167 = vrot.lane.b32.xlu1 %v3111_v28, %s3133_s13 }
0x1aa4   :  { %v2168_v31 = vpop.permute.xlu1 %2167 }
0x1aa5   :  { %v2170_v34 = vmul.f32 %v2168_v31, %v2165_v29 }
0x1aa7   :  { %v3887_v35 = vadd.f32 %v2173_v26, %v2170_v34  ;;  %v2462_v26 = vld [vmem:[%s3995_s10] sm:$0xff]  ;;  %v2461_v34 = vld [vmem:[%s3994_s9 + $0x8] sm:$0xff] }
0x1aa9   :  { %v2211_v42 = vrot.slane %v3887_v35, 2  ;;  %v2309_v10 = vrot.slane %v3887_v35, 6 }
0x1aab   :  { %2212 = vrot.lane.b32.xlu0 %v2211_v42, %s3133_s13 }
0x1b1d   :  { %v2213_v36 = vpop.permute.xlu0 %2212 }
0x1b1e   :  { %2699 = vmatmul.mubr.msk.f32.vlgmr.msra.gmra.mrb[16].mxu1 %vm4003_vm10, %v2213_v36  ;;  %vm1771_vm10 = vcmask 259077  }
0x1bf1   :  { %v2282_v39 = vpop.f32.mrb[16].mxu1 }
0x1bf2   :  { %v2283_v45 = vadd.f32 %v2282_v39, %v2204_v38  ;;  %v2284_v0 = vpop.f32.mrb[17].mxu1 }
0x1bf3   :  { %v2285_v14 = vadd.f32 %v2284_v0, %v2208_v51 }
0x1bf4   :  { %v2288_v59 = vrot.slane %v2283_v45, 4 }
0x1bf5   :  { %v2298_v52 = vrot.slane %v2285_v14, 4 }
0x1bf6   :  { %v2290_v13 = vadd.f32 %v2288_v59, %v3767_v41 }
0x1bf8   :  { %v2700_v22 = vmul.f32 -1.442695, %v2290_v13 }
0x1bfa   :  { %3112 = vpow2.f32 %v2700_v22 }
0x1c04   :  { %v3113_v4 = vpop.eup %3112 }
0x1c05   :  { %v2294_v48 = vadd.f32 1.0, %v3113_v4 }
0x1c07   :  { %3114 = vrcp.f32 %v2294_v48 }
0x1c11   :  { %v3115_v53 = vpop.eup %3114 }
0x1c12   :  { %v2300_v54 = vmul.f32 %v3115_v53, %v2298_v52  ;;  %v2303_v62 = vsub.f32 1.0, %v3115_v53  ;;  %v2311_v2 = vmul.f32 %v3115_v53, %v2309_v10 }
0x1c14   :  { %v2301_v58 = vadd.f32 %v2300_v54, %v3769_v5 }
0x1c16   :  { %3116 = vtanh.f32 %v2301_v58 }
0x1c20   :  { %v3117_v61 = vpop.eup %3116 }
0x1c21   :  { %2305 = vrot.lane.b32.xlu1 %v3117_v61, %s3133_s13 }
0x1c93   :  { %v2306_v1 = vpop.permute.xlu1 %2305 }
0x1c94   :  { %v2308_v44 = vmul.f32 %v2306_v1, %v2303_v62 }
0x1c96   :  { %v2312_v6 = vadd.f32 %v2311_v2, %v2308_v44 }
0x1c98   :  { %v2349_v12 = vrot.slane %v2312_v6, 4  ;;  %v2447_v20 = vrot.slane %v2312_v6, 6 }
0x1c9a   :  { %2350 = vrot.lane.b32.xlu0 %v2349_v12, %s3133_s13 }
0x1c9e   :  { %1622 = vrot.lane.b32.xlu0 %v3799_v60, %s3133_s13 }
0x1ca2   :  { %1906 = vrot.lane.b32.xlu0 %v3845_v46, %s3133_s13 }
0x1ca6   :  { %2314 = vrot.lane.b32.xlu0 %v2312_v6, %s3133_s13 }
0x1caa   :  { %2466 = vperm.xlu0 %3026, %v2462_v26  }
0x1cae   :  { %2575 = vperm.xlu0 %3026, %v2463_v27  }
0x1d0c   :  { %v2351_v57 = vpop.permute.xlu0 %2350 }
0x1d0d   :  { %2701 = vmatmul.mubr.msk.f32.vlgmr.msra.gmra.mrb[20].mxu0 %vm4004_vm11, %v2351_v57  ;;  %vm1773_vm11 = vcmask 521477  }
0x1d10   :  { %v1623_v7 = vpop.permute.xlu0 %1622 }
0x1d11   :  { %1626 = vst.msk [vmem:[#allocation2 - $0x1] sm:$0x4] %vm1625_vm12, %v1623_v7 }
0x1d12   :  { %1628 = vst.msk [vmem:[#allocation2 + $0x4] sm:$0x4] %vm1627_vm13, %v1623_v7 }
0x1d13   :  { %1630 = vst.msk [vmem:[#allocation2 + $0x6] sm:$0x8] %vm1629_vm14, %v1623_v7 }
0x1d14   :  { %1632 = vst.msk [vmem:[#allocation2 + $0xb] sm:$0x8] %vm1631_vm15, %v1623_v7  ;;  %v1907_v60 = vpop.permute.xlu0 %1906 }
0x1d15   :  { %1910 = vst.msk [vmem:[#allocation2 - $0x3] sm:$0x40] %vm1909_vm0, %v1907_v60 }
0x1d16   :  { %1912 = vst.msk [vmem:[#allocation2 - $0x2] sm:$0x40] %vm1911_vm5, %v1907_v60 }
0x1d17   :  { %1914 = vst.msk [vmem:[#allocation2 + $0x4] sm:$0x80] %vm1913_vm6, %v1907_v60 }
0x1d18   :  { %1916 = vst.msk [vmem:[#allocation2 + $0x5] sm:$0x80] %vm1915_vm7, %v1907_v60  ;;  %v2315_v46 = vpop.permute.xlu0 %2314 }
0x1d19   :  { %2044 = vst.msk [vmem:[#allocation2 + $0x4] sm:$0x1] %vm1486_vm1, %v3867_v32  ;;  %vm4005_vm1 = vcmask 523264  }
0x1d1a   :  { %2045 = vst.msk [vmem:[#allocation2 + $0x3] sm:$0x1] %vm1488_vm2, %v3867_v32  ;;  %2719 = vmatprep.mubr.msk.f32.mxu1 %vm4005_vm1, %v2460_v23  ;;  %vm4006_vm2 = vmmov %vm4005_vm1 }
0x1d1b   :  { %2046 = vst.msk [vmem:[#allocation2 + $0xb] sm:$0x2] %vm1490_vm3, %v3867_v32  ;;  %vm4007_vm3 = vmmov %vm4005_vm1 }
0x1d1c   :  { %2047 = vst.msk [vmem:[#allocation2 + $0xa] sm:$0x2] %vm1492_vm4, %v3867_v32  ;;  %vm4008_vm4 = vmmov %vm4005_vm1 }
0x1d1d   :  { %2317 = vst.msk [vmem:[#allocation2 + $0x2] sm:$0x10] %vm1767_vm8, %v2315_v46 }
0x1d1e   :  { %2318 = vst.msk [vmem:[#allocation2 - $0x3] sm:$0x10] %vm1769_vm9, %v2315_v46 }
0x1d1f   :  { %2319 = vst.msk [vmem:[#allocation2 + $0x9] sm:$0x20] %vm1771_vm10, %v2315_v46 }
0x1d20   :  { %2320 = vst.msk [vmem:[#allocation2 + $0x4] sm:$0x20] %vm1773_vm11, %v2315_v46 }
0x1de0   :  { %v2420_v9 = vpop.f32.mrb[20].mxu0 }
0x1de1   :  { %v2421_v16 = vadd.f32 %v2420_v9, %v2342_v11  ;;  %v2422_v17 = vpop.f32.mrb[21].mxu0 }
0x1de2   :  { %v2423_v56 = vadd.f32 %v2422_v17, %v2346_v19 }
0x1de3   :  { %v2426_v32 = vrot.slane %v2421_v16, 2 }
0x1de4   :  { %v2436_v43 = vrot.slane %v2423_v56, 2 }
0x1de5   :  { %v2428_v33 = vadd.f32 %v2426_v32, %v3767_v41 }
0x1de7   :  { %v2702_v49 = vmul.f32 -1.442695, %v2428_v33 }
0x1de9   :  { %3118 = vpow2.f32 %v2702_v49 }
0x1df3   :  { %v3119_v50 = vpop.eup %3118 }
0x1df4   :  { %v2432_v3 = vadd.f32 1.0, %v3119_v50 }
0x1df6   :  { %3120 = vrcp.f32 %v2432_v3 }
0x1e00   :  { %v3121_v15 = vpop.eup %3120 }
0x1e01   :  { %v2438_v18 = vmul.f32 %v3121_v15, %v2436_v43  ;;  %v2449_v21 = vmul.f32 %v3121_v15, %v2447_v20  ;;  %v2441_v41 = vsub.f32 1.0, %v3121_v15 }
0x1e03   :  { %v2439_v40 = vadd.f32 %v2438_v18, %v3769_v5 }
0x1e05   :  { %3122 = vtanh.f32 %v2439_v40 }
0x1e0f   :  { %v3123_v30 = vpop.eup %3122 }
0x1e10   :  { %2443 = vrot.lane.b32.xlu1 %v3123_v30, %s3133_s13 }
0x1e14   :  { %1764 = vrot.lane.b32.xlu1 %v3822_v37, %s3133_s13 }
0x1e18   :  { %2176 = vrot.lane.b32.xlu1 %v3887_v35, %s3133_s13  ;;  %v2467_v35 = vpop.permute.xlu0 %2466 }
0x1e1c   :  { %v2576_v45 = vpop.permute.xlu0 %2575 }
0x1e82   :  { %v2444_v55 = vpop.permute.xlu1 %2443 }
0x1e83   :  { %v2446_v63 = vmul.f32 %v2444_v55, %v2441_v41 }
0x1e85   :  { %v2450_v24 = vadd.f32 %v2449_v21, %v2446_v63 }
0x1e86   :  { %v1765_v5 = vpop.permute.xlu1 %1764 }
0x1e87   :  { %1768 = vst.msk [vmem:[#allocation2 - $0x2] sm:$0x10] %vm1767_vm8, %v1765_v5  ;;  %2452 = vrot.lane.b32.xlu1 %v2450_v24, %s3133_s13 }
0x1e88   :  { %1770 = vst.msk [vmem:[#allocation2 + $0x1] sm:$0x10] %vm1769_vm9, %v1765_v5 }
0x1e89   :  { %1772 = vst.msk [vmem:[#allocation2 + $0x5] sm:$0x20] %vm1771_vm10, %v1765_v5 }
0x1e8a   :  { %1774 = vst.msk [vmem:[#allocation2 + $0x8] sm:$0x20] %vm1773_vm11, %v1765_v5  ;;  %v2177_v37 = vpop.permute.xlu1 %2176 }
0x1e8b   :  { %2179 = vst.msk [vmem:[#allocation2 + $0x3] sm:$0x4] %vm1625_vm12, %v2177_v37  ;;  %2471 = vperm.xlu1 %3027, %v2463_v27   ;;  %vm4009_vm12 = vmmov %vm4005_vm1 }
0x1e8c   :  { %2180 = vst.msk [vmem:[#allocation2] sm:$0x4] %vm1627_vm13, %v2177_v37  ;;  %vm4010_vm13 = vmmov %vm4005_vm1 }
0x1e8d   :  { %2181 = vst.msk [vmem:[#allocation2 + $0xa] sm:$0x8] %vm1629_vm14, %v2177_v37  ;;  %vm4011_vm14 = vmmov %vm4005_vm1 }
0x1e8e   :  { %2182 = vst.msk [vmem:[#allocation2 + $0x7] sm:$0x8] %vm1631_vm15, %v2177_v37  ;;  %vm4012_vm15 = vmmov %vm4005_vm1 }
0x1e8f   :  { %2570 = vperm.xlu1 %3027, %v2462_v26  }
0x1ef9   :  { %v2453_v28 = vpop.permute.xlu1 %2452 }
0x1efa   :  { %2455 = vst.msk [vmem:[#allocation2 + $0x1] sm:$0x40] %vm1909_vm0, %v2453_v28  ;;  %vm2560_vm0 = vcmask 64512  }
0x1efb   :  { %2456 = vst.msk [vmem:[#allocation2 - $0x6] sm:$0x40] %vm1911_vm5, %v2453_v28 }
0x1efc   :  { %2457 = vst.msk [vmem:[#allocation2 + $0x8] sm:$0x80] %vm1913_vm6, %v2453_v28 }
0x1efd   :  { %2458 = vst.msk [vmem:[#allocation2 + $0x1] sm:$0x80] %vm1915_vm7, %v2453_v28 }
0x1f02   :  { %v2459_v29 = vld [vmem:[#allocation2] sm:$0xff] }
0x1f03   :  { %2717 = vmatprep.subr.msk.mxu1 %vm4006_vm2, %v2459_v29 }
0x1f04   :  { %2718 = vmatpush3.xpose.msk.msra.mxu1 %vm4007_vm3, %v2459_v29  ;;  %v2563_v31 = vld [vmem:[#allocation2 + $0x8] sm:$0xff] }
0x1f05   :  { %2722 = vmatprep.subr.msk.mxu1 %vm4008_vm4, %v2563_v31 }
0x1f07   :  { %2720 = vmatmul.mubr.msk.f32.vlgmr.msra.gmra.mrb[18].mxu1 %vm4009_vm12, %v2461_v34 }
0x1f08   :  { %2723 = vmatpush3.xpose.msk.msra.mxu1 %vm4010_vm13, %v2563_v31  ;;  %2724 = vmatprep.mubr.msk.f32.mxu1 %vm4011_vm14, %v2460_v23 }
0x1f0a   :  { %v2472_v42 = vpop.permute.xlu1 %2471 }
0x1f0b   :  { %2725 = vmatmul.mubr.msk.f32.vlgmr.msra.gmra.mrb[20].mxu1 %vm4012_vm15, %v2461_v34 }
0x1f0e   :  { %v2571_v59 = vpop.permute.xlu1 %2570 }
0x1fda   :  { %v2721_v36 = vpop.f32.mrb[18].mxu1 }
0x1fdb   :  { %v2555_v47 = vadd.f32 %v2721_v36, %v2472_v42  ;;  %v2549_v38 = vpop.f32.mrb[19].mxu1 }
0x1fdc   :  { %v2550_v39 = vadd.f32 %v2549_v38, %v2467_v35 }
0x1fdd   :  { %3124 = vtanh.f32 %v2555_v47 }
0x1fde   :  { %3126 = vtanh.f32 %v2550_v39  ;;  %v2726_v0 = vpop.f32.mrb[20].mxu1 }
0x1fdf   :  { %v2659_v13 = vadd.f32 %v2726_v0, %v2576_v45  ;;  %v2653_v22 = vpop.f32.mrb[21].mxu1 }
0x1fe0   :  { %v2654_v4 = vadd.f32 %v2653_v22, %v2571_v59 }
0x1fe1   :  { %3128 = vtanh.f32 %v2659_v13 }
0x1fe2   :  { %3130 = vtanh.f32 %v2654_v4 }
0x1fe7   :  { %v3125_v48 = vpop.eup %3124 }
0x1fe8   :  { %v3127_v51 = vpop.eup %3126  ;;  %2562 = vst.msk [vmem:[%s3996_s11 + $0x8] sm:$0xff] %vm2560_vm0, %v3125_v48 }
0x1fe9   :  { %2561 = vst.msk [vmem:[%s3996_s11] sm:$0xff] %vm2560_vm0, %v3127_v51 }
0x1feb   :  { %v3129_v14 = vpop.eup %3128 }
0x1fec   :  { %v3131_v52 = vpop.eup %3130  ;;  %2710 = vst.msk [vmem:[%s3996_s11 + $0x18] sm:$0xff] %vm2560_vm0, %v3129_v14 }
0x1fed   :  { %2709 = vst.msk [vmem:[%s3996_s11 + $0x10] sm:$0xff] %vm2560_vm0, %v3131_v52 }

</bundles_post_ra>
